<compile_context>
chip_gen: v6e
topology: v6e:2x2x1
jax: 0.10.0
libtpu: 0.0.40
codegen_flags: <defaults>
</compile_context>

<pallas_src>
import numpy as np

import jax
import jax.numpy as jnp
from jax.experimental import pallas as pl
from jax.experimental.pallas import tpu as pltpu


# ----------------------------------------------------------------------------
# Host-side weight folding: conv / convT (+ flattening) -> dense layer matrix
# ----------------------------------------------------------------------------
def _conv_to_matrix(w, in_h, in_w):
    """Conv2d(k=4, s=2, p=1) folded into a (Cin*in_h*in_w, Cout*out_h*out_w) matrix.
    w: (Cout, Cin, 4, 4).  Row index = ci*H*W + ih*W + iw (row-major NCHW flatten)."""
    cout, cin, kh, kw = w.shape
    out_h, out_w = in_h // 2, in_w // 2
    sel = np.zeros((kh, kw, in_h * in_w, out_h * out_w), np.float32)
    oy, ox = np.meshgrid(np.arange(out_h), np.arange(out_w), indexing="ij")
    for ky in range(kh):
        for kx in range(kw):
            yy = 2 * oy + ky - 1          # input row hit by this tap (pad = 1)
            xx = 2 * ox + kx - 1
            ok = (yy >= 0) & (yy < in_h) & (xx >= 0) & (xx < in_w)
            sel[ky, kx, (yy * in_w + xx)[ok], (oy * out_w + ox)[ok]] = 1.0
    m = jnp.einsum("ocyx,yxpq->cpoq", w, jnp.asarray(sel))
    return m.reshape(cin * in_h * in_w, cout * out_h * out_w)


def _convT_to_matrix(w, in_h, in_w):
    """ConvTranspose2d(k=4, s=2, p=1) folded the same way.  w: (Cin, Cout, 4, 4).
    Only valid taps are routed, so the 75%-zero dilated input never exists."""
    cin, cout, kh, kw = w.shape
    out_h, out_w = 2 * in_h, 2 * in_w
    sel = np.zeros((kh, kw, in_h * in_w, out_h * out_w), np.float32)
    iy, ix = np.meshgrid(np.arange(in_h), np.arange(in_w), indexing="ij")
    for ky in range(kh):
        for kx in range(kw):
            yy = 2 * iy + ky - 1          # output row receiving this tap (pad = 1)
            xx = 2 * ix + kx - 1
            ok = (yy >= 0) & (yy < out_h) & (xx >= 0) & (xx < out_w)
            sel[ky, kx, (iy * in_w + ix)[ok], (yy * out_w + xx)[ok]] = 1.0
    m = jnp.einsum("ioyx,yxpq->ipoq", w, jnp.asarray(sel))
    return m.reshape(cin * in_h * in_w, cout * out_h * out_w)


# ----------------------------------------------------------------------------
# Parameters (deterministic synthetic init — identical semantics to before)
# ----------------------------------------------------------------------------
def init_unet_params(key, nf=8, cin=3, cout=1, levels=4, bn_eps=1e-5):
    enc_out = [nf * min(2 ** i, 8) for i in range(levels)]

    def bn_fold(k, c):
        k1, k2, k3, k4 = jax.random.split(k, 4)
        gamma = 1.0 + 0.1 * jax.random.normal(k1, (c,), jnp.float32)
        beta = 0.1 * jax.random.normal(k2, (c,), jnp.float32)
        rmean = 0.1 * jax.random.normal(k3, (c,), jnp.float32)
        rvar = 1.0 + 0.2 * jax.random.uniform(k4, (c,), jnp.float32)
        scale = gamma / jnp.sqrt(rvar + bn_eps)
        shift = beta - rmean * scale
        return scale, shift

    keys = jax.random.split(key, 2 * levels)
    enc, dec = [], []
    for i in range(levels):
        ci = cin if i == 0 else enc_out[i - 1]
        co = enc_out[i]
        kw_, kb_, kbn = jax.random.split(keys[i], 3)
        w = 0.05 * jax.random.normal(kw_, (co, ci, 4, 4), jnp.float32)
        b = 0.05 * jax.random.normal(kb_, (co,), jnp.float32)
        if 0 < i < levels - 1:                       # BN except first & innermost enc
            scale, shift = bn_fold(kbn, co)
        else:
            scale, shift = jnp.ones((co,), jnp.float32), jnp.zeros((co,), jnp.float32)
        enc.append(dict(w=w, b=b, scale=scale, shift=shift,
                        act="none" if i == 0 else "leaky_relu"))

    for i in range(levels):
        ci = enc_out[-1] if i == 0 else 2 * enc_out[levels - 1 - i]
        co = cout if i == levels - 1 else enc_out[levels - 2 - i]
        kw_, kb_, kbn = jax.random.split(keys[levels + i], 3)
        w = 0.05 * jax.random.normal(kw_, (ci, co, 4, 4), jnp.float32)  # ConvT layout
        b = 0.05 * jax.random.normal(kb_, (co,), jnp.float32)
        if i < levels - 1:                           # BN except last decoder
            scale, shift = bn_fold(kbn, co)
        else:
            scale, shift = jnp.ones((co,), jnp.float32), jnp.zeros((co,), jnp.float32)
        dec.append(dict(w=w, b=b, scale=scale, shift=shift, act="relu"))

    return dict(enc=enc, dec=dec)


# ----------------------------------------------------------------------------
# One-time packing: per-layer dense matrices (bf16, BN scale folded in) +
# per-lane shift vectors (f32, conv bias + BN shift folded together)
# ----------------------------------------------------------------------------
def pack_unet_params(params, height, width):
    levels = len(params["enc"])
    arrays, plan = [], []
    h, w = height, width

    def fold_scale(m_f32, scale, cout, out_hw):
        # out = (x@M + b)*scale + shift  ==  x @ (M*scale_col) + (b*scale + shift)
        col_scale = jnp.repeat(scale, out_hw).reshape(1, cout * out_hw)
        return (m_f32 * col_scale).astype(jnp.bfloat16)

    def fold_shift(p, cout, out_hw):
        sh = jnp.repeat(p["b"] * p["scale"] + p["shift"], out_hw)
        return sh.reshape(1, cout * out_hw).astype(jnp.float32)

    # ---- encoder: Conv2d k4 s2 p1 ----
    for i, p in enumerate(params["enc"]):
        cout = p["w"].shape[0]
        oh, ow = h // 2, w // 2
        arrays.append(fold_scale(_conv_to_matrix(p["w"], h, w), p["scale"], cout, oh * ow))
        arrays.append(fold_shift(p, cout, oh * ow))
        plan.append(dict(act=p["act"], skip_from=None, save=(i < levels - 1)))
        h, w = oh, ow

    # ---- decoder: ConvTranspose2d k4 s2 p1, skip concat folded into split matmuls ----
    prev_cout = params["enc"][-1]["w"].shape[0]
    for i, p in enumerate(params["dec"]):
        cout = p["w"].shape[1]
        oh, ow = 2 * h, 2 * w
        if i == 0:
            arrays.append(fold_scale(_convT_to_matrix(p["w"], h, w),
                                     p["scale"], cout, oh * ow))
            skip_from = None
        else:
            c_dec = prev_cout                         # concat order is [dec, enc]
            arrays.append(fold_scale(_convT_to_matrix(p["w"][:c_dec], h, w),
                                     p["scale"], cout, oh * ow))
            arrays.append(fold_scale(_convT_to_matrix(p["w"][c_dec:], h, w),
                                     p["scale"], cout, oh * ow))
            skip_from = levels - 1 - i                # enc feature index to read
        arrays.append(fold_shift(p, cout, oh * ow))
        plan.append(dict(act=p["act"], skip_from=skip_from, save=False))
        h, w = oh, ow
        prev_cout = cout

    return dict(arrays=arrays, plan=plan,
                out_channels=params["dec"][-1]["w"].shape[1], out_hw=(h, w))


# ----------------------------------------------------------------------------
# The single fused Pallas kernel: whole UNet + sigmoid depth scaling in VMEM
# ----------------------------------------------------------------------------
def _build_unet_kernel(plan, num_inputs, max_depth, min_depth):
    depth_range = max_depth - min_depth

    def _preact(v, act):
        if act == "leaky_relu":
            return jnp.where(v >= 0.0, v, 0.2 * v)    # applied once per element
        if act == "relu":
            return jnp.maximum(v, 0.0)
        return v

    def kernel(*refs):
        out_ref = refs[num_inputs]
        cur = refs[0][...]                            # (rows, Cin*H*W) f32
        feats = []                                    # encoder features kept in VMEM/vregs
        ri = 1
        for lyr in plan:
            branches = [cur]
            if lyr["skip_from"] is not None:          # skip concat == extra K-axis matmul
                branches.append(feats[lyr["skip_from"]])
            acc = None
            for b in branches:
                a = _preact(b, lyr["act"]).astype(jnp.bfloat16)   # bf16 only for the MXU
                y = jnp.dot(a, refs[ri][...], preferred_element_type=jnp.float32)
                ri += 1
                acc = y if acc is None else acc + y
            cur = acc + refs[ri][...]                 # folded bias + BN epilogue (single add)
            ri += 1
            if lyr["save"]:
                feats.append(cur)
        # fused depth scaling: sigmoid on the EUP, no extra HBM round trip
        out_ref[...] = jax.nn.sigmoid(cur) * depth_range + min_depth

    return kernel


# ----------------------------------------------------------------------------
# Forward: NCHW in -> depth NCHW out, one pallas_call
# ----------------------------------------------------------------------------
def depth_estimator_unet(images_nchw, packed, max_depth=100.0, min_depth=1.0):
    n, c, h, w = images_nchw.shape
    out_h, out_w = packed["out_hw"]
    cout = packed["out_channels"]

    # row-flat layout: batch on sublanes (padded to 8), channel*spatial on lanes
    rows = ((n + 7) // 8) * 8
    x = images_nchw.astype(jnp.float32).reshape(n, c * h * w)
    x_pad = jnp.zeros((rows, c * h * w), jnp.float32).at[:n, :].set(x)

    args = [x_pad] + list(packed["arrays"])
    out_lanes = cout * out_h * out_w                  # lane-dense (multiple of 128)
    kernel = _build_unet_kernel(packed["plan"], len(args),
                                float(max_depth), float(min_depth))

    vmem = pl.BlockSpec(memory_space=pltpu.MemorySpace.VMEM)
    depth_flat = pl.pallas_call(
        kernel,
        out_shape=jax.ShapeDtypeStruct((rows, out_lanes), jnp.float32),
        in_specs=[vmem] * len(args),
        out_specs=vmem,
        # ~2.3 MiB of packed weights + tiny activations: explicit budget so the
        # same kernel fits v7x's 64 MiB VMEM as well as v5e/v6e.
        compiler_params=pltpu.CompilerParams(vmem_limit_bytes=32 * 1024 * 1024),
    )(*args)

    return depth_flat[:n].reshape(n, cout, out_h, out_w)


# ----------------------------------------------------------------------------
if __name__ == "__main__":
    key = jax.random.PRNGKey(0)
    pkey, xkey = jax.random.split(key)

    params = init_unet_params(pkey, nf=8, cin=3, cout=1, levels=4)
    images = jax.random.normal(xkey, (2, 3, 16, 16), jnp.float32)      # NCHW

    packed = pack_unet_params(params, height=16, width=16)             # one-time weight folding

    depth = depth_estimator_unet(images, packed, max_depth=100.0, min_depth=1.0)
    depth = jax.block_until_ready(depth)

    assert depth.shape == (2, 1, 16, 16), depth.shape
    assert bool(jnp.all(jnp.isfinite(depth)))
    assert bool(jnp.all(depth >= 1.0)) and bool(jnp.all(depth <= 100.0))
    print("KERNEL_OK")
</pallas_src>

<mosaic_0001>
module attributes {stable_mosaic.version = 11 : i64} {
  func.func @kernel(%arg0: memref<8x768xf32, #tpu.memory_space<vmem>>, %arg1: memref<768x512xbf16, #tpu.memory_space<vmem>>, %arg2: memref<1x512xf32, #tpu.memory_space<vmem>>, %arg3: memref<512x256xbf16, #tpu.memory_space<vmem>>, %arg4: memref<1x256xf32, #tpu.memory_space<vmem>>, %arg5: memref<256x128xbf16, #tpu.memory_space<vmem>>, %arg6: memref<1x128xf32, #tpu.memory_space<vmem>>, %arg7: memref<128x64xbf16, #tpu.memory_space<vmem>>, %arg8: memref<1x64xf32, #tpu.memory_space<vmem>>, %arg9: memref<64x128xbf16, #tpu.memory_space<vmem>>, %arg10: memref<1x128xf32, #tpu.memory_space<vmem>>, %arg11: memref<128x256xbf16, #tpu.memory_space<vmem>>, %arg12: memref<128x256xbf16, #tpu.memory_space<vmem>>, %arg13: memref<1x256xf32, #tpu.memory_space<vmem>>, %arg14: memref<256x512xbf16, #tpu.memory_space<vmem>>, %arg15: memref<256x512xbf16, #tpu.memory_space<vmem>>, %arg16: memref<1x512xf32, #tpu.memory_space<vmem>>, %arg17: memref<512x256xbf16, #tpu.memory_space<vmem>>, %arg18: memref<512x256xbf16, #tpu.memory_space<vmem>>, %arg19: memref<1x256xf32, #tpu.memory_space<vmem>>, %arg20: memref<8x256xf32, #tpu.memory_space<vmem>>) attributes {dimension_semantics = [], scalar_prefetch = 0 : i64, scratch_operands = 0 : i64, tpu.core_type = #tpu.core_type<tc>} {
    %c0 = arith.constant 0 : index
    %c0_0 = arith.constant 0 : index
    %0 = vector.load %arg0[%c0, %c0_0] : memref<8x768xf32, #tpu.memory_space<vmem>>, vector<8x768xf32>
    %1 = arith.truncf %0 : vector<8x768xf32> to vector<8x768xbf16>
    %c0_1 = arith.constant 0 : index
    %c0_2 = arith.constant 0 : index
    %2 = vector.load %arg1[%c0_1, %c0_2] : memref<768x512xbf16, #tpu.memory_space<vmem>>, vector<768x512xbf16>
    %cst = arith.constant dense<0.000000e+00> : vector<8x512xf32>
    %3 = tpu.matmul %1, %2, %cst {dimension_numbers = #tpu.dot_dimension_numbers<[1], [0], [0], [1], [0, 0, 1, 1], [], []>} : vector<8x768xbf16>, vector<768x512xbf16>, vector<8x512xf32> -> vector<8x512xf32>
    %c0_3 = arith.constant 0 : index
    %c0_4 = arith.constant 0 : index
    %4 = vector.load %arg2[%c0_3, %c0_4] : memref<1x512xf32, #tpu.memory_space<vmem>>, vector<1x512xf32>
    %5 = vector.broadcast %4 : vector<1x512xf32> to vector<8x512xf32>
    %6 = arith.addf %3, %5 : vector<8x512xf32>
    %cst_5 = arith.constant 0.000000e+00 : f32
    %7 = vector.broadcast %cst_5 : f32 to vector<8x512xf32>
    %8 = arith.cmpf oge, %6, %7 : vector<8x512xf32>
    %cst_6 = arith.constant 2.000000e-01 : f32
    %9 = vector.broadcast %cst_6 : f32 to vector<8x512xf32>
    %10 = arith.mulf %9, %6 : vector<8x512xf32>
    %11 = arith.select %8, %6, %10 : vector<8x512xi1>, vector<8x512xf32>
    %12 = arith.truncf %11 : vector<8x512xf32> to vector<8x512xbf16>
    %c0_7 = arith.constant 0 : index
    %c0_8 = arith.constant 0 : index
    %13 = vector.load %arg3[%c0_7, %c0_8] : memref<512x256xbf16, #tpu.memory_space<vmem>>, vector<512x256xbf16>
    %cst_9 = arith.constant dense<0.000000e+00> : vector<8x256xf32>
    %14 = tpu.matmul %12, %13, %cst_9 {dimension_numbers = #tpu.dot_dimension_numbers<[1], [0], [0], [1], [0, 0, 1, 1], [], []>} : vector<8x512xbf16>, vector<512x256xbf16>, vector<8x256xf32> -> vector<8x256xf32>
    %c0_10 = arith.constant 0 : index
    %c0_11 = arith.constant 0 : index
    %15 = vector.load %arg4[%c0_10, %c0_11] : memref<1x256xf32, #tpu.memory_space<vmem>>, vector<1x256xf32>
    %16 = vector.broadcast %15 : vector<1x256xf32> to vector<8x256xf32>
    %17 = arith.addf %14, %16 : vector<8x256xf32>
    %cst_12 = arith.constant 0.000000e+00 : f32
    %18 = vector.broadcast %cst_12 : f32 to vector<8x256xf32>
    %19 = arith.cmpf oge, %17, %18 : vector<8x256xf32>
    %cst_13 = arith.constant 2.000000e-01 : f32
    %20 = vector.broadcast %cst_13 : f32 to vector<8x256xf32>
    %21 = arith.mulf %20, %17 : vector<8x256xf32>
    %22 = arith.select %19, %17, %21 : vector<8x256xi1>, vector<8x256xf32>
    %23 = arith.truncf %22 : vector<8x256xf32> to vector<8x256xbf16>
    %c0_14 = arith.constant 0 : index
    %c0_15 = arith.constant 0 : index
    %24 = vector.load %arg5[%c0_14, %c0_15] : memref<256x128xbf16, #tpu.memory_space<vmem>>, vector<256x128xbf16>
    %cst_16 = arith.constant dense<0.000000e+00> : vector<8x128xf32>
    %25 = tpu.matmul %23, %24, %cst_16 {dimension_numbers = #tpu.dot_dimension_numbers<[1], [0], [0], [1], [0, 0, 1, 1], [], []>} : vector<8x256xbf16>, vector<256x128xbf16>, vector<8x128xf32> -> vector<8x128xf32>
    %c0_17 = arith.constant 0 : index
    %c0_18 = arith.constant 0 : index
    %26 = vector.load %arg6[%c0_17, %c0_18] : memref<1x128xf32, #tpu.memory_space<vmem>>, vector<1x128xf32>
    %27 = vector.broadcast %26 : vector<1x128xf32> to vector<8x128xf32>
    %28 = arith.addf %25, %27 : vector<8x128xf32>
    %cst_19 = arith.constant 0.000000e+00 : f32
    %29 = vector.broadcast %cst_19 : f32 to vector<8x128xf32>
    %30 = arith.cmpf oge, %28, %29 : vector<8x128xf32>
    %cst_20 = arith.constant 2.000000e-01 : f32
    %31 = vector.broadcast %cst_20 : f32 to vector<8x128xf32>
    %32 = arith.mulf %31, %28 : vector<8x128xf32>
    %33 = arith.select %30, %28, %32 : vector<8x128xi1>, vector<8x128xf32>
    %34 = arith.truncf %33 : vector<8x128xf32> to vector<8x128xbf16>
    %c0_21 = arith.constant 0 : index
    %c0_22 = arith.constant 0 : index
    %35 = vector.load %arg7[%c0_21, %c0_22] : memref<128x64xbf16, #tpu.memory_space<vmem>>, vector<128x64xbf16>
    %cst_23 = arith.constant dense<0.000000e+00> : vector<8x64xf32>
    %36 = tpu.matmul %34, %35, %cst_23 {dimension_numbers = #tpu.dot_dimension_numbers<[1], [0], [0], [1], [0, 0, 1, 1], [], []>} : vector<8x128xbf16>, vector<128x64xbf16>, vector<8x64xf32> -> vector<8x64xf32>
    %c0_24 = arith.constant 0 : index
    %c0_25 = arith.constant 0 : index
    %37 = vector.load %arg8[%c0_24, %c0_25] : memref<1x64xf32, #tpu.memory_space<vmem>>, vector<1x64xf32>
    %38 = vector.broadcast %37 : vector<1x64xf32> to vector<8x64xf32>
    %39 = arith.addf %36, %38 : vector<8x64xf32>
    %cst_26 = arith.constant 0.000000e+00 : f32
    %40 = vector.broadcast %cst_26 : f32 to vector<8x64xf32>
    %41 = arith.maximumf %39, %40 : vector<8x64xf32>
    %42 = arith.truncf %41 : vector<8x64xf32> to vector<8x64xbf16>
    %c0_27 = arith.constant 0 : index
    %c0_28 = arith.constant 0 : index
    %43 = vector.load %arg9[%c0_27, %c0_28] : memref<64x128xbf16, #tpu.memory_space<vmem>>, vector<64x128xbf16>
    %cst_29 = arith.constant dense<0.000000e+00> : vector<8x128xf32>
    %44 = tpu.matmul %42, %43, %cst_29 {dimension_numbers = #tpu.dot_dimension_numbers<[1], [0], [0], [1], [0, 0, 1, 1], [], []>} : vector<8x64xbf16>, vector<64x128xbf16>, vector<8x128xf32> -> vector<8x128xf32>
    %c0_30 = arith.constant 0 : index
    %c0_31 = arith.constant 0 : index
    %45 = vector.load %arg10[%c0_30, %c0_31] : memref<1x128xf32, #tpu.memory_space<vmem>>, vector<1x128xf32>
    %46 = vector.broadcast %45 : vector<1x128xf32> to vector<8x128xf32>
    %47 = arith.addf %44, %46 : vector<8x128xf32>
    %cst_32 = arith.constant 0.000000e+00 : f32
    %48 = vector.broadcast %cst_32 : f32 to vector<8x128xf32>
    %49 = arith.maximumf %47, %48 : vector<8x128xf32>
    %50 = arith.truncf %49 : vector<8x128xf32> to vector<8x128xbf16>
    %c0_33 = arith.constant 0 : index
    %c0_34 = arith.constant 0 : index
    %51 = vector.load %arg11[%c0_33, %c0_34] : memref<128x256xbf16, #tpu.memory_space<vmem>>, vector<128x256xbf16>
    %cst_35 = arith.constant dense<0.000000e+00> : vector<8x256xf32>
    %52 = tpu.matmul %50, %51, %cst_35 {dimension_numbers = #tpu.dot_dimension_numbers<[1], [0], [0], [1], [0, 0, 1, 1], [], []>} : vector<8x128xbf16>, vector<128x256xbf16>, vector<8x256xf32> -> vector<8x256xf32>
    %cst_36 = arith.constant 0.000000e+00 : f32
    %53 = vector.broadcast %cst_36 : f32 to vector<8x128xf32>
    %54 = arith.maximumf %28, %53 : vector<8x128xf32>
    %55 = arith.truncf %54 : vector<8x128xf32> to vector<8x128xbf16>
    %c0_37 = arith.constant 0 : index
    %c0_38 = arith.constant 0 : index
    %56 = vector.load %arg12[%c0_37, %c0_38] : memref<128x256xbf16, #tpu.memory_space<vmem>>, vector<128x256xbf16>
    %cst_39 = arith.constant dense<0.000000e+00> : vector<8x256xf32>
    %57 = tpu.matmul %55, %56, %cst_39 {dimension_numbers = #tpu.dot_dimension_numbers<[1], [0], [0], [1], [0, 0, 1, 1], [], []>} : vector<8x128xbf16>, vector<128x256xbf16>, vector<8x256xf32> -> vector<8x256xf32>
    %58 = arith.addf %52, %57 : vector<8x256xf32>
    %c0_40 = arith.constant 0 : index
    %c0_41 = arith.constant 0 : index
    %59 = vector.load %arg13[%c0_40, %c0_41] : memref<1x256xf32, #tpu.memory_space<vmem>>, vector<1x256xf32>
    %60 = vector.broadcast %59 : vector<1x256xf32> to vector<8x256xf32>
    %61 = arith.addf %58, %60 : vector<8x256xf32>
    %cst_42 = arith.constant 0.000000e+00 : f32
    %62 = vector.broadcast %cst_42 : f32 to vector<8x256xf32>
    %63 = arith.maximumf %61, %62 : vector<8x256xf32>
    %64 = arith.truncf %63 : vector<8x256xf32> to vector<8x256xbf16>
    %c0_43 = arith.constant 0 : index
    %c0_44 = arith.constant 0 : index
    %65 = vector.load %arg14[%c0_43, %c0_44] : memref<256x512xbf16, #tpu.memory_space<vmem>>, vector<256x512xbf16>
    %cst_45 = arith.constant dense<0.000000e+00> : vector<8x512xf32>
    %66 = tpu.matmul %64, %65, %cst_45 {dimension_numbers = #tpu.dot_dimension_numbers<[1], [0], [0], [1], [0, 0, 1, 1], [], []>} : vector<8x256xbf16>, vector<256x512xbf16>, vector<8x512xf32> -> vector<8x512xf32>
    %cst_46 = arith.constant 0.000000e+00 : f32
    %67 = vector.broadcast %cst_46 : f32 to vector<8x256xf32>
    %68 = arith.maximumf %17, %67 : vector<8x256xf32>
    %69 = arith.truncf %68 : vector<8x256xf32> to vector<8x256xbf16>
    %c0_47 = arith.constant 0 : index
    %c0_48 = arith.constant 0 : index
    %70 = vector.load %arg15[%c0_47, %c0_48] : memref<256x512xbf16, #tpu.memory_space<vmem>>, vector<256x512xbf16>
    %cst_49 = arith.constant dense<0.000000e+00> : vector<8x512xf32>
    %71 = tpu.matmul %69, %70, %cst_49 {dimension_numbers = #tpu.dot_dimension_numbers<[1], [0], [0], [1], [0, 0, 1, 1], [], []>} : vector<8x256xbf16>, vector<256x512xbf16>, vector<8x512xf32> -> vector<8x512xf32>
    %72 = arith.addf %66, %71 : vector<8x512xf32>
    %c0_50 = arith.constant 0 : index
    %c0_51 = arith.constant 0 : index
    %73 = vector.load %arg16[%c0_50, %c0_51] : memref<1x512xf32, #tpu.memory_space<vmem>>, vector<1x512xf32>
    %74 = vector.broadcast %73 : vector<1x512xf32> to vector<8x512xf32>
    %75 = arith.addf %72, %74 : vector<8x512xf32>
    %cst_52 = arith.constant 0.000000e+00 : f32
    %76 = vector.broadcast %cst_52 : f32 to vector<8x512xf32>
    %77 = arith.maximumf %75, %76 : vector<8x512xf32>
    %78 = arith.truncf %77 : vector<8x512xf32> to vector<8x512xbf16>
    %c0_53 = arith.constant 0 : index
    %c0_54 = arith.constant 0 : index
    %79 = vector.load %arg17[%c0_53, %c0_54] : memref<512x256xbf16, #tpu.memory_space<vmem>>, vector<512x256xbf16>
    %cst_55 = arith.constant dense<0.000000e+00> : vector<8x256xf32>
    %80 = tpu.matmul %78, %79, %cst_55 {dimension_numbers = #tpu.dot_dimension_numbers<[1], [0], [0], [1], [0, 0, 1, 1], [], []>} : vector<8x512xbf16>, vector<512x256xbf16>, vector<8x256xf32> -> vector<8x256xf32>
    %cst_56 = arith.constant 0.000000e+00 : f32
    %81 = vector.broadcast %cst_56 : f32 to vector<8x512xf32>
    %82 = arith.maximumf %6, %81 : vector<8x512xf32>
    %83 = arith.truncf %82 : vector<8x512xf32> to vector<8x512xbf16>
    %c0_57 = arith.constant 0 : index
    %c0_58 = arith.constant 0 : index
    %84 = vector.load %arg18[%c0_57, %c0_58] : memref<512x256xbf16, #tpu.memory_space<vmem>>, vector<512x256xbf16>
    %cst_59 = arith.constant dense<0.000000e+00> : vector<8x256xf32>
    %85 = tpu.matmul %83, %84, %cst_59 {dimension_numbers = #tpu.dot_dimension_numbers<[1], [0], [0], [1], [0, 0, 1, 1], [], []>} : vector<8x512xbf16>, vector<512x256xbf16>, vector<8x256xf32> -> vector<8x256xf32>
    %86 = arith.addf %80, %85 : vector<8x256xf32>
    %c0_60 = arith.constant 0 : index
    %c0_61 = arith.constant 0 : index
    %87 = vector.load %arg19[%c0_60, %c0_61] : memref<1x256xf32, #tpu.memory_space<vmem>>, vector<1x256xf32>
    %88 = vector.broadcast %87 : vector<1x256xf32> to vector<8x256xf32>
    %89 = arith.addf %86, %88 : vector<8x256xf32>
    %90 = arith.negf %89 : vector<8x256xf32>
    %91 = math.exp %90 : vector<8x256xf32>
    %cst_62 = arith.constant 1.000000e+00 : f32
    %92 = vector.broadcast %cst_62 : f32 to vector<8x256xf32>
    %93 = arith.addf %92, %91 : vector<8x256xf32>
    %94 = arith.divf %92, %93 : vector<8x256xf32>
    %cst_63 = arith.constant 9.900000e+01 : f32
    %95 = vector.broadcast %cst_63 : f32 to vector<8x256xf32>
    %96 = arith.mulf %94, %95 : vector<8x256xf32>
    %cst_64 = arith.constant 1.000000e+00 : f32
    %97 = vector.broadcast %cst_64 : f32 to vector<8x256xf32>
    %98 = arith.addf %96, %97 : vector<8x256xf32>
    %c0_65 = arith.constant 0 : index
    %c0_66 = arith.constant 0 : index
    %99 = vector.load %arg20[%c0_65, %c0_66] : memref<8x256xf32, #tpu.memory_space<vmem>>, vector<8x256xf32>
    tpu.vector_store %arg20[%c0_65, %c0_66], %98 {strides = array<i32>} : memref<8x256xf32, #tpu.memory_space<vmem>>, vector<8x256xf32>,
    return
  }
}

</mosaic_0001>

<bundles_post_ra>
// kernel: tpu_custom_call.1
= control target key start
LH: loop header
LB: loop body
LE: loop exit
PB: predicated region body
PF: predicated region fallthrough
CT: control target
= control target key end

     0   :  { %s6870_s0 = inlined_call_operand.vmem [shape: f32[8,768], index: 0, kind: input, shape index: {}]   ;;  %s6871_s1 = inlined_call_operand.hbm [shape: bf16[768,512], index: 1, kind: input, shape index: {}]   ;;  %s6872_s2 = inlined_call_operand.vmem [shape: f32[1,512], index: 2, kind: input, shape index: {}]   ;;  %s6873_s3 = inlined_call_operand.hbm [shape: bf16[512,256], index: 3, kind: input, shape index: {}]   ;;  %s6874_s4 = inlined_call_operand.vmem [shape: f32[1,256], index: 4, kind: input, shape index: {}]   ;;  %s6875_s5 = inlined_call_operand.hbm [shape: bf16[256,128], index: 5, kind: input, shape index: {}]   ;;  %s6876_s6 = inlined_call_operand.vmem [shape: f32[1,128], index: 6, kind: input, shape index: {}]   ;;  %s6877_s7 = inlined_call_operand.vmem [shape: bf16[128,64], index: 7, kind: input, shape index: {}]   ;;  %s6878_s8 = inlined_call_operand.vmem [shape: f32[1,64], index: 8, kind: input, shape index: {}]   ;;  %s6879_s9 = inlined_call_operand.vmem [shape: bf16[64,128], index: 9, kind: input, shape index: {}]   ;;  %s6880_s10 = inlined_call_operand.vmem [shape: f32[1,128], index: 10, kind: input, shape index: {}]   ;;  %s6881_s11 = inlined_call_operand.hbm [shape: bf16[128,256], index: 11, kind: input, shape index: {}]   ;;  %s6882_s12 = inlined_call_operand.hbm [shape: bf16[128,256], index: 12, kind: input, shape index: {}]   ;;  %s6883_s13 = inlined_call_operand.vmem [shape: f32[1,256], index: 13, kind: input, shape index: {}]   ;;  %s6884_s14 = inlined_call_operand.hbm [shape: bf16[256,512], index: 14, kind: input, shape index: {}]   ;;  %s6885_s15 = inlined_call_operand.hbm [shape: bf16[256,512], index: 15, kind: input, shape index: {}]   ;;  %s6886_s16 = inlined_call_operand.vmem [shape: f32[1,512], index: 16, kind: input, shape index: {}]   ;;  %s6887_s17 = inlined_call_operand.hbm [shape: bf16[512,256], index: 17, kind: input, shape index: {}]   ;;  %s6888_s18 = inlined_call_operand.hbm [shape: bf16[512,256], index: 18, kind: input, shape index: {}]   ;;  %s6889_s19 = inlined_call_operand.vmem [shape: f32[1,256], index: 19, kind: input, shape index: {}]   ;;  %s6890_s20 = inlined_call_operand.hbm [shape: f32[8,256], index: 20, kind: output, shape index: {}]  }
   0x1   :  { %6892 = sst [smem:[#allocation24_spill]] %s6870_s0 }
   0x2   :  { %6893 = sst [smem:[#allocation25_spill]] %s6871_s1 }
   0x3   :  { %6894 = sst [smem:[#allocation26_spill]] %s6872_s2 }
   0x4   :  { %6895 = sst [smem:[#allocation27_spill]] %s6873_s3 }
   0x5   :  { %6896 = sst [smem:[#allocation28_spill]] %s6874_s4 }
   0x6   :  { %25 = vsyncpa [#allocation3], 0 }
   0x7   :  { %26 = vsyncpa [#allocation6], 0 }
   0x8   :  { %27 = vsyncpa [#allocation9], 0 }
   0x9   :  { %28 = vsyncpa [#allocation12], 0 }
   0xa   :  { %29 = vsyncpa [#allocation15], 0 }
   0xb   :  { %30 = vsyncpa [#allocation4], 0  ;;  %s6484_s1 = smov [#allocation5]  }
   0xc   :  { %s52_s22 = sshll.u32 %s6484_s1, 4  ;;  %s53_s22 = int_to_ptr.vmem [resolvable:$true] %s52_s22 }
   0xd   :  { %s6280_s23 = scalar_lea.vmem %s53_s22, 8192  ;;  %p6285_p1 = scmp.lt.s32.totalorder %s53_s22, %s53_s22 }
   0xe   :  { %p6281_p0 = scmp.ne.s32.totalorder %s53_s22, %s6280_s23  ;;  %p6286_p2 = scmp.lt.s32.totalorder %s6280_s23, %s6280_s23 }
  0x10   :  { %p6287_p3 = por %p6286_p2, %p6285_p1 }
  0x12   :  { %p6288_p4 = pnand %p6287_p3, %p6281_p0 }
  0x14   :  { %6291 = shalt.err (!%p6288_p4)
}
  0x15   :  { %s6485_s24 = smov 128   ;;  %s6486_s2 = smov 8  }
  0x16   :  { %s6897_s26 = sld [smem:[#allocation27_spill]]  ;;  %s6487_s27 = smov [#allocation8]  }
  0x17   :  { %s88_s28 = sshll.u32 %s6487_s27, 4  ;;  %s89_s28 = int_to_ptr.vmem [resolvable:$true] %s88_s28 }
  0x18   :  { %s6300_s4 = scalar_lea.vmem %s89_s28, 2048  ;;  %p6305_p6 = scmp.lt.s32.totalorder %s89_s28, %s89_s28 }
  0x19   :  { %p6301_p5 = scmp.ne.s32.totalorder %s89_s28, %s6300_s4  ;;  %p6306_p7 = scmp.lt.s32.totalorder %s6300_s4, %s6300_s4 }
  0x1b   :  { %p6307_p8 = por %p6306_p7, %p6305_p6 }
  0x1c   :  { %58 = dma.hbm_to_vmem [thread:$0]  %s6897_s26, 8192, %s53_s22, [#allocation6], %s6485_s24, %s6485_s24, %s6486_s2  }
  0x1d   :  { %p6308_p9 = pnand %p6307_p8, %p6301_p5 }
  0x1f   :  { %6311 = shalt.err (!%p6308_p9)
}
  0x20   :  { %94 = dma.hbm_to_vmem [thread:$0]  %s6881_s11, 2048, %s89_s28, [#allocation9], %s6485_s24, %s6485_s24, %s6486_s2  }
  0x21   :  { %s6488_s0 = smov [#allocation11]   ;;  %s6489_s1 = smov [#allocation14]  }
  0x22   :  { %s114_s21 = sshll.u32 %s6488_s0, 4  ;;  %s140_s22 = sshll.u32 %s6489_s1, 4  ;;  %s115_s21 = int_to_ptr.vmem [resolvable:$true] %s114_s21  ;;  %s141_s22 = int_to_ptr.vmem [resolvable:$true] %s140_s22 }
  0x23   :  { %s6320_s23 = scalar_lea.vmem %s115_s21, 8192  ;;  %p6325_p11 = scmp.lt.s32.totalorder %s115_s21, %s115_s21 }
  0x24   :  { %p6321_p10 = scmp.ne.s32.totalorder %s115_s21, %s6320_s23  ;;  %p6326_p12 = scmp.lt.s32.totalorder %s6320_s23, %s6320_s23 }
  0x26   :  { %p6327_p13 = por %p6326_p12, %p6325_p11 }
  0x28   :  { %p6328_p0 = pnand %p6327_p13, %p6321_p10 }
  0x2a   :  { %6331 = shalt.err (!%p6328_p0)
}
  0x2b   :  { %s6490_s25 = smov 256   ;;  %s6491_s3 = smov 16  }
  0x2c   :  { %120 = dma.hbm_to_vmem [thread:$0]  %s6884_s14, 8192, %s115_s21, [#allocation12], %s6490_s25, %s6490_s25, %s6491_s3  }
  0x2d   :  { %s6340_s27 = scalar_lea.vmem %s141_s22, 8192  ;;  %p6345_p2 = scmp.lt.s32.totalorder %s141_s22, %s141_s22 }
  0x2e   :  { %p6341_p1 = scmp.ne.s32.totalorder %s141_s22, %s6340_s27  ;;  %p6346_p3 = scmp.lt.s32.totalorder %s6340_s27, %s6340_s27 }
  0x30   :  { %p6347_p4 = por %p6346_p3, %p6345_p2 }
  0x32   :  { %p6348_p5 = pnand %p6347_p4, %p6341_p1 }
  0x34   :  { %6351 = shalt.err (!%p6348_p5)
}
  0x35   :  { %146 = dma.hbm_to_vmem [thread:$0]  %s6887_s17, 8192, %s141_s22, [#allocation15], %s6485_s24, %s6485_s24, %s6486_s2  }
  0x36   :  { %s6492_s29 = smov [#allocation2]   ;;  %s6493_s0 = smov [#allocation7]  }
  0x37   :  { %s38_s30 = sshll.u32 %s6492_s29, 4  ;;  %s66_s1 = sshll.u32 %s6493_s0, 4  ;;  %s39_s30 = int_to_ptr.vmem [resolvable:$true] %s38_s30  ;;  %s67_s1 = int_to_ptr.vmem [resolvable:$true] %s66_s1 }
  0x38   :  { %s6360_s14 = scalar_lea.vmem %s39_s30, 24576  ;;  %p6365_p7 = scmp.lt.s32.totalorder %s39_s30, %s39_s30 }
  0x39   :  { %p6361_p6 = scmp.ne.s32.totalorder %s39_s30, %s6360_s14  ;;  %p6366_p8 = scmp.lt.s32.totalorder %s6360_s14, %s6360_s14 }
  0x3b   :  { %p6367_p9 = por %p6366_p8, %p6365_p7 }
  0x3d   :  { %p6368_p10 = pnand %p6367_p9, %p6361_p6 }
  0x3f   :  { %6371 = shalt.err (!%p6368_p10)
}
  0x40   :  { %s6898_s26 = sld [smem:[#allocation25_spill]]  ;;  %s6380_s17 = scalar_lea.vmem %s67_s1, 2048 }
  0x41   :  { %p6381_p11 = scmp.ne.s32.totalorder %s67_s1, %s6380_s17  ;;  %p6385_p12 = scmp.lt.s32.totalorder %s67_s1, %s67_s1 }
  0x42   :  { %p6386_p13 = scmp.lt.s32.totalorder %s6380_s17, %s6380_s17 }
  0x44   :  { %p6387_p0 = por %p6386_p13, %p6385_p12 }
  0x46   :  { %44 = dma.hbm_to_vmem [thread:$0]  %s6898_s26, 24576, %s39_s30, [#allocation3], %s6490_s25, %s6490_s25, %s6491_s3  }
  0x47   :  { %p6388_p1 = pnand %p6387_p0, %p6381_p11 }
  0x49   :  { %6391 = shalt.err (!%p6388_p1)
}
  0x4a   :  { %s6494_s22 = smov 64   ;;  %s6495_s11 = smov 4  }
  0x4b   :  { %72 = dma.hbm_to_vmem [thread:$0]  %s6875_s5, 2048, %s67_s1, [#allocation6], %s6494_s22, %s6494_s22, %s6495_s11  }
  0x4c   :  { %s6496_s4 = smov [#allocation10]   ;;  %s6497_s0 = smov [#allocation13]  }
  0x4d   :  { %s100_s29 = sshll.u32 %s6496_s4, 4  ;;  %s126_s14 = sshll.u32 %s6497_s0, 4  ;;  %s101_s29 = int_to_ptr.vmem [resolvable:$true] %s100_s29  ;;  %s127_s14 = int_to_ptr.vmem [resolvable:$true] %s126_s14 }
  0x4e   :  { %s6400_s30 = scalar_lea.vmem %s101_s29, 2048  ;;  %p6405_p3 = scmp.lt.s32.totalorder %s101_s29, %s101_s29 }
  0x4f   :  { %p6401_p2 = scmp.ne.s32.totalorder %s101_s29, %s6400_s30  ;;  %p6406_p4 = scmp.lt.s32.totalorder %s6400_s30, %s6400_s30 }
  0x51   :  { %p6407_p5 = por %p6406_p4, %p6405_p3 }
  0x53   :  { %p6408_p6 = pnand %p6407_p5, %p6401_p2 }
  0x55   :  { %6411 = shalt.err (!%p6408_p6)
}
  0x56   :  { %106 = dma.hbm_to_vmem [thread:$0]  %s6882_s12, 2048, %s101_s29, [#allocation9], %s6485_s24, %s6485_s24, %s6486_s2  }
  0x57   :  { %s6420_s5 = scalar_lea.vmem %s127_s14, 8192  ;;  %p6425_p8 = scmp.lt.s32.totalorder %s127_s14, %s127_s14 }
  0x58   :  { %p6421_p7 = scmp.ne.s32.totalorder %s127_s14, %s6420_s5  ;;  %p6426_p9 = scmp.lt.s32.totalorder %s6420_s5, %s6420_s5 }
  0x5a   :  { %p6427_p10 = por %p6426_p9, %p6425_p8 }
  0x5c   :  { %p6428_p11 = pnand %p6427_p10, %p6421_p7 }
  0x5e   :  { %6431 = shalt.err (!%p6428_p11)
}
  0x5f   :  { %132 = dma.hbm_to_vmem [thread:$0]  %s6885_s15, 8192, %s127_s14, [#allocation12], %s6490_s25, %s6490_s25, %s6491_s3  }
  0x60   :  { %s6498_s17 = smov [#allocation16]  }
  0x61   :  { %s152_s22 = sshll.u32 %s6498_s17, 4  ;;  %s153_s22 = int_to_ptr.vmem [resolvable:$true] %s152_s22 }
  0x62   :  { %s6440_s11 = scalar_lea.vmem %s153_s22, 8192  ;;  %p6445_p13 = scmp.lt.s32.totalorder %s153_s22, %s153_s22 }
  0x63   :  { %p6441_p12 = scmp.ne.s32.totalorder %s153_s22, %s6440_s11  ;;  %p6446_p0 = scmp.lt.s32.totalorder %s6440_s11, %s6440_s11 }
  0x65   :  { %p6447_p1 = por %p6446_p0, %p6445_p13 }
  0x67   :  { %p6448_p2 = pnand %p6447_p1, %p6441_p12 }
  0x69   :  { %6451 = shalt.err (!%p6448_p2)
}
  0x6a   :  { %158 = dma.hbm_to_vmem [thread:$0]  %s6888_s18, 8192, %s153_s22, [#allocation15], %s6485_s24, %s6485_s24, %s6486_s2  }
  0x6b   :  { %6472 = dma.done.wait [#allocation3], 24576  }
  0x6c   :  { %6473 = vsyncadd [#allocation3], 4294942720 }
  0x6d   :  { %6474 = dma.done.wait [#allocation6], 10240  }
  0x6e   :  { %6475 = vsyncadd [#allocation6], 4294957056 }
  0x6f   :  { %6476 = dma.done.wait [#allocation9], 4096  }
  0x70   :  { %6477 = vsyncadd [#allocation9], 4294963200 }
  0x71   :  { %6478 = dma.done.wait [#allocation12], 16384  }
  0x72   :  { %6479 = vsyncadd [#allocation12], 4294950912 }
  0x73   :  { %6480 = dma.done.wait [#allocation15], 16384  }
  0x74   :  { %6481 = vsyncadd [#allocation15], 4294950912  ;;  %v5420_v0 = vld [vmem:[#allocation2 + $0xe4] ss:$16 sps:$4 sm:$0xff]   ;;  %v5424_v2 = vld [vmem:[#allocation2 + $0xe0] ss:$16 sps:$4 sm:$0xff]  }
  0x75   :  { %v5422_v1 = vld [vmem:[#allocation2 + $0x2e4] ss:$16 sps:$4 sm:$0xff]   ;;  %1375 = vmatprep.subr.bf16.mxu0 %v5420_v0  ;;  %v5425_v3 = vld [vmem:[#allocation2 + $0x2e0] ss:$16 sps:$4 sm:$0xff]   ;;  %s6899_s24 = sld [smem:[#allocation24_spill]]  ;;  %vm6500_vm6 = vmmov 0  }
  0x76   :  { %1416 = vmatprep.subr.bf16.mxu1 %v5422_v1  ;;  %v5426_v4 = vld [vmem:[#allocation2 + $0xc4] ss:$16 sps:$4 sm:$0xff]   ;;  %1376 = vmatpush1.bf16.msra.mxu0 %v5424_v2  ;;  %v5430_v6 = vld [vmem:[#allocation2 + $0xc0] ss:$16 sps:$4 sm:$0xff]   ;;  %s6900_s1 = sld [smem:[#allocation26_spill]]  ;;  %vm2454_vm8 = vcmask 523264  }
  0x77   :  { %1417 = vmatpush1.bf16.msra.mxu1 %v5425_v3  ;;  %v5428_v5 = vld [vmem:[#allocation2 + $0x2c4] ss:$16 sps:$4 sm:$0xff]   ;;  %1377 = vmatprep.subr.bf16.mxu0 %v5426_v4  ;;  %v5431_v7 = vld [vmem:[#allocation2 + $0x2c0] ss:$16 sps:$4 sm:$0xff]   ;;  %s6901_s28 = sld [smem:[#allocation28_spill]] }
  0x78   :  { %1418 = vmatprep.subr.bf16.mxu1 %v5428_v5  ;;  %v5432_v8 = vld [vmem:[#allocation2 + $0xa4] ss:$16 sps:$4 sm:$0xff]   ;;  %v5436_v10 = vld [vmem:[#allocation2 + $0xa0] ss:$16 sps:$4 sm:$0xff]  }
  0x79   :  { %v5434_v9 = vld [vmem:[#allocation2 + $0x2a4] ss:$16 sps:$4 sm:$0xff]   ;;  %v5437_v11 = vld [vmem:[#allocation2 + $0x2a0] ss:$16 sps:$4 sm:$0xff]  }
  0x7a   :  { %1378 = vmatpush1.bf16.msra.mxu0 %v5430_v6  ;;  %v5438_v12 = vld [vmem:[#allocation2 + $0x84] ss:$16 sps:$4 sm:$0xff]   ;;  %v5442_v14 = vld [vmem:[#allocation2 + $0x80] ss:$16 sps:$4 sm:$0xff]  }
  0x7b   :  { %1419 = vmatpush1.bf16.msra.mxu1 %v5431_v7  ;;  %1379 = vmatprep.subr.bf16.mxu0 %v5432_v8  ;;  %v5440_v13 = vld [vmem:[#allocation2 + $0x284] ss:$16 sps:$4 sm:$0xff]   ;;  %v5443_v15 = vld [vmem:[#allocation2 + $0x280] ss:$16 sps:$4 sm:$0xff]   ;;  %v190_v46 = vld [vmem:[%s6899_s24 + $0x8] sm:$0xff] }
  0x7c   :  { %1420 = vmatprep.subr.bf16.mxu1 %v5434_v9  ;;  %v5444_v16 = vld [vmem:[#allocation2 + $0x64] ss:$16 sps:$4 sm:$0xff]   ;;  %v5448_v18 = vld [vmem:[#allocation2 + $0x60] ss:$16 sps:$4 sm:$0xff]   ;;  %v6662_v49 = vpack.c.bf16 %v190_v46, %v190_v46  ;;  %v192_v50 = vld [vmem:[%s6899_s24 + $0x18] sm:$0xff] }
  0x7d   :  { %v5446_v17 = vld [vmem:[#allocation2 + $0x264] ss:$16 sps:$4 sm:$0xff]   ;;  %v5449_v19 = vld [vmem:[#allocation2 + $0x260] ss:$16 sps:$4 sm:$0xff]   ;;  %v6667_v52 = vpack.c.bf16 %v192_v50, %v192_v50  ;;  %v5521_v7 = vld [vmem:[#allocation2 + $0xec] ss:$16 sps:$4 sm:$0xff]  }
  0x7e   :  { %1380 = vmatpush1.bf16.msra.mxu0 %v5436_v10  ;;  %v5450_v20 = vld [vmem:[#allocation2 + $0x44] ss:$16 sps:$4 sm:$0xff]   ;;  %v5454_v22 = vld [vmem:[#allocation2 + $0x40] ss:$16 sps:$4 sm:$0xff]   ;;  %1407 = vmatprep.mubr.bf16.mxu0 %v6662_v49 }
  0x7f   :  { %1421 = vmatpush1.bf16.msra.mxu1 %v5437_v11  ;;  %1381 = vmatprep.subr.bf16.mxu0 %v5438_v12  ;;  %v5452_v21 = vld [vmem:[#allocation2 + $0x244] ss:$16 sps:$4 sm:$0xff]   ;;  %v5455_v23 = vld [vmem:[#allocation2 + $0x240] ss:$16 sps:$4 sm:$0xff]   ;;  %v5519_v11 = vld [vmem:[#allocation2 + $0xe8] ss:$16 sps:$4 sm:$0xff]  }
  0x80   :  { %1422 = vmatprep.subr.bf16.mxu1 %v5440_v13  ;;  %v5456_v24 = vld [vmem:[#allocation2 + $0x24] ss:$16 sps:$4 sm:$0xff]   ;;  %v5460_v26 = vld [vmem:[#allocation2 + $0x20] ss:$16 sps:$4 sm:$0xff]   ;;  %1448 = vmatprep.mubr.bf16.mxu1 %v6667_v52  ;;  %v5527_v13 = vld [vmem:[#allocation2 + $0xcc] ss:$16 sps:$4 sm:$0xff]  }
  0x81   :  { %v5458_v25 = vld [vmem:[#allocation2 + $0x224] ss:$16 sps:$4 sm:$0xff]   ;;  %v5461_v27 = vld [vmem:[#allocation2 + $0x220] ss:$16 sps:$4 sm:$0xff]  }
  0x82   :  { %1382 = vmatpush1.bf16.msra.mxu0 %v5442_v14  ;;  %v5462_v28 = vld [vmem:[#allocation2 + $0x4] ss:$16 sps:$4 sm:$0xff]   ;;  %v5466_v30 = vld [vmem:[#allocation2] ss:$16 sps:$4 sm:$0xff]  }
  0x83   :  { %1423 = vmatpush1.bf16.msra.mxu1 %v5443_v15  ;;  %1383 = vmatprep.subr.bf16.mxu0 %v5444_v16  ;;  %v5464_v29 = vld [vmem:[#allocation2 + $0x204] ss:$16 sps:$4 sm:$0xff]   ;;  %v5467_v31 = vld [vmem:[#allocation2 + $0x200] ss:$16 sps:$4 sm:$0xff]   ;;  %v5525_v15 = vld [vmem:[#allocation2 + $0xc8] ss:$16 sps:$4 sm:$0xff]  }
  0x84   :  { %1424 = vmatprep.subr.bf16.mxu1 %v5446_v17  ;;  %v5468_v32 = vld [vmem:[#allocation2 + $0x1e4] ss:$16 sps:$4 sm:$0xff]   ;;  %v5472_v34 = vld [vmem:[#allocation2 + $0x1e0] ss:$16 sps:$4 sm:$0xff]   ;;  %v5533_v17 = vld [vmem:[#allocation2 + $0xac] ss:$16 sps:$4 sm:$0xff]  }
  0x85   :  { %v5470_v33 = vld [vmem:[#allocation2 + $0x3e4] ss:$16 sps:$4 sm:$0xff]   ;;  %v5473_v35 = vld [vmem:[#allocation2 + $0x3e0] ss:$16 sps:$4 sm:$0xff]  }
  0x86   :  { %1384 = vmatpush1.bf16.msra.mxu0 %v5448_v18  ;;  %v5474_v36 = vld [vmem:[#allocation2 + $0x1c4] ss:$16 sps:$4 sm:$0xff]   ;;  %v5478_v38 = vld [vmem:[#allocation2 + $0x1c0] ss:$16 sps:$4 sm:$0xff]  }
  0x87   :  { %1425 = vmatpush1.bf16.msra.mxu1 %v5449_v19  ;;  %1385 = vmatprep.subr.bf16.mxu0 %v5450_v20  ;;  %v5476_v37 = vld [vmem:[#allocation2 + $0x3c4] ss:$16 sps:$4 sm:$0xff]   ;;  %v5479_v39 = vld [vmem:[#allocation2 + $0x3c0] ss:$16 sps:$4 sm:$0xff]   ;;  %v5531_v19 = vld [vmem:[#allocation2 + $0xa8] ss:$16 sps:$4 sm:$0xff]  }
  0x88   :  { %1426 = vmatprep.subr.bf16.mxu1 %v5452_v21  ;;  %v5480_v40 = vld [vmem:[#allocation2 + $0x1a4] ss:$16 sps:$4 sm:$0xff]   ;;  %v5484_v42 = vld [vmem:[#allocation2 + $0x1a0] ss:$16 sps:$4 sm:$0xff]   ;;  %v5539_v21 = vld [vmem:[#allocation2 + $0x8c] ss:$16 sps:$4 sm:$0xff]  }
  0x89   :  { %v5482_v41 = vld [vmem:[#allocation2 + $0x3a4] ss:$16 sps:$4 sm:$0xff]   ;;  %v5485_v43 = vld [vmem:[#allocation2 + $0x3a0] ss:$16 sps:$4 sm:$0xff]  }
  0x8a   :  { %1386 = vmatpush1.bf16.msra.mxu0 %v5454_v22  ;;  %v5486_v44 = vld [vmem:[#allocation2 + $0x184] ss:$16 sps:$4 sm:$0xff]   ;;  %v5490_v47 = vld [vmem:[#allocation2 + $0x180] ss:$16 sps:$4 sm:$0xff]  }
  0x8b   :  { %1427 = vmatpush1.bf16.msra.mxu1 %v5455_v23  ;;  %1387 = vmatprep.subr.bf16.mxu0 %v5456_v24  ;;  %v5488_v45 = vld [vmem:[#allocation2 + $0x384] ss:$16 sps:$4 sm:$0xff]   ;;  %v5491_v48 = vld [vmem:[#allocation2 + $0x380] ss:$16 sps:$4 sm:$0xff]   ;;  %v5537_v23 = vld [vmem:[#allocation2 + $0x88] ss:$16 sps:$4 sm:$0xff]  }
  0x8c   :  { %1428 = vmatprep.subr.bf16.mxu1 %v5458_v25  ;;  %v5492_v51 = vld [vmem:[#allocation2 + $0x164] ss:$16 sps:$4 sm:$0xff]   ;;  %v5496_v54 = vld [vmem:[#allocation2 + $0x160] ss:$16 sps:$4 sm:$0xff]   ;;  %v5545_v25 = vld [vmem:[#allocation2 + $0x6c] ss:$16 sps:$4 sm:$0xff]  }
  0x8d   :  { %v5494_v53 = vld [vmem:[#allocation2 + $0x364] ss:$16 sps:$4 sm:$0xff]   ;;  %v5497_v55 = vld [vmem:[#allocation2 + $0x360] ss:$16 sps:$4 sm:$0xff]  }
  0x8e   :  { %1388 = vmatpush1.bf16.msra.mxu0 %v5460_v26  ;;  %v5498_v56 = vld [vmem:[#allocation2 + $0x144] ss:$16 sps:$4 sm:$0xff]   ;;  %v5502_v58 = vld [vmem:[#allocation2 + $0x140] ss:$16 sps:$4 sm:$0xff]  }
  0x8f   :  { %1429 = vmatpush1.bf16.msra.mxu1 %v5461_v27  ;;  %1389 = vmatprep.subr.bf16.mxu0 %v5462_v28  ;;  %v5500_v57 = vld [vmem:[#allocation2 + $0x344] ss:$16 sps:$4 sm:$0xff]   ;;  %v5503_v59 = vld [vmem:[#allocation2 + $0x340] ss:$16 sps:$4 sm:$0xff]   ;;  %v5543_v27 = vld [vmem:[#allocation2 + $0x68] ss:$16 sps:$4 sm:$0xff]  }
  0x90   :  { %1430 = vmatprep.subr.bf16.mxu1 %v5464_v29  ;;  %v5504_v60 = vld [vmem:[#allocation2 + $0x124] ss:$16 sps:$4 sm:$0xff]   ;;  %v5508_v62 = vld [vmem:[#allocation2 + $0x120] ss:$16 sps:$4 sm:$0xff]   ;;  %v5551_v29 = vld [vmem:[#allocation2 + $0x4c] ss:$16 sps:$4 sm:$0xff]  }
  0x91   :  { %v5506_v61 = vld [vmem:[#allocation2 + $0x324] ss:$16 sps:$4 sm:$0xff]   ;;  %v5509_v63 = vld [vmem:[#allocation2 + $0x320] ss:$16 sps:$4 sm:$0xff]  }
  0x92   :  { %1390 = vmatpush1.bf16.msra.mxu0 %v5466_v30  ;;  %v5510_v0 = vld [vmem:[#allocation2 + $0x104] ss:$16 sps:$4 sm:$0xff]   ;;  %v5514_v2 = vld [vmem:[#allocation2 + $0x100] ss:$16 sps:$4 sm:$0xff]  }
  0x93   :  { %1431 = vmatpush1.bf16.msra.mxu1 %v5467_v31  ;;  %1391 = vmatprep.subr.bf16.mxu0 %v5468_v32  ;;  %v5512_v1 = vld [vmem:[#allocation2 + $0x304] ss:$16 sps:$4 sm:$0xff]   ;;  %v5515_v3 = vld [vmem:[#allocation2 + $0x300] ss:$16 sps:$4 sm:$0xff]   ;;  %v5549_v31 = vld [vmem:[#allocation2 + $0x48] ss:$16 sps:$4 sm:$0xff]  }
  0x94   :  { %1432 = vmatprep.subr.bf16.mxu1 %v5470_v33  ;;  %v189_v4 = vld [vmem:[%s6899_s24] sm:$0xff]  ;;  %v191_v5 = vld [vmem:[%s6899_s24 + $0x10] sm:$0xff]  ;;  %v5557_v33 = vld [vmem:[#allocation2 + $0x2c] ss:$16 sps:$4 sm:$0xff]  }
  0x95   :  { %v5518_v6 = vld [vmem:[#allocation2 + $0x4e4] ss:$16 sps:$4 sm:$0xff]   ;;  %v6677_v8 = vpack.c.bf16 %v189_v4, %v189_v4  ;;  %v6679_v9 = vpack.c.bf16 %v191_v5, %v191_v5  ;;  %v5516_v10 = vld [vmem:[#allocation2 + $0x4e0] ss:$16 sps:$4 sm:$0xff]   ;;  %v5605_v4 = vld [vmem:[#allocation2 + $0x12c] ss:$16 sps:$4 sm:$0xff]  }
  0x96   :  { %1392 = vmatpush2.bf16.msra.mxu0 %v5472_v34  ;;  %v5524_v12 = vld [vmem:[#allocation2 + $0x4c4] ss:$16 sps:$4 sm:$0xff]   ;;  %v5522_v14 = vld [vmem:[#allocation2 + $0x4c0] ss:$16 sps:$4 sm:$0xff]   ;;  %v194_v34 = vld [vmem:[%s6899_s24 + $0x28] sm:$0xff] }
  0x97   :  { %1433 = vmatpush2.bf16.msra.mxu1 %v5473_v35  ;;  %1393 = vmatprep.subr.bf16.mxu0 %v5474_v36  ;;  %v5530_v16 = vld [vmem:[#allocation2 + $0x4a4] ss:$16 sps:$4 sm:$0xff]   ;;  %v5528_v18 = vld [vmem:[#allocation2 + $0x4a0] ss:$16 sps:$4 sm:$0xff]   ;;  %v6687_v35 = vpack.c.bf16 %v194_v34, %v194_v34  ;;  %v5647_v34 = vld [vmem:[#allocation2 + $0x44c] ss:$16 sps:$4 sm:$0xff]  }
  0x98   :  { %1434 = vmatprep.subr.bf16.mxu1 %v5476_v37  ;;  %v5536_v20 = vld [vmem:[#allocation2 + $0x484] ss:$16 sps:$4 sm:$0xff]   ;;  %v5534_v22 = vld [vmem:[#allocation2 + $0x480] ss:$16 sps:$4 sm:$0xff]   ;;  %v5555_v37 = vld [vmem:[#allocation2 + $0x28] ss:$16 sps:$4 sm:$0xff]  }
  0x99   :  { %v5542_v24 = vld [vmem:[#allocation2 + $0x464] ss:$16 sps:$4 sm:$0xff]   ;;  %v5540_v26 = vld [vmem:[#allocation2 + $0x460] ss:$16 sps:$4 sm:$0xff]  }
  0x9a   :  { %1394 = vmatpush2.bf16.msra.mxu0 %v5478_v38  ;;  %v5548_v28 = vld [vmem:[#allocation2 + $0x444] ss:$16 sps:$4 sm:$0xff]   ;;  %v5546_v30 = vld [vmem:[#allocation2 + $0x440] ss:$16 sps:$4 sm:$0xff]  }
  0x9b   :  { %1435 = vmatpush2.bf16.msra.mxu1 %v5479_v39  ;;  %1395 = vmatprep.subr.bf16.mxu0 %v5480_v40  ;;  %v5554_v32 = vld [vmem:[#allocation2 + $0x424] ss:$16 sps:$4 sm:$0xff]   ;;  %v5552_v36 = vld [vmem:[#allocation2 + $0x420] ss:$16 sps:$4 sm:$0xff]   ;;  %v5563_v39 = vld [vmem:[#allocation2 + $0xc] ss:$16 sps:$4 sm:$0xff]  }
  0x9c   :  { %1436 = vmatprep.subr.bf16.mxu1 %v5482_v41  ;;  %v5560_v38 = vld [vmem:[#allocation2 + $0x404] ss:$16 sps:$4 sm:$0xff]   ;;  %v5558_v40 = vld [vmem:[#allocation2 + $0x400] ss:$16 sps:$4 sm:$0xff]   ;;  %v5561_v41 = vld [vmem:[#allocation2 + $0x8] ss:$16 sps:$4 sm:$0xff]  }
  0x9d   :  { %v5572_v46 = vld [vmem:[#allocation2 + $0x5c4] ss:$16 sps:$4 sm:$0xff]   ;;  %v5600_v5 = vld [vmem:[#allocation2 + $0x520] ss:$16 sps:$4 sm:$0xff]  }
  0x9e   :  { %1396 = vmatpush2.bf16.msra.mxu0 %v5484_v42  ;;  %v5566_v42 = vld [vmem:[#allocation2 + $0x5e4] ss:$16 sps:$4 sm:$0xff]  }
  0x9f   :  { %1437 = vmatpush2.bf16.msra.mxu1 %v5485_v43  ;;  %1397 = vmatprep.subr.bf16.mxu0 %v5486_v44  ;;  %v5569_v43 = vld [vmem:[#allocation2 + $0x1ec] ss:$16 sps:$4 sm:$0xff]   ;;  %v5564_v44 = vld [vmem:[#allocation2 + $0x5e0] ss:$16 sps:$4 sm:$0xff]   ;;  %v5578_v50 = vld [vmem:[#allocation2 + $0x5a4] ss:$16 sps:$4 sm:$0xff]  }
  0xa0   :  { %1438 = vmatprep.subr.bf16.mxu1 %v5488_v45  ;;  %v5567_v45 = vld [vmem:[#allocation2 + $0x1e8] ss:$16 sps:$4 sm:$0xff]  }
  0xa2   :  { %1398 = vmatpush2.bf16.msra.mxu0 %v5490_v47  ;;  %v5575_v47 = vld [vmem:[#allocation2 + $0x1cc] ss:$16 sps:$4 sm:$0xff]  }
  0xa3   :  { %1439 = vmatpush2.bf16.msra.mxu1 %v5491_v48  ;;  %1399 = vmatprep.subr.bf16.mxu0 %v5492_v51  ;;  %v5570_v48 = vld [vmem:[#allocation2 + $0x5c0] ss:$16 sps:$4 sm:$0xff]   ;;  %v5581_v51 = vld [vmem:[#allocation2 + $0x1ac] ss:$16 sps:$4 sm:$0xff]  }
  0xa4   :  { %1440 = vmatprep.subr.bf16.mxu1 %v5494_v53  ;;  %v5576_v53 = vld [vmem:[#allocation2 + $0x5a0] ss:$16 sps:$4 sm:$0xff]  }
  0xa6   :  { %1400 = vmatpush2.bf16.msra.mxu0 %v5496_v54  ;;  %v5579_v54 = vld [vmem:[#allocation2 + $0x1a8] ss:$16 sps:$4 sm:$0xff]  }
  0xa7   :  { %1441 = vmatpush2.bf16.msra.mxu1 %v5497_v55  ;;  %1401 = vmatprep.subr.bf16.mxu0 %v5498_v56  ;;  %v5584_v55 = vld [vmem:[#allocation2 + $0x584] ss:$16 sps:$4 sm:$0xff]   ;;  %v5587_v56 = vld [vmem:[#allocation2 + $0x18c] ss:$16 sps:$4 sm:$0xff]  }
  0xa8   :  { %1442 = vmatprep.subr.bf16.mxu1 %v5500_v57  ;;  %v5582_v57 = vld [vmem:[#allocation2 + $0x580] ss:$16 sps:$4 sm:$0xff]  }
  0xaa   :  { %1402 = vmatpush2.bf16.msra.mxu0 %v5502_v58  ;;  %v5585_v58 = vld [vmem:[#allocation2 + $0x188] ss:$16 sps:$4 sm:$0xff]  }
  0xab   :  { %1443 = vmatpush2.bf16.msra.mxu1 %v5503_v59  ;;  %1403 = vmatprep.subr.bf16.mxu0 %v5504_v60  ;;  %v5590_v59 = vld [vmem:[#allocation2 + $0x564] ss:$16 sps:$4 sm:$0xff]   ;;  %v5593_v60 = vld [vmem:[#allocation2 + $0x16c] ss:$16 sps:$4 sm:$0xff]  }
  0xac   :  { %1444 = vmatprep.subr.bf16.mxu1 %v5506_v61  ;;  %v5588_v61 = vld [vmem:[#allocation2 + $0x560] ss:$16 sps:$4 sm:$0xff]  }
  0xae   :  { %1404 = vmatpush2.bf16.msra.mxu0 %v5508_v62  ;;  %v5591_v62 = vld [vmem:[#allocation2 + $0x168] ss:$16 sps:$4 sm:$0xff]  }
  0xaf   :  { %1445 = vmatpush2.bf16.msra.mxu1 %v5509_v63  ;;  %1405 = vmatprep.subr.bf16.mxu0 %v5510_v0  ;;  %v5596_v63 = vld [vmem:[#allocation2 + $0x544] ss:$16 sps:$4 sm:$0xff]   ;;  %v5599_v0 = vld [vmem:[#allocation2 + $0x14c] ss:$16 sps:$4 sm:$0xff]  }
  0xb0   :  { %1446 = vmatprep.subr.bf16.mxu1 %v5512_v1  ;;  %v5594_v1 = vld [vmem:[#allocation2 + $0x540] ss:$16 sps:$4 sm:$0xff]  }
  0xb2   :  { %1406 = vmatpush2.bf16.msra.mxu0 %v5514_v2  ;;  %v5597_v2 = vld [vmem:[#allocation2 + $0x148] ss:$16 sps:$4 sm:$0xff]  }
  0xb3   :  { %1447 = vmatpush2.bf16.msra.mxu1 %v5515_v3  ;;  %1457 = vmatprep.subr.bf16.mxu0 %v5518_v6  ;;  %v5602_v3 = vld [vmem:[#allocation2 + $0x524] ss:$16 sps:$4 sm:$0xff]   ;;  %v5603_v6 = vld [vmem:[#allocation2 + $0x128] ss:$16 sps:$4 sm:$0xff]  }
  0xb4   :  { %1498 = vmatprep.subr.bf16.mxu1 %v5521_v7  ;;  %v5608_v7 = vld [vmem:[#allocation2 + $0x504] ss:$16 sps:$4 sm:$0xff]  }
  0xb5   :  { %1408 = vmatmul.mubr.bf16.vlgmr.msra.gmra.mxu0 %v6677_v8 }
  0xb6   :  { %1449 = vmatmul.mubr.bf16.vlgmr.msra.gmra.mxu1 %v6679_v9  ;;  %1458 = vmatpush1.bf16.msra.mxu0 %v5516_v10  ;;  %v5611_v10 = vld [vmem:[#allocation2 + $0x10c] ss:$16 sps:$4 sm:$0xff]  }
  0xb7   :  { %1499 = vmatpush1.bf16.msra.mxu1 %v5519_v11  ;;  %1459 = vmatprep.subr.bf16.mxu0 %v5524_v12  ;;  %v5606_v11 = vld [vmem:[#allocation2 + $0x500] ss:$16 sps:$4 sm:$0xff]   ;;  %v5609_v12 = vld [vmem:[#allocation2 + $0x108] ss:$16 sps:$4 sm:$0xff]  }
  0xb8   :  { %1500 = vmatprep.subr.bf16.mxu1 %v5527_v13  ;;  %1530 = vmatprep.mubr.bf16.mxu1 %v6662_v49  ;;  %v5573_v49 = vld [vmem:[#allocation2 + $0x1c8] ss:$16 sps:$4 sm:$0xff]   ;;  %v193_v13 = vld [vmem:[%s6899_s24 + $0x20] sm:$0xff] }
  0xb9   :  { %1489 = vmatprep.mubr.bf16.mxu0 %v6687_v35 }
  0xba   :  { %1460 = vmatpush1.bf16.msra.mxu0 %v5522_v14  ;;  %v5614_v14 = vld [vmem:[#allocation2 + $0x2ec] ss:$16 sps:$4 sm:$0xff]  }
  0xbb   :  { %1501 = vmatpush1.bf16.msra.mxu1 %v5525_v15  ;;  %1461 = vmatprep.subr.bf16.mxu0 %v5530_v16  ;;  %v5617_v15 = vld [vmem:[#allocation2 + $0x4ec] ss:$16 sps:$4 sm:$0xff]   ;;  %v6693_v16 = vpack.c.bf16 %v193_v13, %v193_v13 }
  0xbc   :  { %1502 = vmatprep.subr.bf16.mxu1 %v5533_v17  ;;  %v5612_v17 = vld [vmem:[#allocation2 + $0x2e8] ss:$16 sps:$4 sm:$0xff]   ;;  %v5707_v13 = vld [vmem:[#allocation2 + $0x50c] ss:$16 sps:$4 sm:$0xff]  }
  0xbe   :  { %1462 = vmatpush1.bf16.msra.mxu0 %v5528_v18  ;;  %v5615_v18 = vld [vmem:[#allocation2 + $0x4e8] ss:$16 sps:$4 sm:$0xff]  }
  0xbf   :  { %1503 = vmatpush1.bf16.msra.mxu1 %v5531_v19  ;;  %1463 = vmatprep.subr.bf16.mxu0 %v5536_v20  ;;  %v5620_v19 = vld [vmem:[#allocation2 + $0x2cc] ss:$16 sps:$4 sm:$0xff]  }
  0xc0   :  { %1504 = vmatprep.subr.bf16.mxu1 %v5539_v21  ;;  %v5623_v20 = vld [vmem:[#allocation2 + $0x4cc] ss:$16 sps:$4 sm:$0xff]   ;;  %v5618_v21 = vld [vmem:[#allocation2 + $0x2c8] ss:$16 sps:$4 sm:$0xff]  }
  0xc2   :  { %1464 = vmatpush1.bf16.msra.mxu0 %v5534_v22  ;;  %v5621_v22 = vld [vmem:[#allocation2 + $0x4c8] ss:$16 sps:$4 sm:$0xff]  }
  0xc3   :  { %1505 = vmatpush1.bf16.msra.mxu1 %v5537_v23  ;;  %1465 = vmatprep.subr.bf16.mxu0 %v5542_v24  ;;  %v5626_v23 = vld [vmem:[#allocation2 + $0x2ac] ss:$16 sps:$4 sm:$0xff]  }
  0xc4   :  { %1506 = vmatprep.subr.bf16.mxu1 %v5545_v25  ;;  %v5629_v24 = vld [vmem:[#allocation2 + $0x4ac] ss:$16 sps:$4 sm:$0xff]   ;;  %v5624_v25 = vld [vmem:[#allocation2 + $0x2a8] ss:$16 sps:$4 sm:$0xff]  }
  0xc6   :  { %1466 = vmatpush1.bf16.msra.mxu0 %v5540_v26  ;;  %v5627_v26 = vld [vmem:[#allocation2 + $0x4a8] ss:$16 sps:$4 sm:$0xff]  }
  0xc7   :  { %1507 = vmatpush1.bf16.msra.mxu1 %v5543_v27  ;;  %1467 = vmatprep.subr.bf16.mxu0 %v5548_v28  ;;  %v5632_v27 = vld [vmem:[#allocation2 + $0x28c] ss:$16 sps:$4 sm:$0xff]  }
  0xc8   :  { %1508 = vmatprep.subr.bf16.mxu1 %v5551_v29  ;;  %v5635_v28 = vld [vmem:[#allocation2 + $0x48c] ss:$16 sps:$4 sm:$0xff]   ;;  %v5633_v29 = vld [vmem:[#allocation2 + $0x488] ss:$16 sps:$4 sm:$0xff]  }
  0xca   :  { %1468 = vmatpush1.bf16.msra.mxu0 %v5546_v30  ;;  %v5638_v30 = vld [vmem:[#allocation2 + $0x26c] ss:$16 sps:$4 sm:$0xff]  }
  0xcb   :  { %1509 = vmatpush1.bf16.msra.mxu1 %v5549_v31  ;;  %1469 = vmatprep.subr.bf16.mxu0 %v5554_v32  ;;  %v5641_v31 = vld [vmem:[#allocation2 + $0x46c] ss:$16 sps:$4 sm:$0xff]   ;;  %v5636_v32 = vld [vmem:[#allocation2 + $0x268] ss:$16 sps:$4 sm:$0xff]  }
  0xcc   :  { %1510 = vmatprep.subr.bf16.mxu1 %v5557_v33  ;;  %v5644_v33 = vld [vmem:[#allocation2 + $0x24c] ss:$16 sps:$4 sm:$0xff]  }
  0xce   :  { %1470 = vmatpush1.bf16.msra.mxu0 %v5552_v36  ;;  %v5645_v36 = vld [vmem:[#allocation2 + $0x448] ss:$16 sps:$4 sm:$0xff]  }
  0xcf   :  { %1511 = vmatpush1.bf16.msra.mxu1 %v5555_v37  ;;  %1471 = vmatprep.subr.bf16.mxu0 %v5560_v38  ;;  %v5650_v37 = vld [vmem:[#allocation2 + $0x22c] ss:$16 sps:$4 sm:$0xff]  }
  0xd0   :  { %1512 = vmatprep.subr.bf16.mxu1 %v5563_v39  ;;  %v5653_v38 = vld [vmem:[#allocation2 + $0x42c] ss:$16 sps:$4 sm:$0xff]   ;;  %v5648_v39 = vld [vmem:[#allocation2 + $0x228] ss:$16 sps:$4 sm:$0xff]  }
  0xd2   :  { %1472 = vmatpush1.bf16.msra.mxu0 %v5558_v40  ;;  %v5651_v40 = vld [vmem:[#allocation2 + $0x428] ss:$16 sps:$4 sm:$0xff]  }
  0xd3   :  { %1513 = vmatpush1.bf16.msra.mxu1 %v5561_v41  ;;  %1473 = vmatprep.subr.bf16.mxu0 %v5566_v42  ;;  %v5656_v41 = vld [vmem:[#allocation2 + $0x20c] ss:$16 sps:$4 sm:$0xff]  }
  0xd4   :  { %1514 = vmatprep.subr.bf16.mxu1 %v5569_v43  ;;  %v5659_v42 = vld [vmem:[#allocation2 + $0x40c] ss:$16 sps:$4 sm:$0xff]   ;;  %v5654_v43 = vld [vmem:[#allocation2 + $0x208] ss:$16 sps:$4 sm:$0xff]  }
  0xd6   :  { %1474 = vmatpush2.bf16.msra.mxu0 %v5564_v44  ;;  %v5657_v44 = vld [vmem:[#allocation2 + $0x408] ss:$16 sps:$4 sm:$0xff]  }
  0xd7   :  { %1515 = vmatpush2.bf16.msra.mxu1 %v5567_v45  ;;  %1475 = vmatprep.subr.bf16.mxu0 %v5572_v46  ;;  %v5662_v45 = vld [vmem:[#allocation2 + $0x3ec] ss:$16 sps:$4 sm:$0xff]  }
  0xd8   :  { %1516 = vmatprep.subr.bf16.mxu1 %v5575_v47  ;;  %v5665_v46 = vld [vmem:[#allocation2 + $0x5ec] ss:$16 sps:$4 sm:$0xff]   ;;  %v5660_v47 = vld [vmem:[#allocation2 + $0x3e8] ss:$16 sps:$4 sm:$0xff]  }
  0xda   :  { %1476 = vmatpush2.bf16.msra.mxu0 %v5570_v48  ;;  %v5663_v48 = vld [vmem:[#allocation2 + $0x5e8] ss:$16 sps:$4 sm:$0xff]  }
  0xdb   :  { %1517 = vmatpush2.bf16.msra.mxu1 %v5573_v49  ;;  %1477 = vmatprep.subr.bf16.mxu0 %v5578_v50  ;;  %v5668_v49 = vld [vmem:[#allocation2 + $0x3cc] ss:$16 sps:$4 sm:$0xff]  }
  0xdc   :  { %1518 = vmatprep.subr.bf16.mxu1 %v5581_v51  ;;  %v5671_v50 = vld [vmem:[#allocation2 + $0x5cc] ss:$16 sps:$4 sm:$0xff]   ;;  %v5666_v51 = vld [vmem:[#allocation2 + $0x3c8] ss:$16 sps:$4 sm:$0xff]  }
  0xde   :  { %1478 = vmatpush2.bf16.msra.mxu0 %v5576_v53  ;;  %v5669_v53 = vld [vmem:[#allocation2 + $0x5c8] ss:$16 sps:$4 sm:$0xff]  }
  0xdf   :  { %1519 = vmatpush2.bf16.msra.mxu1 %v5579_v54  ;;  %1479 = vmatprep.subr.bf16.mxu0 %v5584_v55  ;;  %v5674_v54 = vld [vmem:[#allocation2 + $0x3ac] ss:$16 sps:$4 sm:$0xff]  }
  0xe0   :  { %1520 = vmatprep.subr.bf16.mxu1 %v5587_v56  ;;  %v5677_v55 = vld [vmem:[#allocation2 + $0x5ac] ss:$16 sps:$4 sm:$0xff]   ;;  %v5672_v56 = vld [vmem:[#allocation2 + $0x3a8] ss:$16 sps:$4 sm:$0xff]  }
  0xe2   :  { %1480 = vmatpush2.bf16.msra.mxu0 %v5582_v57  ;;  %v5675_v57 = vld [vmem:[#allocation2 + $0x5a8] ss:$16 sps:$4 sm:$0xff]  }
  0xe3   :  { %1521 = vmatpush2.bf16.msra.mxu1 %v5585_v58  ;;  %1481 = vmatprep.subr.bf16.mxu0 %v5590_v59  ;;  %v5680_v58 = vld [vmem:[#allocation2 + $0x38c] ss:$16 sps:$4 sm:$0xff]  }
  0xe4   :  { %1522 = vmatprep.subr.bf16.mxu1 %v5593_v60  ;;  %v5683_v59 = vld [vmem:[#allocation2 + $0x58c] ss:$16 sps:$4 sm:$0xff]   ;;  %v5678_v60 = vld [vmem:[#allocation2 + $0x388] ss:$16 sps:$4 sm:$0xff]  }
  0xe6   :  { %1482 = vmatpush2.bf16.msra.mxu0 %v5588_v61  ;;  %v5681_v61 = vld [vmem:[#allocation2 + $0x588] ss:$16 sps:$4 sm:$0xff]  }
  0xe7   :  { %1523 = vmatpush2.bf16.msra.mxu1 %v5591_v62  ;;  %1483 = vmatprep.subr.bf16.mxu0 %v5596_v63  ;;  %v5686_v62 = vld [vmem:[#allocation2 + $0x36c] ss:$16 sps:$4 sm:$0xff]  }
  0xe8   :  { %1524 = vmatprep.subr.bf16.mxu1 %v5599_v0  ;;  %v5689_v63 = vld [vmem:[#allocation2 + $0x56c] ss:$16 sps:$4 sm:$0xff]   ;;  %v5684_v0 = vld [vmem:[#allocation2 + $0x368] ss:$16 sps:$4 sm:$0xff]  }
  0xea   :  { %1484 = vmatpush2.bf16.msra.mxu0 %v5594_v1  ;;  %v5687_v1 = vld [vmem:[#allocation2 + $0x568] ss:$16 sps:$4 sm:$0xff]  }
  0xeb   :  { %1525 = vmatpush2.bf16.msra.mxu1 %v5597_v2  ;;  %1485 = vmatprep.subr.bf16.mxu0 %v5602_v3  ;;  %v5692_v2 = vld [vmem:[#allocation2 + $0x34c] ss:$16 sps:$4 sm:$0xff]  }
  0xec   :  { %1526 = vmatprep.subr.bf16.mxu1 %v5605_v4  ;;  %v5695_v3 = vld [vmem:[#allocation2 + $0x54c] ss:$16 sps:$4 sm:$0xff]   ;;  %v5690_v4 = vld [vmem:[#allocation2 + $0x348] ss:$16 sps:$4 sm:$0xff]  }
  0xee   :  { %1486 = vmatpush2.bf16.msra.mxu0 %v5600_v5  ;;  %v5693_v5 = vld [vmem:[#allocation2 + $0x548] ss:$16 sps:$4 sm:$0xff]  }
  0xef   :  { %1527 = vmatpush2.bf16.msra.mxu1 %v5603_v6  ;;  %1487 = vmatprep.subr.bf16.mxu0 %v5608_v7  ;;  %v5698_v6 = vld [vmem:[#allocation2 + $0x32c] ss:$16 sps:$4 sm:$0xff]  }
  0xf0   :  { %1528 = vmatprep.subr.bf16.mxu1 %v5611_v10  ;;  %v5701_v7 = vld [vmem:[#allocation2 + $0x52c] ss:$16 sps:$4 sm:$0xff]   ;;  %v5696_v10 = vld [vmem:[#allocation2 + $0x328] ss:$16 sps:$4 sm:$0xff]  }
  0xf2   :  { %1488 = vmatpush2.bf16.msra.mxu0 %v5606_v11  ;;  %v5699_v11 = vld [vmem:[#allocation2 + $0x528] ss:$16 sps:$4 sm:$0xff]  }
  0xf3   :  { %1529 = vmatpush2.bf16.msra.mxu1 %v5609_v12  ;;  %1539 = vmatprep.subr.bf16.mxu0 %v5614_v14  ;;  %v5704_v12 = vld [vmem:[#allocation2 + $0x30c] ss:$16 sps:$4 sm:$0xff]   ;;  %v5702_v14 = vld [vmem:[#allocation2 + $0x308] ss:$16 sps:$4 sm:$0xff]  }
  0xf4   :  { %1580 = vmatprep.subr.bf16.mxu1 %v5617_v15  ;;  %v5705_v15 = vld [vmem:[#allocation2 + $0x508] ss:$16 sps:$4 sm:$0xff]  }
  0xf5   :  { %1490 = vmatmul.mubr.bf16.vlgmr.msra.gmra.mxu0 %v6693_v16 }
  0xf6   :  { %1531 = vmatmul.mubr.bf16.vlgmr.msra.gmra.mxu1 %v6677_v8  ;;  %1540 = vmatpush1.bf16.msra.mxu0 %v5612_v17  ;;  %v5630_v8 = vld [vmem:[#allocation2 + $0x288] ss:$16 sps:$4 sm:$0xff]   ;;  %v5710_v17 = vld [vmem:[#allocation5 + $0x74] ss:$8 sps:$4 sm:$0xff]  }
  0xf7   :  { %1581 = vmatpush1.bf16.msra.mxu1 %v5615_v18  ;;  %1541 = vmatprep.subr.bf16.mxu0 %v5620_v19  ;;  %v5708_v18 = vld [vmem:[#allocation5 + $0x70] ss:$8 sps:$4 sm:$0xff]   ;;  %v5713_v19 = vld [vmem:[#allocation5 + $0x64] ss:$8 sps:$4 sm:$0xff]  }
  0xf8   :  { %1582 = vmatprep.subr.bf16.mxu1 %v5623_v20  ;;  %1571 = vmatprep.mubr.bf16.mxu0 %v6667_v52  ;;  %v5639_v52 = vld [vmem:[#allocation2 + $0x468] ss:$16 sps:$4 sm:$0xff]  }
  0xf9   :  { %1612 = vmatprep.mubr.bf16.mxu1 %v6687_v35  ;;  %v5642_v35 = vld [vmem:[#allocation2 + $0x248] ss:$16 sps:$4 sm:$0xff]  }
  0xfa   :  { %1542 = vmatpush1.bf16.msra.mxu0 %v5618_v21  ;;  %v5711_v20 = vld [vmem:[#allocation5 + $0x60] ss:$8 sps:$4 sm:$0xff]   ;;  %v5716_v21 = vld [vmem:[#allocation5 + $0x54] ss:$8 sps:$4 sm:$0xff]  }
  0xfb   :  { %1583 = vmatpush1.bf16.msra.mxu1 %v5621_v22  ;;  %1543 = vmatprep.subr.bf16.mxu0 %v5626_v23  ;;  %v5714_v22 = vld [vmem:[#allocation5 + $0x50] ss:$8 sps:$4 sm:$0xff]   ;;  %v5719_v23 = vld [vmem:[#allocation5 + $0x44] ss:$8 sps:$4 sm:$0xff]  }
  0xfc   :  { %1584 = vmatprep.subr.bf16.mxu1 %v5629_v24  ;;  %v5717_v24 = vld [vmem:[#allocation5 + $0x40] ss:$8 sps:$4 sm:$0xff]  }
  0xfe   :  { %1544 = vmatpush1.bf16.msra.mxu0 %v5624_v25  ;;  %v5722_v25 = vld [vmem:[#allocation5 + $0x34] ss:$8 sps:$4 sm:$0xff]  }
  0xff   :  { %1585 = vmatpush1.bf16.msra.mxu1 %v5627_v26  ;;  %1545 = vmatprep.subr.bf16.mxu0 %v5632_v27  ;;  %v5756_v26 = vld [vmem:[#allocation5 + $0x170] ss:$8 sps:$4 sm:$0xff]   ;;  %v5758_v27 = vld [vmem:[#allocation5 + $0x174] ss:$8 sps:$4 sm:$0xff]  }
 0x100   :  { %1586 = vmatprep.subr.bf16.mxu1 %v5635_v28  ;;  %v5761_v28 = vld [vmem:[#allocation5 + $0x164] ss:$8 sps:$4 sm:$0xff]  }
 0x102   :  { %1546 = vmatpush1.bf16.msra.mxu0 %v5630_v8  ;;  %v5720_v8 = vld [vmem:[#allocation5 + $0x30] ss:$8 sps:$4 sm:$0xff]  }
 0x103   :  { %1587 = vmatpush1.bf16.msra.mxu1 %v5633_v29  ;;  %1547 = vmatprep.subr.bf16.mxu0 %v5638_v30  ;;  %v5764_v29 = vld [vmem:[#allocation5 + $0x154] ss:$8 sps:$4 sm:$0xff]   ;;  %v5723_v30 = vld [vmem:[#allocation5 + $0x20] ss:$8 sps:$4 sm:$0xff]  }
 0x104   :  { %1588 = vmatprep.subr.bf16.mxu1 %v5641_v31  ;;  %v5728_v31 = vld [vmem:[#allocation5 + $0x14] ss:$8 sps:$4 sm:$0xff]  }
 0x106   :  { %1548 = vmatpush1.bf16.msra.mxu0 %v5636_v32  ;;  %v5762_v32 = vld [vmem:[#allocation5 + $0x150] ss:$8 sps:$4 sm:$0xff]  }
 0x107   :  { %1589 = vmatpush1.bf16.msra.mxu1 %v5639_v52  ;;  %1549 = vmatprep.subr.bf16.mxu0 %v5644_v33  ;;  %v5726_v52 = vld [vmem:[#allocation5 + $0x10] ss:$8 sps:$4 sm:$0xff]   ;;  %v5767_v33 = vld [vmem:[#allocation5 + $0x144] ss:$8 sps:$4 sm:$0xff]  }
 0x108   :  { %1590 = vmatprep.subr.bf16.mxu1 %v5647_v34  ;;  %v5731_v34 = vld [vmem:[#allocation5 + $0x4] ss:$8 sps:$4 sm:$0xff]  }
 0x10a   :  { %1550 = vmatpush1.bf16.msra.mxu0 %v5642_v35  ;;  %v5765_v35 = vld [vmem:[#allocation5 + $0x140] ss:$8 sps:$4 sm:$0xff]  }
 0x10b   :  { %1591 = vmatpush1.bf16.msra.mxu1 %v5645_v36  ;;  %1551 = vmatprep.subr.bf16.mxu0 %v5650_v37  ;;  %v5770_v36 = vld [vmem:[#allocation5 + $0x134] ss:$8 sps:$4 sm:$0xff]   ;;  %v5729_v37 = vld [vmem:[#allocation5] ss:$8 sps:$4 sm:$0xff]  }
 0x10c   :  { %1592 = vmatprep.subr.bf16.mxu1 %v5653_v38  ;;  %v5734_v38 = vld [vmem:[#allocation5 + $0xf4] ss:$8 sps:$4 sm:$0xff]  }
 0x10e   :  { %1552 = vmatpush1.bf16.msra.mxu0 %v5648_v39  ;;  %v5768_v39 = vld [vmem:[#allocation5 + $0x130] ss:$8 sps:$4 sm:$0xff]  }
 0x10f   :  { %1593 = vmatpush1.bf16.msra.mxu1 %v5651_v40  ;;  %1553 = vmatprep.subr.bf16.mxu0 %v5656_v41  ;;  %v5773_v40 = vld [vmem:[#allocation5 + $0x124] ss:$8 sps:$4 sm:$0xff]   ;;  %v5732_v41 = vld [vmem:[#allocation5 + $0xf0] ss:$8 sps:$4 sm:$0xff]  }
 0x110   :  { %1594 = vmatprep.subr.bf16.mxu1 %v5659_v42  ;;  %v5737_v42 = vld [vmem:[#allocation5 + $0xe4] ss:$8 sps:$4 sm:$0xff]  }
 0x112   :  { %1554 = vmatpush1.bf16.msra.mxu0 %v5654_v43  ;;  %v5771_v43 = vld [vmem:[#allocation5 + $0x120] ss:$8 sps:$4 sm:$0xff]  }
 0x113   :  { %1595 = vmatpush1.bf16.msra.mxu1 %v5657_v44  ;;  %1555 = vmatprep.subr.bf16.mxu0 %v5662_v45  ;;  %v5776_v44 = vld [vmem:[#allocation5 + $0x114] ss:$8 sps:$4 sm:$0xff]   ;;  %v5735_v45 = vld [vmem:[#allocation5 + $0xe0] ss:$8 sps:$4 sm:$0xff]  }
 0x114   :  { %1596 = vmatprep.subr.bf16.mxu1 %v5665_v46  ;;  %v5740_v46 = vld [vmem:[#allocation5 + $0xd4] ss:$8 sps:$4 sm:$0xff]  }
 0x116   :  { %1556 = vmatpush2.bf16.msra.mxu0 %v5660_v47  ;;  %v5774_v47 = vld [vmem:[#allocation5 + $0x110] ss:$8 sps:$4 sm:$0xff]  }
 0x117   :  { %1597 = vmatpush2.bf16.msra.mxu1 %v5663_v48  ;;  %1557 = vmatprep.subr.bf16.mxu0 %v5668_v49  ;;  %v5779_v48 = vld [vmem:[#allocation5 + $0x104] ss:$8 sps:$4 sm:$0xff]   ;;  %v5738_v49 = vld [vmem:[#allocation5 + $0xd0] ss:$8 sps:$4 sm:$0xff]  }
 0x118   :  { %1598 = vmatprep.subr.bf16.mxu1 %v5671_v50  ;;  %v5743_v50 = vld [vmem:[#allocation5 + $0xc4] ss:$8 sps:$4 sm:$0xff]  }
 0x11a   :  { %1558 = vmatpush2.bf16.msra.mxu0 %v5666_v51  ;;  %v5777_v51 = vld [vmem:[#allocation5 + $0x100] ss:$8 sps:$4 sm:$0xff]  }
 0x11b   :  { %1599 = vmatpush2.bf16.msra.mxu1 %v5669_v53  ;;  %1559 = vmatprep.subr.bf16.mxu0 %v5674_v54  ;;  %v5782_v53 = vld [vmem:[#allocation5 + $0x1f4] ss:$8 sps:$4 sm:$0xff]   ;;  %v5741_v54 = vld [vmem:[#allocation5 + $0xc0] ss:$8 sps:$4 sm:$0xff]  }
 0x11c   :  { %1600 = vmatprep.subr.bf16.mxu1 %v5677_v55  ;;  %v5746_v55 = vld [vmem:[#allocation5 + $0xb4] ss:$8 sps:$4 sm:$0xff]  }
 0x11e   :  { %1560 = vmatpush2.bf16.msra.mxu0 %v5672_v56  ;;  %v5780_v56 = vld [vmem:[#allocation5 + $0x1f0] ss:$8 sps:$4 sm:$0xff]  }
 0x11f   :  { %1601 = vmatpush2.bf16.msra.mxu1 %v5675_v57  ;;  %1561 = vmatprep.subr.bf16.mxu0 %v5680_v58  ;;  %v5785_v57 = vld [vmem:[#allocation5 + $0x1e4] ss:$8 sps:$4 sm:$0xff]   ;;  %v5744_v58 = vld [vmem:[#allocation5 + $0xb0] ss:$8 sps:$4 sm:$0xff]  }
 0x120   :  { %1602 = vmatprep.subr.bf16.mxu1 %v5683_v59  ;;  %v5749_v59 = vld [vmem:[#allocation5 + $0xa4] ss:$8 sps:$4 sm:$0xff]  }
 0x122   :  { %1562 = vmatpush2.bf16.msra.mxu0 %v5678_v60  ;;  %v5783_v60 = vld [vmem:[#allocation5 + $0x1e0] ss:$8 sps:$4 sm:$0xff]  }
 0x123   :  { %1603 = vmatpush2.bf16.msra.mxu1 %v5681_v61  ;;  %1563 = vmatprep.subr.bf16.mxu0 %v5686_v62  ;;  %v5788_v61 = vld [vmem:[#allocation5 + $0x1d4] ss:$8 sps:$4 sm:$0xff]   ;;  %v5747_v62 = vld [vmem:[#allocation5 + $0xa0] ss:$8 sps:$4 sm:$0xff]  }
 0x124   :  { %1604 = vmatprep.subr.bf16.mxu1 %v5689_v63  ;;  %v5752_v63 = vld [vmem:[#allocation5 + $0x94] ss:$8 sps:$4 sm:$0xff]  }
 0x126   :  { %1564 = vmatpush2.bf16.msra.mxu0 %v5684_v0  ;;  %v5786_v0 = vld [vmem:[#allocation5 + $0x1d0] ss:$8 sps:$4 sm:$0xff]  }
 0x127   :  { %1605 = vmatpush2.bf16.msra.mxu1 %v5687_v1  ;;  %1565 = vmatprep.subr.bf16.mxu0 %v5692_v2  ;;  %v5791_v1 = vld [vmem:[#allocation5 + $0x1c4] ss:$8 sps:$4 sm:$0xff]   ;;  %v5750_v2 = vld [vmem:[#allocation5 + $0x90] ss:$8 sps:$4 sm:$0xff]  }
 0x128   :  { %1606 = vmatprep.subr.bf16.mxu1 %v5695_v3  ;;  %v5755_v3 = vld [vmem:[#allocation5 + $0x84] ss:$8 sps:$4 sm:$0xff]  }
 0x12a   :  { %1566 = vmatpush2.bf16.msra.mxu0 %v5690_v4  ;;  %v5789_v4 = vld [vmem:[#allocation5 + $0x1c0] ss:$8 sps:$4 sm:$0xff]  }
 0x12b   :  { %1607 = vmatpush2.bf16.msra.mxu1 %v5693_v5  ;;  %1567 = vmatprep.subr.bf16.mxu0 %v5698_v6  ;;  %v5794_v5 = vld [vmem:[#allocation5 + $0x1b4] ss:$8 sps:$4 sm:$0xff]   ;;  %v5753_v6 = vld [vmem:[#allocation5 + $0x80] ss:$8 sps:$4 sm:$0xff]  }
 0x12c   :  { %1608 = vmatprep.subr.bf16.mxu1 %v5701_v7  ;;  %v5792_v7 = vld [vmem:[#allocation5 + $0x1b0] ss:$8 sps:$4 sm:$0xff]  }
 0x12e   :  { %1568 = vmatpush2.bf16.msra.mxu0 %v5696_v10  ;;  %v5797_v10 = vld [vmem:[#allocation5 + $0x1a4] ss:$8 sps:$4 sm:$0xff]  }
 0x12f   :  { %1609 = vmatpush2.bf16.msra.mxu1 %v5699_v11  ;;  %1569 = vmatprep.subr.bf16.mxu0 %v5704_v12 }
 0x130   :  { %1610 = vmatprep.subr.bf16.mxu1 %v5707_v13  ;;  %v5795_v13 = vld [vmem:[#allocation5 + $0x1a0] ss:$8 sps:$4 sm:$0xff]  }
 0x132   :  { %1570 = vmatpush2.bf16.msra.mxu0 %v5702_v14 }
 0x133   :  { %1611 = vmatpush2.bf16.msra.mxu1 %v5705_v15  ;;  %2033 = vmatprep.subr.bf16.mxu0 %v5710_v17  ;;  %v5800_v17 = vld [vmem:[#allocation5 + $0x194] ss:$8 sps:$4 sm:$0xff]  }
 0x134   :  { %2074 = vmatprep.subr.bf16.mxu1 %v5758_v27 }
 0x135   :  { %1572 = vmatmul.mubr.bf16.vlgmr.msra.gmra.mxu0 %v6679_v9  ;;  %v5725_v9 = vld [vmem:[#allocation5 + $0x24] ss:$8 sps:$4 sm:$0xff]  }
 0x136   :  { %1613 = vmatmul.mubr.bf16.vlgmr.msra.gmra.mxu1 %v6693_v16  ;;  %2034 = vmatpush1.bf16.msra.mxu0 %v5708_v18  ;;  %v5759_v16 = vld [vmem:[#allocation5 + $0x160] ss:$8 sps:$4 sm:$0xff]  }
 0x137   :  { %2035 = vmatprep.subr.bf16.mxu0 %v5713_v19  ;;  %2075 = vmatpush1.bf16.msra.mxu1 %v5756_v26 }
 0x138   :  { %2076 = vmatprep.subr.bf16.mxu1 %v5761_v28  ;;  %v393_v28 = vld [vmem:[%s6900_s1] sm:$0xf] }
 0x13a   :  { %2036 = vmatpush1.bf16.msra.mxu0 %v5711_v20  ;;  %v5798_v20 = vld [vmem:[#allocation5 + $0x190] ss:$8 sps:$4 sm:$0xff]  }
 0x13b   :  { %2037 = vmatprep.subr.bf16.mxu0 %v5716_v21  ;;  %2077 = vmatpush1.bf16.msra.mxu1 %v5759_v16 }
 0x13c   :  { %2078 = vmatprep.subr.bf16.mxu1 %v5764_v29 }
 0x13e   :  { %2038 = vmatpush1.bf16.msra.mxu0 %v5714_v22 }
 0x13f   :  { %2039 = vmatprep.subr.bf16.mxu0 %v5719_v23  ;;  %2079 = vmatpush1.bf16.msra.mxu1 %v5762_v32  ;;  %v5801_v23 = vld [vmem:[#allocation5 + $0x180] ss:$8 sps:$4 sm:$0xff]  }
 0x140   :  { %2080 = vmatprep.subr.bf16.mxu1 %v5767_v33 }
 0x142   :  { %2040 = vmatpush1.bf16.msra.mxu0 %v5717_v24  ;;  %v5803_v24 = vld [vmem:[#allocation5 + $0x184] ss:$8 sps:$4 sm:$0xff]  }
 0x143   :  { %2041 = vmatprep.subr.bf16.mxu0 %v5722_v25  ;;  %2081 = vmatpush1.bf16.msra.mxu1 %v5765_v35  ;;  %v395_v25 = vlaneseq }
 0x144   :  { %2082 = vmatprep.subr.bf16.mxu1 %v5770_v36 }
 0x145   :  { %v6701_v26 = vshrl.u32 %v395_v25, 7  ;;  %v5817_v25 = vld [vmem:[#allocation7 + $0x8] sm:$0xff]  }
 0x146   :  { %2042 = vmatpush1.bf16.msra.mxu0 %v5720_v8 }
 0x147   :  { %2043 = vmatprep.subr.bf16.mxu0 %v5725_v9  ;;  %2083 = vmatpush1.bf16.msra.mxu1 %v5768_v39  ;;  %v6704_v27 = vsub.s32 0, %v6701_v26  ;;  %v6710_v8 = vsub.s32 1, %v6701_v26 }
 0x148   :  { %2084 = vmatprep.subr.bf16.mxu1 %v5773_v40 }
 0x149   :  { %v398_v9 = vrot.slane %v393_v28, %v6704_v27  ;;  %v402_v16 = vrot.slane %v393_v28, %v6710_v8 }
 0x14a   :  { %2044 = vmatpush1.bf16.msra.mxu0 %v5723_v30 }
 0x14b   :  { %2045 = vmatprep.subr.bf16.mxu0 %v5728_v31  ;;  %2085 = vmatpush1.bf16.msra.mxu1 %v5771_v43 }
 0x14c   :  { %2086 = vmatprep.subr.bf16.mxu1 %v5776_v44 }
 0x14e   :  { %2046 = vmatpush1.bf16.msra.mxu0 %v5726_v52 }
 0x14f   :  { %2047 = vmatprep.subr.bf16.mxu0 %v5731_v34  ;;  %2087 = vmatpush1.bf16.msra.mxu1 %v5774_v47 }
 0x150   :  { %2088 = vmatprep.subr.bf16.mxu1 %v5779_v48  ;;  %v405_v48 = vsub.s32 2, %v6701_v26 }
 0x152   :  { %2048 = vmatpush1.bf16.msra.mxu0 %v5729_v37 }
 0x153   :  { %2049 = vmatprep.subr.bf16.mxu0 %v5734_v38  ;;  %2089 = vmatpush1.bf16.msra.mxu1 %v5777_v51 }
 0x154   :  { %2090 = vmatprep.subr.bf16.mxu1 %v5782_v53 }
 0x156   :  { %2050 = vmatpush2.bf16.msra.mxu0 %v5732_v41 }
 0x157   :  { %2051 = vmatprep.subr.bf16.mxu0 %v5737_v42  ;;  %2091 = vmatpush2.bf16.msra.mxu1 %v5780_v56 }
 0x158   :  { %2092 = vmatprep.subr.bf16.mxu1 %v5785_v57 }
 0x15a   :  { %2052 = vmatpush2.bf16.msra.mxu0 %v5735_v45 }
 0x15b   :  { %2053 = vmatprep.subr.bf16.mxu0 %v5740_v46  ;;  %2093 = vmatpush2.bf16.msra.mxu1 %v5783_v60 }
 0x15c   :  { %2094 = vmatprep.subr.bf16.mxu1 %v5788_v61 }
 0x15e   :  { %2054 = vmatpush2.bf16.msra.mxu0 %v5738_v49  ;;  %v409_v49 = vsub.s32 3, %v6701_v26 }
 0x15f   :  { %2055 = vmatprep.subr.bf16.mxu0 %v5743_v50  ;;  %2095 = vmatpush2.bf16.msra.mxu1 %v5786_v0  ;;  %v406_v50 = vrot.slane %v393_v28, %v405_v48 }
 0x160   :  { %2096 = vmatprep.subr.bf16.mxu1 %v5791_v1  ;;  %v410_v51 = vrot.slane %v393_v28, %v409_v49  ;;  %v5818_v28 = vld [vmem:[#allocation7 + $0x40] sm:$0xff]  }
 0x162   :  { %2056 = vmatpush2.bf16.msra.mxu0 %v5741_v54 }
 0x163   :  { %2057 = vmatprep.subr.bf16.mxu0 %v5746_v55  ;;  %2097 = vmatpush2.bf16.msra.mxu1 %v5789_v4 }
 0x164   :  { %2098 = vmatprep.subr.bf16.mxu1 %v5794_v5 }
 0x166   :  { %2058 = vmatpush2.bf16.msra.mxu0 %v5744_v58 }
 0x167   :  { %2059 = vmatprep.subr.bf16.mxu0 %v5749_v59  ;;  %2099 = vmatpush2.bf16.msra.mxu1 %v5792_v7 }
 0x168   :  { %2100 = vmatprep.subr.bf16.mxu1 %v5797_v10 }
 0x16a   :  { %2060 = vmatpush2.bf16.msra.mxu0 %v5747_v62 }
 0x16b   :  { %2061 = vmatprep.subr.bf16.mxu0 %v5752_v63  ;;  %2101 = vmatpush2.bf16.msra.mxu1 %v5795_v13  ;;  %v5806_v13 = vld [vmem:[#allocation7 + $0x70] sm:$0xff]  }
 0x16c   :  { %2102 = vmatprep.subr.bf16.mxu1 %v5800_v17  ;;  %v5809_v17 = vld [vmem:[#allocation7 + $0x28] sm:$0xff]  }
 0x16e   :  { %2062 = vmatpush2.bf16.msra.mxu0 %v5750_v2 }
 0x16f   :  { %2063 = vmatprep.subr.bf16.mxu0 %v5755_v3  ;;  %2103 = vmatpush2.bf16.msra.mxu1 %v5798_v20  ;;  %v5812_v20 = vld [vmem:[#allocation7 + $0x58] sm:$0xff]  }
 0x170   :  { %2104 = vmatprep.subr.bf16.mxu1 %v5803_v24  ;;  %v5816_v24 = vld [vmem:[#allocation7 + $0x48] sm:$0xff]  }
 0x172   :  { %2064 = vmatpush2.bf16.msra.mxu0 %v5753_v6 }
 0x173   :  { %2105 = vmatpush2.bf16.msra.mxu1 %v5801_v23  ;;  %v5815_v23 = vld [vmem:[#allocation7 + $0x10] sm:$0xff]  }
 0x175   :  { %v1409_v11 = vpop.f32.mrf.mxu0 }
 0x176   :  { %v1450_v12 = vpop.f32.mrf.mxu1  ;;  %v1410_v29 = vadd.f32 %v1409_v11, %v398_v9  ;;  %v5804_v11 = vld [vmem:[#allocation7 + $0x78] sm:$0xff]   ;;  %v5819_v9 = vld [vmem:[#allocation7] sm:$0xff]  }
 0x177   :  { %v1411_v14 = vpop.f32.mrf.mxu0  ;;  %5333 = vmatprep.subr.bf16.mxu0 %v5804_v11 }
 0x178   :  { %v1452_v15 = vpop.f32.mrf.mxu1  ;;  %v1412_v30 = vadd.f32 %v1411_v14, %v402_v16  ;;  %v1451_v31 = vadd.f32 %v1450_v12, %v1410_v29  ;;  %v5805_v12 = vld [vmem:[#allocation7 + $0x38] sm:$0xff]   ;;  %v5807_v14 = vld [vmem:[#allocation7 + $0x30] sm:$0xff]   ;;  %v6499_v29 = vmov 0.0  }
 0x179   :  { %v1413_v18 = vpop.f32.mrf.mxu0  ;;  %v5820_v16 = vld [vmem:[%s6877_s7 + $0x38] sm:$0xff]   ;;  %5369 = vmatprep.subr.bf16.mxu1 %v6499_v29 }
 0x17a   :  { %v1454_v19 = vpop.f32.mrf.mxu1  ;;  %v1453_v33 = vadd.f32 %v1452_v15, %v1412_v30  ;;  %v5808_v15 = vld [vmem:[#allocation7 + $0x68] sm:$0xff]   ;;  %v5810_v18 = vld [vmem:[#allocation7 + $0x60] sm:$0xff]   ;;  %v5821_v30 = vld [vmem:[%s6877_s7 + $0x30] sm:$0xff]  }
 0x17b   :  { %v1414_v21 = vpop.f32.mrf.mxu0  ;;  %v5811_v19 = vld [vmem:[#allocation7 + $0x20] sm:$0xff]  }
 0x17c   :  { %v1455_v22 = vpop.f32.mrf.mxu1  ;;  %v5813_v21 = vld [vmem:[#allocation7 + $0x18] sm:$0xff]  }
 0x17d   :  { %v5814_v22 = vld [vmem:[#allocation7 + $0x50] sm:$0xff]  }
 0x1b5   :  { %v1491_v32 = vpop.f32.mrf.mxu0 }
 0x1b6   :  { %v1532_v52 = vpop.f32.mrf.mxu1  ;;  %v6714_v34 = vadd.f32 %v1491_v32, %v1451_v31  ;;  %v5822_v31 = vld [vmem:[%s6877_s7 + $0x28] sm:$0xff]   ;;  %v5823_v32 = vld [vmem:[%s6877_s7 + $0x20] sm:$0xff]  }
 0x1b7   :  { %v1493_v35 = vpop.f32.mrf.mxu0  ;;  %v1533_v53 = vadd.f32 %v1532_v52, %v406_v50  ;;  %v5824_v52 = vld [vmem:[%s6877_s7 + $0x18] sm:$0xff]  }
 0x1b8   :  { %v1534_v36 = vpop.f32.mrf.mxu1  ;;  %vm1621_vm0 = vcmp.ge.f32.partialorder %v6714_v34, 0.0  ;;  %v1625_v37 = vmul.f32 0.2, %v6714_v34  ;;  %v6718_v38 = vadd.f32 %v1493_v35, %v1453_v33 }
 0x1b9   :  { %v1495_v39 = vpop.f32.mrf.mxu0  ;;  %v1535_v56 = vadd.f32 %v1534_v36, %v410_v51 }
 0x1ba   :  { %v1536_v40 = vpop.f32.mrf.mxu1  ;;  %v1626_v41 = vmul.f32 0.2, %v6718_v38  ;;  %vm1622_vm1 = vcmp.ge.f32.partialorder %v6718_v38, 0.0  ;;  %v1629_v44 = vsel %vm1621_vm0, %v6714_v34, %v1625_v37  ;;  %v1701_v39 = vld [vmem:[%s6901_s28] sm:$0x3] }
 0x1bb   :  { %v1496_v42 = vpop.f32.mrf.mxu0  ;;  %v1633_v47 = vpack.c.bf16 %v1629_v44, %v1629_v44  ;;  %v1706_v40 = vrot.slane %v1701_v39, %v6704_v27 }
 0x1bc   :  { %v1537_v43 = vpop.f32.mrf.mxu1  ;;  %v1630_v45 = vsel %vm1622_vm1, %v6718_v38, %v1626_v41  ;;  %v1710_v41 = vrot.slane %v1701_v39, %v6710_v8  ;;  %v5857_v39 = vld [vmem:[#allocation13 + $0xc4] ss:$16 sps:$4 sm:$0xff]  }
 0x1bd   :  { %v1634_v46 = vpack.c.bf16 %v1630_v45, %v1630_v45 }
 0x1bf   :  { %2065 = vmatprep.mubr.bf16.mxu0 %v1634_v46 }
 0x1c0   :  { %2066 = vmatmul.mubr.bf16.vlgmr.msra.gmra.mxu0 %v1633_v47 }
 0x1c1   :  { %5334 = vmatpush3.bf16.msra.mxu0 %v5805_v12 }
 0x1c2   :  { %5335 = vmatprep.subr.bf16.mxu0 %v5806_v13  ;;  %v5828_v13 = vld [vmem:[#allocation10 + $0x70] ss:$8 sps:$4 sm:$0xff]  }
 0x1c5   :  { %5336 = vmatpush3.bf16.msra.mxu0 %v5807_v14 }
 0x1c6   :  { %5337 = vmatprep.subr.bf16.mxu0 %v5808_v15 }
 0x1c9   :  { %5338 = vmatpush3.bf16.msra.mxu0 %v5809_v17  ;;  %v5833_v17 = vld [vmem:[#allocation10 + $0x64] ss:$8 sps:$4 sm:$0xff]  }
 0x1ca   :  { %5339 = vmatprep.subr.bf16.mxu0 %v5810_v18  ;;  %v5831_v18 = vld [vmem:[#allocation10 + $0x60] ss:$8 sps:$4 sm:$0xff]  }
 0x1cd   :  { %5340 = vmatpush3.bf16.msra.mxu0 %v5811_v19  ;;  %v6501_v19 = vmov 0  }
 0x1ce   :  { %5341 = vmatprep.subr.bf16.mxu0 %v5812_v20  ;;  %v5836_v20 = vld [vmem:[#allocation10 + $0x54] ss:$8 sps:$4 sm:$0xff]  }
 0x1d1   :  { %5342 = vmatpush3.bf16.msra.mxu0 %v5813_v21  ;;  %v5834_v21 = vld [vmem:[#allocation10 + $0x50] ss:$8 sps:$4 sm:$0xff]  }
 0x1d2   :  { %5343 = vmatprep.subr.bf16.mxu0 %v5814_v22  ;;  %v5839_v22 = vld [vmem:[#allocation10 + $0x44] ss:$8 sps:$4 sm:$0xff]  }
 0x1d5   :  { %5344 = vmatpush3.bf16.msra.mxu0 %v5815_v23  ;;  %v5837_v23 = vld [vmem:[#allocation10 + $0x40] ss:$8 sps:$4 sm:$0xff]  }
 0x1d6   :  { %5345 = vmatprep.subr.bf16.mxu0 %v5816_v24  ;;  %v5842_v24 = vld [vmem:[#allocation10 + $0x34] ss:$8 sps:$4 sm:$0xff]  }
 0x1d9   :  { %5346 = vmatpush3.bf16.msra.mxu0 %v5817_v25  ;;  %v5840_v25 = vld [vmem:[#allocation10 + $0x30] ss:$8 sps:$4 sm:$0xff]  }
 0x1da   :  { %5347 = vmatprep.subr.bf16.mxu0 %v5818_v28  ;;  %v5845_v28 = vld [vmem:[#allocation10 + $0x24] ss:$8 sps:$4 sm:$0xff]  }
 0x1dd   :  { %5348 = vmatpush3.bf16.msra.mxu0 %v5819_v9  ;;  %v5843_v9 = vld [vmem:[#allocation10 + $0x20] ss:$8 sps:$4 sm:$0xff]  }
 0x1de   :  { %5389 = vmatprep.subr.bf16.mxu0 %v6499_v29 }
 0x1f5   :  { %v1573_v54 = vpop.f32.mrf.mxu0 }
 0x1f6   :  { %v1614_v55 = vpop.f32.mrf.mxu1  ;;  %v1574_v57 = vadd.f32 %v1573_v54, %v1533_v53 }
 0x1f7   :  { %v1575_v58 = vpop.f32.mrf.mxu0 }
 0x1f8   :  { %v1616_v59 = vpop.f32.mrf.mxu1  ;;  %v6730_v60 = vadd.f32 %v1614_v55, %v1574_v57  ;;  %v1576_v61 = vadd.f32 %v1575_v58, %v1535_v56 }
 0x1f9   :  { %v1577_v62 = vpop.f32.mrf.mxu0 }
 0x1fa   :  { %v1618_v63 = vpop.f32.mrf.mxu1  ;;  %vm1623_vm2 = vcmp.ge.f32.partialorder %v6730_v60, 0.0  ;;  %v1627_v0 = vmul.f32 0.2, %v6730_v60  ;;  %v6734_v1 = vadd.f32 %v1616_v59, %v1576_v61  ;;  %v5825_v59 = vld [vmem:[%s6877_s7 + $0x10] sm:$0xff]   ;;  %v5826_v61 = vld [vmem:[%s6877_s7 + $0x8] sm:$0xff]   ;;  %v5827_v62 = vld [vmem:[%s6877_s7] sm:$0xff]  }
 0x1fb   :  { %v1578_v2 = vpop.f32.mrf.mxu0  ;;  %v5830_v63 = vld [vmem:[#allocation10 + $0x74] ss:$8 sps:$4 sm:$0xff]  }
 0x1fc   :  { %v1619_v3 = vpop.f32.mrf.mxu1  ;;  %v1628_v4 = vmul.f32 0.2, %v6734_v1  ;;  %vm1624_vm3 = vcmp.ge.f32.partialorder %v6734_v1, 0.0  ;;  %v1631_v5 = vsel %vm1623_vm2, %v6730_v60, %v1627_v0  ;;  %v5900_v0 = vld [vmem:[%s6879_s9 + $0x18] sm:$0xff]   ;;  %v5901_v2 = vld [vmem:[%s6879_s9 + $0x10] sm:$0xff]  }
 0x1fd   :  { %v1635_v10 = vpack.c.bf16 %v1631_v5, %v1631_v5 }
 0x1fe   :  { %v1632_v6 = vsel %vm1624_vm3, %v6734_v1, %v1628_v4  ;;  %v5011_v4 = vld [vmem:[%s6876_s6] ss:$0 sm:$0xff] }
 0x1ff   :  { %v1636_v7 = vpack.c.bf16 %v1632_v6, %v1632_v6 }
 0x201   :  { %2106 = vmatprep.mubr.bf16.mxu1 %v1636_v7 }
 0x202   :  { %2107 = vmatmul.mubr.bf16.vlgmr.msra.gmra.mxu1 %v1635_v10 }
 0x203   :  { %5370 = vmatpush3.bf16.msra.mxu1 %v5820_v16  ;;  %5385 = vmatprep.mubr.msk.bf16.mxu1 %vm6500_vm6, %v6499_v29  ;;  %v5848_v16 = vld [vmem:[#allocation10 + $0x14] ss:$8 sps:$4 sm:$0xff]  }
 0x204   :  { %5371 = vmatprep.subr.bf16.mxu1 %v6499_v29 }
 0x207   :  { %5372 = vmatpush3.bf16.msra.mxu1 %v5821_v30  ;;  %v5846_v30 = vld [vmem:[#allocation10 + $0x10] ss:$8 sps:$4 sm:$0xff]  }
 0x208   :  { %5373 = vmatprep.subr.bf16.mxu1 %v6499_v29 }
 0x20b   :  { %5374 = vmatpush3.bf16.msra.mxu1 %v5822_v31  ;;  %v5851_v31 = vld [vmem:[#allocation10 + $0x4] ss:$8 sps:$4 sm:$0xff]  }
 0x20c   :  { %5375 = vmatprep.subr.bf16.mxu1 %v6499_v29 }
 0x20f   :  { %5376 = vmatpush3.bf16.msra.mxu1 %v5823_v32  ;;  %v5849_v32 = vld [vmem:[#allocation10] ss:$8 sps:$4 sm:$0xff]  }
 0x210   :  { %5377 = vmatprep.subr.bf16.mxu1 %v6499_v29 }
 0x213   :  { %5378 = vmatpush3.bf16.msra.mxu1 %v5824_v52 }
 0x214   :  { %5379 = vmatprep.subr.bf16.mxu1 %v6499_v29 }
 0x217   :  { %5380 = vmatpush3.bf16.msra.mxu1 %v5825_v59  ;;  %v5876_v59 = vld [vmem:[#allocation13 + $0x1e0] ss:$16 sps:$4 sm:$0xff]  }
 0x218   :  { %5381 = vmatprep.subr.bf16.mxu1 %v6499_v29 }
 0x21b   :  { %5382 = vmatpush3.bf16.msra.mxu1 %v5826_v61  ;;  %v5881_v61 = vld [vmem:[#allocation13 + $0x1c4] ss:$16 sps:$4 sm:$0xff]  }
 0x21c   :  { %5383 = vmatprep.subr.bf16.mxu1 %v6499_v29 }
 0x21f   :  { %5384 = vmatpush3.bf16.msra.mxu1 %v5827_v62  ;;  %v5902_v62 = vld [vmem:[%s6879_s9 + $0x8] sm:$0xff]  }
 0x220   :  { %2614 = vmatprep.subr.bf16.mxu1 %v5830_v63  ;;  %v5879_v63 = vld [vmem:[#allocation13 + $0x1c0] ss:$16 sps:$4 sm:$0xff]  }
 0x280   :  { %v2067_v33 = vpop.f32.mrf.mxu0 }
 0x281   :  { %v2068_v42 = vadd.f32 %v2067_v33, %v1706_v40  ;;  %v5854_v33 = vld [vmem:[#allocation13 + $0xe4] ss:$16 sps:$4 sm:$0xff]  }
 0x282   :  { %v2069_v35 = vpop.f32.mrf.mxu0 }
 0x283   :  { %v2070_v44 = vadd.f32 %v2069_v35, %v1710_v41  ;;  %v5855_v41 = vld [vmem:[#allocation13 + $0xc0] ss:$16 sps:$4 sm:$0xff]  }
 0x284   :  { %v2071_v36 = vpop.f32.mrf.mxu0 }
 0x285   :  { %v5852_v36 = vld [vmem:[#allocation13 + $0xe0] ss:$16 sps:$4 sm:$0xff]  }
 0x286   :  { %v2072_v37 = vpop.f32.mrf.mxu0 }
 0x2c2   :  { %v2108_v43 = vpop.f32.mrf.mxu1 }
 0x2c3   :  { %v6767_v45 = vadd.f32 %v2108_v43, %v2068_v42  ;;  %v5860_v42 = vld [vmem:[#allocation13 + $0xa4] ss:$16 sps:$4 sm:$0xff]   ;;  %v5858_v43 = vld [vmem:[#allocation13 + $0xa0] ss:$16 sps:$4 sm:$0xff]  }
 0x2c4   :  { %v2110_v46 = vpop.f32.mrf.mxu1 }
 0x2c5   :  { %vm2115_vm4 = vcmp.ge.f32.partialorder %v6767_v45, 0.0  ;;  %v2117_v47 = vmul.f32 0.2, %v6767_v45  ;;  %v6771_v50 = vadd.f32 %v2110_v46, %v2070_v44  ;;  %v5863_v44 = vld [vmem:[#allocation13 + $0x84] ss:$16 sps:$4 sm:$0xff]  }
 0x2c6   :  { %v2112_v51 = vpop.f32.mrf.mxu1  ;;  %v5861_v46 = vld [vmem:[#allocation13 + $0x80] ss:$16 sps:$4 sm:$0xff]  }
 0x2c7   :  { %v2118_v53 = vmul.f32 0.2, %v6771_v50  ;;  %vm2116_vm5 = vcmp.ge.f32.partialorder %v6771_v50, 0.0  ;;  %v2119_v55 = vsel %vm2115_vm4, %v6767_v45, %v2117_v47  ;;  %v2859_v35 = vmax.f32 %v6771_v50, 0.0  ;;  %v5866_v47 = vld [vmem:[#allocation13 + $0x64] ss:$16 sps:$4 sm:$0xff]  }
 0x2c8   :  { %v2113_v54 = vpop.f32.mrf.mxu1  ;;  %v2121_v58 = vpack.c.bf16 %v2119_v55, %v2119_v55  ;;  %v5869_v51 = vld [vmem:[#allocation13 + $0x44] ss:$16 sps:$4 sm:$0xff]   ;;  %v5870_v55 = vld [vmem:[#allocation13 + $0x20] ss:$16 sps:$4 sm:$0xff]  }
 0x2c9   :  { %v2120_v56 = vsel %vm2116_vm5, %v6771_v50, %v2118_v53  ;;  %v6803_v40 = vpack.c.bf16 %v2859_v35, %v2859_v35  ;;  %v5864_v50 = vld [vmem:[#allocation13 + $0x60] ss:$16 sps:$4 sm:$0xff]   ;;  %v5872_v54 = vld [vmem:[#allocation13 + $0x24] ss:$16 sps:$4 sm:$0xff]  }
 0x2ca   :  { %v2122_v57 = vpack.c.bf16 %v2120_v56, %v2120_v56  ;;  %v5867_v53 = vld [vmem:[#allocation13 + $0x40] ss:$16 sps:$4 sm:$0xff]   ;;  %v5875_v56 = vld [vmem:[#allocation13 + $0x4] ss:$16 sps:$4 sm:$0xff]  }
 0x2cb   :  { %v5918_v35 = vld [vmem:[#allocation8 + $0x34] ss:$8 sps:$4 sm:$0xff]  }
 0x2cc   :  { %2290 = vmatprep.mubr.bf16.mxu0 %v2122_v57  ;;  %v5873_v57 = vld [vmem:[#allocation13] ss:$16 sps:$4 sm:$0xff]  }
 0x2cd   :  { %2291 = vmatmul.mubr.bf16.vlgmr.msra.gmra.mxu0 %v2121_v58  ;;  %v5878_v58 = vld [vmem:[#allocation13 + $0x1e4] ss:$16 sps:$4 sm:$0xff]  }
 0x2ce   :  { %5397 = vmatprep.mubr.msk.bf16.mxu0 %vm6500_vm6, %v6499_v29  ;;  %5390 = vmatpush3.bf16.msra.mxu0 %v5900_v0  ;;  %v5884_v0 = vld [vmem:[#allocation13 + $0x1a4] ss:$16 sps:$4 sm:$0xff]  }
 0x2cf   :  { %5391 = vmatprep.subr.bf16.mxu0 %v6499_v29 }
 0x2d2   :  { %5392 = vmatpush3.bf16.msra.mxu0 %v5901_v2  ;;  %v5903_v2 = vld [vmem:[%s6879_s9] sm:$0xff]  }
 0x2d3   :  { %5393 = vmatprep.subr.bf16.mxu0 %v6499_v29 }
 0x2d6   :  { %5394 = vmatpush3.bf16.msra.mxu0 %v5902_v62  ;;  %v5990_v62 = vld [vmem:[#allocation11 + $0xa4] ss:$16 sps:$4 sm:$0xff]  }
 0x2d7   :  { %5395 = vmatprep.subr.bf16.mxu0 %v6499_v29  ;;  %v5896_v29 = vld [vmem:[#allocation13 + $0x124] ss:$16 sps:$4 sm:$0xff]  }
 0x2da   :  { %5396 = vmatpush3.bf16.msra.mxu0 %v5903_v2  ;;  %v5994_v2 = vld [vmem:[#allocation11 + $0x80] ss:$16 sps:$4 sm:$0xff]  }
 0x38d   :  { %v5349_v3 = vpop.f32.mrf.mxu0 }
 0x38f   :  { %v5350_v5 = vpop.f32.mrf.mxu0 }
 0x390   :  { %v5351_v6 = vadd.f32 %v5350_v5, %v5349_v3  ;;  %v5882_v3 = vld [vmem:[#allocation13 + $0x1a0] ss:$16 sps:$4 sm:$0xff]  }
 0x391   :  { %v5352_v7 = vpop.f32.mrf.mxu0  ;;  %v5885_v5 = vld [vmem:[#allocation13 + $0x180] ss:$16 sps:$4 sm:$0xff]  }
 0x392   :  { %v2293_v10 = vadd.f32 %v5351_v6, %v5011_v4  ;;  %v5887_v4 = vld [vmem:[#allocation13 + $0x184] ss:$16 sps:$4 sm:$0xff]   ;;  %v5888_v7 = vld [vmem:[#allocation13 + $0x160] ss:$16 sps:$4 sm:$0xff]  }
 0x393   :  { %v5353_v11 = vpop.f32.mrf.mxu0  ;;  %v5890_v6 = vld [vmem:[#allocation13 + $0x164] ss:$16 sps:$4 sm:$0xff]  }
 0x394   :  { %v2299_v12 = vmul.f32 0.2, %v2293_v10  ;;  %vm2298_vm7 = vcmp.ge.f32.partialorder %v2293_v10, 0.0  ;;  %v2516_v52 = vmax.f32 %v2293_v10, 0.0  ;;  %v5891_v11 = vld [vmem:[#allocation13 + $0x140] ss:$16 sps:$4 sm:$0xff]  }
 0x396   :  { %v2300_v14 = vsel %vm2298_vm7, %v2293_v10, %v2299_v12  ;;  %v2517_v37 = vpack.c.bf16 %v2516_v52, %v2516_v52  ;;  %v5893_v10 = vld [vmem:[#allocation13 + $0x144] ss:$16 sps:$4 sm:$0xff]   ;;  %v5894_v12 = vld [vmem:[#allocation13 + $0x120] ss:$16 sps:$4 sm:$0xff]  }
 0x397   :  { %v2301_v15 = vpack.c.bf16 %v2300_v14, %v2300_v14  ;;  %v5897_v14 = vld [vmem:[#allocation13 + $0x100] ss:$16 sps:$4 sm:$0xff]   ;;  %v5915_v52 = vld [vmem:[#allocation8 + $0x44] ss:$8 sps:$4 sm:$0xff]  }
 0x399   :  { %5386 = vmatmul.mubr.bf16.vlgmr.msra.gmra.mxu1 %v2301_v15  ;;  %v2858_v15 = vmax.f32 %v6767_v45, 0.0  ;;  %v5909_v45 = vld [vmem:[#allocation8 + $0x64] ss:$8 sps:$4 sm:$0xff]  }
 0x39a   :  { %2615 = vmatpush1.bf16.msra.mxu1 %v5828_v13  ;;  %2646 = vmatprep.mubr.bf16.mxu1 %v6501_v19  ;;  %v5899_v13 = vld [vmem:[#allocation13 + $0x104] ss:$16 sps:$4 sm:$0xff]  }
 0x39b   :  { %2616 = vmatprep.subr.bf16.mxu1 %v5833_v17  ;;  %v6814_v17 = vpack.c.bf16 %v2858_v15, %v2858_v15  ;;  %v6030_v15 = vld [vmem:[#allocation11 + $0x1c0] ss:$16 sps:$4 sm:$0xff]  }
 0x39e   :  { %2617 = vmatpush1.bf16.msra.mxu1 %v5831_v18  ;;  %v5906_v18 = vld [vmem:[#allocation8 + $0x74] ss:$8 sps:$4 sm:$0xff]  }
 0x39f   :  { %2618 = vmatprep.subr.bf16.mxu1 %v5836_v20  ;;  %2735 = vmatprep.subr.bf16.mxu0 %v5906_v18  ;;  %v5028_v20 = vld [vmem:[%s6878_s8] ss:$0 sm:$0xff]  ;;  %v6038_v18 = vld [vmem:[#allocation11 + $0x1a4] ss:$16 sps:$4 sm:$0xff]  }
 0x3a2   :  { %2619 = vmatpush1.bf16.msra.mxu1 %v5834_v21 }
 0x3a3   :  { %2620 = vmatprep.subr.bf16.mxu1 %v5839_v22 }
 0x3a6   :  { %2621 = vmatpush1.bf16.msra.mxu1 %v5837_v23 }
 0x3a7   :  { %2622 = vmatprep.subr.bf16.mxu1 %v5842_v24 }
 0x3aa   :  { %2623 = vmatpush1.bf16.msra.mxu1 %v5840_v25 }
 0x3ab   :  { %2624 = vmatprep.subr.bf16.mxu1 %v5845_v28  ;;  %v5904_v28 = vld [vmem:[#allocation8 + $0x70] ss:$8 sps:$4 sm:$0xff]  }
 0x3ae   :  { %2625 = vmatpush1.bf16.msra.mxu1 %v5843_v9 }
 0x3af   :  { %2626 = vmatprep.subr.bf16.mxu1 %v5848_v16 }
 0x3b2   :  { %2627 = vmatpush1.bf16.msra.mxu1 %v5846_v30  ;;  %v5907_v30 = vld [vmem:[#allocation8 + $0x60] ss:$8 sps:$4 sm:$0xff]  }
 0x3b3   :  { %2628 = vmatprep.subr.bf16.mxu1 %v5851_v31  ;;  %v5912_v31 = vld [vmem:[#allocation8 + $0x54] ss:$8 sps:$4 sm:$0xff]  }
 0x3b6   :  { %2629 = vmatpush1.bf16.msra.mxu1 %v5849_v32  ;;  %v5910_v32 = vld [vmem:[#allocation8 + $0x50] ss:$8 sps:$4 sm:$0xff]  }
 0x3b7   :  { %3246 = vmatprep.subr.bf16.mxu1 %v5854_v33  ;;  %v5913_v33 = vld [vmem:[#allocation8 + $0x40] ss:$8 sps:$4 sm:$0xff]  }
 0x3b9   :  { %2647 = vmatmul.mubr.bf16.vlgmr.msra.gmra.mxu1 %v2517_v37  ;;  %v5921_v37 = vld [vmem:[#allocation8 + $0x24] ss:$8 sps:$4 sm:$0xff]  }
 0x3ba   :  { %3247 = vmatpush1.bf16.msra.mxu1 %v5852_v36  ;;  %3278 = vmatprep.mubr.bf16.mxu1 %v6803_v40  ;;  %v5916_v36 = vld [vmem:[#allocation8 + $0x30] ss:$8 sps:$4 sm:$0xff]  }
 0x3bb   :  { %3248 = vmatprep.subr.bf16.mxu1 %v5857_v39  ;;  %v5919_v39 = vld [vmem:[#allocation8 + $0x20] ss:$8 sps:$4 sm:$0xff]  }
 0x3be   :  { %3249 = vmatpush1.bf16.msra.mxu1 %v5855_v41  ;;  %v5924_v41 = vld [vmem:[#allocation8 + $0x14] ss:$8 sps:$4 sm:$0xff]  }
 0x3bf   :  { %3250 = vmatprep.subr.bf16.mxu1 %v5860_v42 }
 0x3c2   :  { %3251 = vmatpush1.bf16.msra.mxu1 %v5858_v43 }
 0x3c3   :  { %3252 = vmatprep.subr.bf16.mxu1 %v5863_v44 }
 0x3c6   :  { %3253 = vmatpush1.bf16.msra.mxu1 %v5861_v46 }
 0x3c7   :  { %3254 = vmatprep.subr.bf16.mxu1 %v5866_v47  ;;  %v5927_v47 = vld [vmem:[#allocation8 + $0x4] ss:$8 sps:$4 sm:$0xff]  }
 0x3ca   :  { %3255 = vmatpush1.bf16.msra.mxu1 %v5864_v50  ;;  %v5925_v50 = vld [vmem:[#allocation8] ss:$8 sps:$4 sm:$0xff]  }
 0x3cb   :  { %3256 = vmatprep.subr.bf16.mxu1 %v5869_v51  ;;  %v5930_v51 = vld [vmem:[#allocation13 + $0xec] ss:$16 sps:$4 sm:$0xff]  }
 0x3ce   :  { %3257 = vmatpush1.bf16.msra.mxu1 %v5867_v53 }
 0x3cf   :  { %3258 = vmatprep.subr.bf16.mxu1 %v5872_v54 }
 0x3d2   :  { %3259 = vmatpush1.bf16.msra.mxu1 %v5870_v55 }
 0x3d3   :  { %3260 = vmatprep.subr.bf16.mxu1 %v5875_v56 }
 0x3d6   :  { %3261 = vmatpush1.bf16.msra.mxu1 %v5873_v57  ;;  %v5976_v57 = vld [vmem:[#allocation11 + $0xe0] ss:$16 sps:$4 sm:$0xff]  }
 0x3d7   :  { %3262 = vmatprep.subr.bf16.mxu1 %v5878_v58  ;;  %v5978_v58 = vld [vmem:[#allocation11 + $0xe4] ss:$16 sps:$4 sm:$0xff]  }
 0x3da   :  { %3263 = vmatpush2.bf16.msra.mxu1 %v5876_v59  ;;  %v5984_v59 = vld [vmem:[#allocation11 + $0xc4] ss:$16 sps:$4 sm:$0xff]  }
 0x3db   :  { %3264 = vmatprep.subr.bf16.mxu1 %v5881_v61  ;;  %v5982_v61 = vld [vmem:[#allocation11 + $0xc0] ss:$16 sps:$4 sm:$0xff]  }
 0x3de   :  { %3265 = vmatpush2.bf16.msra.mxu1 %v5879_v63  ;;  %v5988_v63 = vld [vmem:[#allocation11 + $0xa0] ss:$16 sps:$4 sm:$0xff]  }
 0x3df   :  { %3266 = vmatprep.subr.bf16.mxu1 %v5884_v0  ;;  %v5996_v0 = vld [vmem:[#allocation11 + $0x84] ss:$16 sps:$4 sm:$0xff]  }
 0x3e2   :  { %3267 = vmatpush2.bf16.msra.mxu1 %v5882_v3  ;;  %v6002_v3 = vld [vmem:[#allocation11 + $0x64] ss:$16 sps:$4 sm:$0xff]  }
 0x3e3   :  { %3268 = vmatprep.subr.bf16.mxu1 %v5887_v4  ;;  %v6000_v4 = vld [vmem:[#allocation11 + $0x60] ss:$16 sps:$4 sm:$0xff]  }
 0x3e6   :  { %3269 = vmatpush2.bf16.msra.mxu1 %v5885_v5  ;;  %v6008_v5 = vld [vmem:[#allocation11 + $0x44] ss:$16 sps:$4 sm:$0xff]  }
 0x3e7   :  { %3270 = vmatprep.subr.bf16.mxu1 %v5890_v6  ;;  %v6006_v6 = vld [vmem:[#allocation11 + $0x40] ss:$16 sps:$4 sm:$0xff]  }
 0x3ea   :  { %3271 = vmatpush2.bf16.msra.mxu1 %v5888_v7  ;;  %v6014_v7 = vld [vmem:[#allocation11 + $0x24] ss:$16 sps:$4 sm:$0xff]  }
 0x3eb   :  { %3272 = vmatprep.subr.bf16.mxu1 %v5893_v10  ;;  %v6012_v10 = vld [vmem:[#allocation11 + $0x20] ss:$16 sps:$4 sm:$0xff]  }
 0x3ee   :  { %3273 = vmatpush2.bf16.msra.mxu1 %v5891_v11  ;;  %v6020_v11 = vld [vmem:[#allocation11 + $0x4] ss:$16 sps:$4 sm:$0xff]  }
 0x3ef   :  { %3274 = vmatprep.subr.bf16.mxu1 %v5896_v29  ;;  %v6018_v29 = vld [vmem:[#allocation11] ss:$16 sps:$4 sm:$0xff]  }
 0x3f2   :  { %3275 = vmatpush2.bf16.msra.mxu1 %v5894_v12  ;;  %v6026_v12 = vld [vmem:[#allocation11 + $0x1e4] ss:$16 sps:$4 sm:$0xff]  }
 0x3f3   :  { %3276 = vmatprep.subr.bf16.mxu1 %v5899_v13  ;;  %v6024_v13 = vld [vmem:[#allocation11 + $0x1e0] ss:$16 sps:$4 sm:$0xff]  }
 0x3f6   :  { %3277 = vmatpush2.bf16.msra.mxu1 %v5897_v14  ;;  %v6032_v14 = vld [vmem:[#allocation11 + $0x1c4] ss:$16 sps:$4 sm:$0xff]  }
 0x3f7   :  { %3648 = vmatprep.subr.bf16.mxu1 %v5978_v58  ;;  %v5954_v58 = vld [vmem:[#allocation13 + $0x1ec] ss:$16 sps:$4 sm:$0xff]  }
 0x3f9   :  { %3279 = vmatmul.mubr.bf16.vlgmr.msra.gmra.mxu1 %v6814_v17 }
 0x3fa   :  { %3649 = vmatpush1.bf16.msra.mxu1 %v5976_v57  ;;  %v5949_v57 = vld [vmem:[#allocation13 + $0x8] ss:$16 sps:$4 sm:$0xff]  }
 0x3fb   :  { %3650 = vmatprep.subr.bf16.mxu1 %v5984_v59  ;;  %v5952_v59 = vld [vmem:[#allocation13 + $0x1e8] ss:$16 sps:$4 sm:$0xff]  }
 0x3fe   :  { %3651 = vmatpush1.bf16.msra.mxu1 %v5982_v61  ;;  %v5957_v61 = vld [vmem:[#allocation13 + $0x1cc] ss:$16 sps:$4 sm:$0xff]  }
 0x3ff   :  { %3652 = vmatprep.subr.bf16.mxu1 %v5990_v62  ;;  %v5955_v62 = vld [vmem:[#allocation13 + $0x1c8] ss:$16 sps:$4 sm:$0xff]  }
 0x402   :  { %3653 = vmatpush1.bf16.msra.mxu1 %v5988_v63  ;;  %v5960_v63 = vld [vmem:[#allocation13 + $0x1ac] ss:$16 sps:$4 sm:$0xff]  }
 0x403   :  { %3654 = vmatprep.subr.bf16.mxu1 %v5996_v0  ;;  %v5958_v0 = vld [vmem:[#allocation13 + $0x1a8] ss:$16 sps:$4 sm:$0xff]  }
 0x406   :  { %3655 = vmatpush1.bf16.msra.mxu1 %v5994_v2  ;;  %v5963_v2 = vld [vmem:[#allocation13 + $0x18c] ss:$16 sps:$4 sm:$0xff]  }
 0x407   :  { %3656 = vmatprep.subr.bf16.mxu1 %v6002_v3  ;;  %v5961_v3 = vld [vmem:[#allocation13 + $0x188] ss:$16 sps:$4 sm:$0xff]  }
 0x40a   :  { %3657 = vmatpush1.bf16.msra.mxu1 %v6000_v4  ;;  %v5966_v4 = vld [vmem:[#allocation13 + $0x16c] ss:$16 sps:$4 sm:$0xff]  }
 0x40b   :  { %3658 = vmatprep.subr.bf16.mxu1 %v6008_v5  ;;  %v5964_v5 = vld [vmem:[#allocation13 + $0x168] ss:$16 sps:$4 sm:$0xff]  }
 0x40e   :  { %3659 = vmatpush1.bf16.msra.mxu1 %v6006_v6  ;;  %v5969_v6 = vld [vmem:[#allocation13 + $0x14c] ss:$16 sps:$4 sm:$0xff]  }
 0x40f   :  { %3660 = vmatprep.subr.bf16.mxu1 %v6014_v7  ;;  %v5967_v7 = vld [vmem:[#allocation13 + $0x148] ss:$16 sps:$4 sm:$0xff]  }
 0x412   :  { %3661 = vmatpush1.bf16.msra.mxu1 %v6012_v10  ;;  %v5972_v10 = vld [vmem:[#allocation13 + $0x12c] ss:$16 sps:$4 sm:$0xff]  }
 0x413   :  { %3662 = vmatprep.subr.bf16.mxu1 %v6020_v11  ;;  %v5970_v11 = vld [vmem:[#allocation13 + $0x128] ss:$16 sps:$4 sm:$0xff]  }
 0x416   :  { %3663 = vmatpush1.bf16.msra.mxu1 %v6018_v29  ;;  %v5975_v29 = vld [vmem:[#allocation13 + $0x10c] ss:$16 sps:$4 sm:$0xff]  }
 0x417   :  { %3664 = vmatprep.subr.bf16.mxu1 %v6026_v12  ;;  %v5973_v12 = vld [vmem:[#allocation13 + $0x108] ss:$16 sps:$4 sm:$0xff]  }
 0x41a   :  { %3665 = vmatpush2.bf16.msra.mxu1 %v6024_v13  ;;  %v5981_v13 = vld [vmem:[#allocation11 + $0xec] ss:$16 sps:$4 sm:$0xff]  }
 0x41b   :  { %3666 = vmatprep.subr.bf16.mxu1 %v6032_v14  ;;  %v5979_v14 = vld [vmem:[#allocation11 + $0xe8] ss:$16 sps:$4 sm:$0xff]  }
 0x41e   :  { %3667 = vmatpush2.bf16.msra.mxu1 %v6030_v15  ;;  %v5987_v15 = vld [vmem:[#allocation11 + $0xcc] ss:$16 sps:$4 sm:$0xff]  }
 0x41f   :  { %3668 = vmatprep.subr.bf16.mxu1 %v6038_v18  ;;  %v5985_v18 = vld [vmem:[#allocation11 + $0xc8] ss:$16 sps:$4 sm:$0xff]  }
 0x459   :  { %v2407_v21 = vpop.f32.mrf.mxu1 }
 0x45a   :  { %v2408_v22 = vadd.f32 %v5028_v20, %v2407_v21  ;;  %v6036_v20 = vld [vmem:[#allocation11 + $0x1a0] ss:$16 sps:$4 sm:$0xff]   ;;  %v6044_v21 = vld [vmem:[#allocation11 + $0x184] ss:$16 sps:$4 sm:$0xff]  }
 0x45b   :  { %v5387_v23 = vpop.f32.mrf.mxu1  ;;  %3669 = vmatpush2.bf16.msra.mxu1 %v6036_v20  ;;  %v5993_v20 = vld [vmem:[#allocation11 + $0xac] ss:$16 sps:$4 sm:$0xff]  }
 0x45c   :  { %v2413_v24 = vmax.f32 %v2408_v22, 0.0  ;;  %v6042_v22 = vld [vmem:[#allocation11 + $0x180] ss:$16 sps:$4 sm:$0xff]   ;;  %3670 = vmatprep.subr.bf16.mxu1 %v6044_v21  ;;  %v6050_v23 = vld [vmem:[#allocation11 + $0x164] ss:$16 sps:$4 sm:$0xff]  }
 0x45d   :  { %v2410_v25 = vpop.f32.mrf.mxu1  ;;  %v6062_v21 = vld [vmem:[#allocation11 + $0x124] ss:$16 sps:$4 sm:$0xff]  }
 0x45e   :  { %v2414_v9 = vpack.c.bf16 %v2413_v24, %v2413_v24  ;;  %v6048_v24 = vld [vmem:[#allocation11 + $0x160] ss:$16 sps:$4 sm:$0xff]   ;;  %v6056_v25 = vld [vmem:[#allocation11 + $0x144] ss:$16 sps:$4 sm:$0xff]  }
 0x45f   :  { %v5388_v16 = vpop.f32.mrf.mxu1  ;;  %3671 = vmatpush2.bf16.msra.mxu1 %v6042_v22  ;;  %v6060_v22 = vld [vmem:[#allocation11 + $0x120] ss:$16 sps:$4 sm:$0xff]  }
 0x460   :  { %5398 = vmatmul.mubr.msk.bf16.vlgmr.msra.gmra.mxu0 %vm2454_vm8, %v2414_v9  ;;  %3672 = vmatprep.subr.bf16.mxu1 %v6050_v23  ;;  %v5037_v9 = vld [vmem:[%s6880_s10] ss:$0 sm:$0xff]  ;;  %v5991_v23 = vld [vmem:[#allocation11 + $0xa8] ss:$16 sps:$4 sm:$0xff]  }
 0x461   :  { %2736 = vmatpush1.bf16.msra.mxu0 %v5904_v28  ;;  %2767 = vmatprep.mubr.bf16.mxu0 %v6501_v19  ;;  %v5922_v19 = vld [vmem:[#allocation8 + $0x10] ss:$8 sps:$4 sm:$0xff]  }
 0x462   :  { %2737 = vmatprep.subr.bf16.mxu0 %v5909_v45  ;;  %v6054_v28 = vld [vmem:[#allocation11 + $0x140] ss:$16 sps:$4 sm:$0xff]  }
 0x463   :  { %3673 = vmatpush2.bf16.msra.mxu1 %v6048_v24  ;;  %v5999_v24 = vld [vmem:[#allocation11 + $0x8c] ss:$16 sps:$4 sm:$0xff]  }
 0x464   :  { %3674 = vmatprep.subr.bf16.mxu1 %v6056_v25  ;;  %v6068_v25 = vld [vmem:[#allocation11 + $0x104] ss:$16 sps:$4 sm:$0xff]  }
 0x465   :  { %2738 = vmatpush1.bf16.msra.mxu0 %v5907_v30 }
 0x466   :  { %2739 = vmatprep.subr.bf16.mxu0 %v5912_v31 }
 0x467   :  { %3675 = vmatpush2.bf16.msra.mxu1 %v6054_v28  ;;  %v6066_v28 = vld [vmem:[#allocation11 + $0x100] ss:$16 sps:$4 sm:$0xff]  }
 0x468   :  { %3676 = vmatprep.subr.bf16.mxu1 %v6062_v21 }
 0x469   :  { %2740 = vmatpush1.bf16.msra.mxu0 %v5910_v32 }
 0x46a   :  { %2741 = vmatprep.subr.bf16.mxu0 %v5915_v52  ;;  %v5928_v52 = vld [vmem:[#allocation13 + $0xe8] ss:$16 sps:$4 sm:$0xff]  }
 0x46b   :  { %3677 = vmatpush2.bf16.msra.mxu1 %v6060_v22  ;;  %v6083_v22 = vld [vmem:[#allocation16 + $0x164] ss:$8 sps:$4 sm:$0xff]  }
 0x46c   :  { %3678 = vmatprep.subr.bf16.mxu1 %v6068_v25  ;;  %v6081_v25 = vld [vmem:[#allocation16 + $0x160] ss:$8 sps:$4 sm:$0xff]  }
 0x46d   :  { %2742 = vmatpush1.bf16.msra.mxu0 %v5913_v33 }
 0x46e   :  { %2743 = vmatprep.subr.bf16.mxu0 %v5918_v35  ;;  %v5933_v35 = vld [vmem:[#allocation13 + $0xcc] ss:$16 sps:$4 sm:$0xff]  }
 0x46f   :  { %3679 = vmatpush2.bf16.msra.mxu1 %v6066_v28  ;;  %v6084_v28 = vld [vmem:[#allocation16 + $0x50] ss:$8 sps:$4 sm:$0xff]  }
 0x471   :  { %2744 = vmatpush1.bf16.msra.mxu0 %v5916_v36 }
 0x472   :  { %2745 = vmatprep.subr.bf16.mxu0 %v5921_v37  ;;  %v5931_v37 = vld [vmem:[#allocation13 + $0xc8] ss:$16 sps:$4 sm:$0xff]  }
 0x475   :  { %2746 = vmatpush1.bf16.msra.mxu0 %v5919_v39  ;;  %v5936_v39 = vld [vmem:[#allocation13 + $0xac] ss:$16 sps:$4 sm:$0xff]  }
 0x476   :  { %2747 = vmatprep.subr.bf16.mxu0 %v5924_v41  ;;  %v5934_v41 = vld [vmem:[#allocation13 + $0xa8] ss:$16 sps:$4 sm:$0xff]  }
 0x479   :  { %v6821_v42 = vpop.f32.mrf.mxu1  ;;  %2748 = vmatpush1.bf16.msra.mxu0 %v5922_v19  ;;  %v5939_v19 = vld [vmem:[#allocation13 + $0x8c] ss:$16 sps:$4 sm:$0xff]  }
 0x47a   :  { %2749 = vmatprep.subr.bf16.mxu0 %v5927_v47  ;;  %v5940_v47 = vld [vmem:[#allocation13 + $0x68] ss:$16 sps:$4 sm:$0xff]  }
 0x47b   :  { %v6823_v43 = vpop.f32.mrf.mxu1 }
 0x47d   :  { %v2652_v44 = vpop.f32.mrf.mxu1  ;;  %2750 = vmatpush1.bf16.msra.mxu0 %v5925_v50  ;;  %v5945_v50 = vld [vmem:[#allocation13 + $0x4c] ss:$16 sps:$4 sm:$0xff]  }
 0x47e   :  { %3287 = vmatprep.subr.bf16.mxu0 %v5930_v51  ;;  %v5937_v44 = vld [vmem:[#allocation13 + $0x88] ss:$16 sps:$4 sm:$0xff]  }
 0x47f   :  { %v2653_v46 = vpop.f32.mrf.mxu1  ;;  %v5943_v51 = vld [vmem:[#allocation13 + $0x48] ss:$16 sps:$4 sm:$0xff]  }
 0x480   :  { %v5942_v46 = vld [vmem:[#allocation13 + $0x6c] ss:$16 sps:$4 sm:$0xff]  }
 0x4b9   :  { %v6825_v53 = vpop.f32.mrf.mxu1 }
 0x4bb   :  { %v6827_v54 = vpop.f32.mrf.mxu1 }
 0x4bd   :  { %v3284_v55 = vpop.f32.mrf.mxu1 }
 0x4be   :  { %v5948_v55 = vld [vmem:[#allocation13 + $0x2c] ss:$16 sps:$4 sm:$0xff]  }
 0x4bf   :  { %v3285_v56 = vpop.f32.mrf.mxu1 }
 0x4c0   :  { %v5951_v56 = vld [vmem:[#allocation13 + $0xc] ss:$16 sps:$4 sm:$0xff]  }
 0x520   :  { %v2492_v45 = vpop.f32.mrf.mxu0 }
 0x521   :  { %v2493_v16 = vadd.f32 %v5037_v9, %v2492_v45  ;;  %v5997_v9 = vld [vmem:[#allocation11 + $0x88] ss:$16 sps:$4 sm:$0xff]   ;;  %v6074_v45 = vld [vmem:[#allocation16 + $0x74] ss:$8 sps:$4 sm:$0xff]  }
 0x522   :  { %v5399_v30 = vpop.f32.mrf.mxu0  ;;  %4220 = vmatprep.subr.bf16.mxu1 %v6074_v45  ;;  %v6095_v45 = vld [vmem:[#allocation16 + $0x144] ss:$8 sps:$4 sm:$0xff]  }
 0x523   :  { %v2498_v31 = vmax.f32 %v2493_v16, 0.0  ;;  %v6003_v16 = vld [vmem:[#allocation11 + $0x68] ss:$16 sps:$4 sm:$0xff]   ;;  %v6011_v30 = vld [vmem:[#allocation11 + $0x4c] ss:$16 sps:$4 sm:$0xff]  }
 0x524   :  { %v2495_v32 = vpop.f32.mrf.mxu0 }
 0x525   :  { %v2499_v33 = vpack.c.bf16 %v2498_v31, %v2498_v31  ;;  %v6009_v31 = vld [vmem:[#allocation11 + $0x48] ss:$16 sps:$4 sm:$0xff]   ;;  %v6017_v32 = vld [vmem:[#allocation11 + $0x2c] ss:$16 sps:$4 sm:$0xff]  }
 0x526   :  { %v5400_v36 = vpop.f32.mrf.mxu0 }
 0x527   :  { %2768 = vmatmul.mubr.bf16.vlgmr.msra.gmra.mxu0 %v2499_v33  ;;  %v6023_v33 = vld [vmem:[#allocation11 + $0xc] ss:$16 sps:$4 sm:$0xff]  }
 0x528   :  { %3288 = vmatpush1.bf16.msra.mxu0 %v5928_v52  ;;  %3319 = vmatprep.mubr.bf16.mxu0 %v6803_v40  ;;  %v5946_v40 = vld [vmem:[#allocation13 + $0x28] ss:$16 sps:$4 sm:$0xff]   ;;  %v6029_v36 = vld [vmem:[#allocation11 + $0x1ec] ss:$16 sps:$4 sm:$0xff]  }
 0x529   :  { %3289 = vmatprep.subr.bf16.mxu0 %v5933_v35  ;;  %v6015_v52 = vld [vmem:[#allocation11 + $0x28] ss:$16 sps:$4 sm:$0xff]  }
 0x52a   :  { %v6021_v35 = vld [vmem:[#allocation11 + $0x8] ss:$16 sps:$4 sm:$0xff]  }
 0x52c   :  { %3290 = vmatpush1.bf16.msra.mxu0 %v5931_v37  ;;  %v6027_v37 = vld [vmem:[#allocation11 + $0x1e8] ss:$16 sps:$4 sm:$0xff]  }
 0x52d   :  { %3291 = vmatprep.subr.bf16.mxu0 %v5936_v39  ;;  %v6035_v39 = vld [vmem:[#allocation11 + $0x1cc] ss:$16 sps:$4 sm:$0xff]  }
 0x530   :  { %3292 = vmatpush1.bf16.msra.mxu0 %v5934_v41  ;;  %v6033_v41 = vld [vmem:[#allocation11 + $0x1c8] ss:$16 sps:$4 sm:$0xff]  }
 0x531   :  { %3293 = vmatprep.subr.bf16.mxu0 %v5939_v19  ;;  %v6041_v19 = vld [vmem:[#allocation11 + $0x1ac] ss:$16 sps:$4 sm:$0xff]  }
 0x534   :  { %3294 = vmatpush1.bf16.msra.mxu0 %v5937_v44  ;;  %v6039_v44 = vld [vmem:[#allocation11 + $0x1a8] ss:$16 sps:$4 sm:$0xff]  }
 0x535   :  { %3295 = vmatprep.subr.bf16.mxu0 %v5942_v46  ;;  %v6047_v46 = vld [vmem:[#allocation11 + $0x18c] ss:$16 sps:$4 sm:$0xff]  }
 0x538   :  { %3296 = vmatpush1.bf16.msra.mxu0 %v5940_v47  ;;  %v6045_v47 = vld [vmem:[#allocation11 + $0x188] ss:$16 sps:$4 sm:$0xff]  }
 0x539   :  { %3297 = vmatprep.subr.bf16.mxu0 %v5945_v50  ;;  %v6053_v50 = vld [vmem:[#allocation11 + $0x16c] ss:$16 sps:$4 sm:$0xff]  }
 0x53c   :  { %3298 = vmatpush1.bf16.msra.mxu0 %v5943_v51  ;;  %v6051_v51 = vld [vmem:[#allocation11 + $0x168] ss:$16 sps:$4 sm:$0xff]  }
 0x53d   :  { %3299 = vmatprep.subr.bf16.mxu0 %v5948_v55  ;;  %v6059_v55 = vld [vmem:[#allocation11 + $0x14c] ss:$16 sps:$4 sm:$0xff]  }
 0x540   :  { %3300 = vmatpush1.bf16.msra.mxu0 %v5946_v40  ;;  %v6057_v40 = vld [vmem:[#allocation11 + $0x148] ss:$16 sps:$4 sm:$0xff]  }
 0x541   :  { %3301 = vmatprep.subr.bf16.mxu0 %v5951_v56  ;;  %v6065_v56 = vld [vmem:[#allocation11 + $0x12c] ss:$16 sps:$4 sm:$0xff]  }
 0x544   :  { %3302 = vmatpush1.bf16.msra.mxu0 %v5949_v57  ;;  %v6063_v57 = vld [vmem:[#allocation11 + $0x128] ss:$16 sps:$4 sm:$0xff]  }
 0x545   :  { %3303 = vmatprep.subr.bf16.mxu0 %v5954_v58  ;;  %v6071_v58 = vld [vmem:[#allocation11 + $0x10c] ss:$16 sps:$4 sm:$0xff]  }
 0x548   :  { %3304 = vmatpush2.bf16.msra.mxu0 %v5952_v59  ;;  %v6069_v59 = vld [vmem:[#allocation11 + $0x108] ss:$16 sps:$4 sm:$0xff]  }
 0x549   :  { %3305 = vmatprep.subr.bf16.mxu0 %v5957_v61  ;;  %v6077_v61 = vld [vmem:[#allocation16 + $0x174] ss:$8 sps:$4 sm:$0xff]  }
 0x54c   :  { %3306 = vmatpush2.bf16.msra.mxu0 %v5955_v62  ;;  %v2776_v62 = vld [vmem:[%s6883_s13] sm:$0x3] }
 0x54d   :  { %3307 = vmatprep.subr.bf16.mxu0 %v5960_v63  ;;  %v2781_v63 = vrot.slane %v2776_v62, %v6704_v27 }
 0x550   :  { %3308 = vmatpush2.bf16.msra.mxu0 %v5958_v0 }
 0x551   :  { %3309 = vmatprep.subr.bf16.mxu0 %v5963_v2 }
 0x554   :  { %3310 = vmatpush2.bf16.msra.mxu0 %v5961_v3  ;;  %v2785_v3 = vrot.slane %v2776_v62, %v6710_v8  ;;  %v6126_v62 = vld [vmem:[#allocation16 + $0xe0] ss:$8 sps:$4 sm:$0xff]  }
 0x555   :  { %3311 = vmatprep.subr.bf16.mxu0 %v5966_v4 }
 0x558   :  { %3312 = vmatpush2.bf16.msra.mxu0 %v5964_v5 }
 0x559   :  { %3313 = vmatprep.subr.bf16.mxu0 %v5969_v6 }
 0x55c   :  { %3314 = vmatpush2.bf16.msra.mxu0 %v5967_v7 }
 0x55d   :  { %3315 = vmatprep.subr.bf16.mxu0 %v5972_v10 }
 0x560   :  { %3316 = vmatpush2.bf16.msra.mxu0 %v5970_v11 }
 0x561   :  { %3317 = vmatprep.subr.bf16.mxu0 %v5975_v29 }
 0x564   :  { %3318 = vmatpush2.bf16.msra.mxu0 %v5973_v12 }
 0x565   :  { %3689 = vmatprep.subr.bf16.mxu0 %v5981_v13  ;;  %v3829_v13 = vmax.f32 %v6718_v38, 0.0  ;;  %v6086_v38 = vld [vmem:[#allocation16 + $0x54] ss:$8 sps:$4 sm:$0xff]  }
 0x567   :  { %3320 = vmatmul.mubr.bf16.vlgmr.msra.gmra.mxu0 %v6814_v17  ;;  %v6005_v17 = vld [vmem:[#allocation11 + $0x6c] ss:$16 sps:$4 sm:$0xff]  }
 0x568   :  { %3690 = vmatpush1.bf16.msra.mxu0 %v5979_v14  ;;  %v3831_v14 = vmax.f32 %v6734_v1, 0.0  ;;  %v6089_v1 = vld [vmem:[#allocation16 + $0x154] ss:$8 sps:$4 sm:$0xff]  }
 0x569   :  { %3691 = vmatprep.subr.bf16.mxu0 %v5987_v15 }
 0x56c   :  { %3692 = vmatpush1.bf16.msra.mxu0 %v5985_v18  ;;  %v6072_v18 = vld [vmem:[#allocation16 + $0x70] ss:$8 sps:$4 sm:$0xff]  }
 0x56d   :  { %3693 = vmatprep.subr.bf16.mxu0 %v5993_v20  ;;  %v6075_v20 = vld [vmem:[#allocation16 + $0x170] ss:$8 sps:$4 sm:$0xff]  }
 0x570   :  { %3694 = vmatpush1.bf16.msra.mxu0 %v5991_v23  ;;  %v3835_v23 = vpack.c.bf16 %v3831_v14, %v3831_v14  ;;  %v6152_v14 = vld [vmem:[#allocation16 + $0xa4] ss:$8 sps:$4 sm:$0xff]  }
 0x571   :  { %3695 = vmatprep.subr.bf16.mxu0 %v5999_v24  ;;  %v6078_v24 = vld [vmem:[#allocation16 + $0x60] ss:$8 sps:$4 sm:$0xff]  }
 0x574   :  { %3696 = vmatpush1.bf16.msra.mxu0 %v5997_v9  ;;  %v6087_v9 = vld [vmem:[#allocation16 + $0x150] ss:$8 sps:$4 sm:$0xff]  }
 0x575   :  { %3697 = vmatprep.subr.bf16.mxu0 %v6005_v17  ;;  %v6092_v17 = vld [vmem:[#allocation16 + $0x44] ss:$8 sps:$4 sm:$0xff]  }
 0x578   :  { %3698 = vmatpush1.bf16.msra.mxu0 %v6003_v16  ;;  %v6090_v16 = vld [vmem:[#allocation16 + $0x40] ss:$8 sps:$4 sm:$0xff]  }
 0x579   :  { %3699 = vmatprep.subr.bf16.mxu0 %v6011_v30  ;;  %v6093_v30 = vld [vmem:[#allocation16 + $0x140] ss:$8 sps:$4 sm:$0xff]  }
 0x57c   :  { %3700 = vmatpush1.bf16.msra.mxu0 %v6009_v31  ;;  %v6098_v31 = vld [vmem:[#allocation16 + $0x34] ss:$8 sps:$4 sm:$0xff]  }
 0x57d   :  { %3701 = vmatprep.subr.bf16.mxu0 %v6017_v32  ;;  %v6101_v32 = vld [vmem:[#allocation16 + $0x134] ss:$8 sps:$4 sm:$0xff]  }
 0x580   :  { %3702 = vmatpush1.bf16.msra.mxu0 %v6015_v52  ;;  %v6096_v52 = vld [vmem:[#allocation16 + $0x30] ss:$8 sps:$4 sm:$0xff]  }
 0x581   :  { %3703 = vmatprep.subr.bf16.mxu0 %v6023_v33  ;;  %v6099_v33 = vld [vmem:[#allocation16 + $0x130] ss:$8 sps:$4 sm:$0xff]  }
 0x584   :  { %3704 = vmatpush1.bf16.msra.mxu0 %v6021_v35  ;;  %v6104_v35 = vld [vmem:[#allocation16 + $0x24] ss:$8 sps:$4 sm:$0xff]  }
 0x585   :  { %3705 = vmatprep.subr.bf16.mxu0 %v6029_v36  ;;  %v6107_v36 = vld [vmem:[#allocation16 + $0x124] ss:$8 sps:$4 sm:$0xff]  }
 0x588   :  { %3706 = vmatpush2.bf16.msra.mxu0 %v6027_v37  ;;  %v6102_v37 = vld [vmem:[#allocation16 + $0x20] ss:$8 sps:$4 sm:$0xff]  }
 0x589   :  { %3707 = vmatprep.subr.bf16.mxu0 %v6035_v39  ;;  %v6105_v39 = vld [vmem:[#allocation16 + $0x120] ss:$8 sps:$4 sm:$0xff]  }
 0x58c   :  { %3708 = vmatpush2.bf16.msra.mxu0 %v6033_v41  ;;  %v6110_v41 = vld [vmem:[#allocation16 + $0x14] ss:$8 sps:$4 sm:$0xff]  }
 0x58d   :  { %3709 = vmatprep.subr.bf16.mxu0 %v6041_v19  ;;  %v6113_v19 = vld [vmem:[#allocation16 + $0x114] ss:$8 sps:$4 sm:$0xff]  }
 0x590   :  { %3710 = vmatpush2.bf16.msra.mxu0 %v6039_v44  ;;  %v6108_v44 = vld [vmem:[#allocation16 + $0x10] ss:$8 sps:$4 sm:$0xff]  }
 0x591   :  { %3711 = vmatprep.subr.bf16.mxu0 %v6047_v46  ;;  %v6111_v46 = vld [vmem:[#allocation16 + $0x110] ss:$8 sps:$4 sm:$0xff]  }
 0x594   :  { %3712 = vmatpush2.bf16.msra.mxu0 %v6045_v47  ;;  %v6116_v47 = vld [vmem:[#allocation16 + $0x4] ss:$8 sps:$4 sm:$0xff]  }
 0x595   :  { %3713 = vmatprep.subr.bf16.mxu0 %v6053_v50  ;;  %v6119_v50 = vld [vmem:[#allocation16 + $0x104] ss:$8 sps:$4 sm:$0xff]  }
 0x598   :  { %3714 = vmatpush2.bf16.msra.mxu0 %v6051_v51  ;;  %v6114_v51 = vld [vmem:[#allocation16] ss:$8 sps:$4 sm:$0xff]  }
 0x599   :  { %3715 = vmatprep.subr.bf16.mxu0 %v6059_v55  ;;  %v6117_v55 = vld [vmem:[#allocation16 + $0x100] ss:$8 sps:$4 sm:$0xff]  }
 0x59c   :  { %3716 = vmatpush2.bf16.msra.mxu0 %v6057_v40  ;;  %v6122_v40 = vld [vmem:[#allocation16 + $0xf4] ss:$8 sps:$4 sm:$0xff]  }
 0x59d   :  { %3717 = vmatprep.subr.bf16.mxu0 %v6065_v56  ;;  %v6125_v56 = vld [vmem:[#allocation16 + $0x1f4] ss:$8 sps:$4 sm:$0xff]  }
 0x5a0   :  { %3718 = vmatpush2.bf16.msra.mxu0 %v6063_v57  ;;  %v6120_v57 = vld [vmem:[#allocation16 + $0xf0] ss:$8 sps:$4 sm:$0xff]  }
 0x5a1   :  { %3719 = vmatprep.subr.bf16.mxu0 %v6071_v58  ;;  %v6123_v58 = vld [vmem:[#allocation16 + $0x1f0] ss:$8 sps:$4 sm:$0xff]  }
 0x5a4   :  { %3720 = vmatpush2.bf16.msra.mxu0 %v6069_v59  ;;  %v6128_v59 = vld [vmem:[#allocation16 + $0xe4] ss:$8 sps:$4 sm:$0xff]  }
 0x5a5   :  { %4261 = vmatprep.subr.bf16.mxu0 %v6077_v61  ;;  %v6131_v61 = vld [vmem:[#allocation16 + $0x1e4] ss:$8 sps:$4 sm:$0xff]  }
 0x5e7   :  { %v2769_v0 = vpop.f32.mrf.mxu0 }
 0x5e8   :  { %v2770_v2 = vadd.f32 %v2769_v0, %v6821_v42  ;;  %v6080_v42 = vld [vmem:[#allocation16 + $0x64] ss:$8 sps:$4 sm:$0xff]   ;;  %v6134_v0 = vld [vmem:[#allocation16 + $0xd4] ss:$8 sps:$4 sm:$0xff]  }
 0x5e9   :  { %v2771_v4 = vpop.f32.mrf.mxu0 }
 0x5ea   :  { %v2788_v5 = vadd.f32 %v2781_v63, %v2770_v2  ;;  %v2772_v6 = vadd.f32 %v2771_v4, %v6823_v43  ;;  %v3833_v43 = vpack.c.bf16 %v3829_v13, %v3829_v13  ;;  %v6129_v63 = vld [vmem:[#allocation16 + $0x1e0] ss:$8 sps:$4 sm:$0xff]   ;;  %v6137_v2 = vld [vmem:[#allocation16 + $0x1d4] ss:$8 sps:$4 sm:$0xff]   ;;  %v6135_v4 = vld [vmem:[#allocation16 + $0x1d0] ss:$8 sps:$4 sm:$0xff]  }
 0x5eb   :  { %v2773_v7 = vpop.f32.mrf.mxu0  ;;  %v6147_v13 = vld [vmem:[#allocation16 + $0x1b0] ss:$8 sps:$4 sm:$0xff]  }
 0x5ec   :  { %v2789_v10 = vadd.f32 %v2785_v3, %v2772_v6  ;;  %v2790_v11 = vmax.f32 %v2788_v5, 0.0  ;;  %v6132_v3 = vld [vmem:[#allocation16 + $0xd0] ss:$8 sps:$4 sm:$0xff]   ;;  %v6140_v5 = vld [vmem:[#allocation16 + $0xc4] ss:$8 sps:$4 sm:$0xff]  }
 0x5ed   :  { %v2774_v29 = vpop.f32.mrf.mxu0  ;;  %v6143_v6 = vld [vmem:[#allocation16 + $0x1c4] ss:$8 sps:$4 sm:$0xff]   ;;  %v6138_v7 = vld [vmem:[#allocation16 + $0xc0] ss:$8 sps:$4 sm:$0xff]  }
 0x5ee   :  { %v2791_v12 = vmax.f32 %v2789_v10, 0.0  ;;  %v2792_v21 = vpack.c.bf16 %v2790_v11, %v2790_v11  ;;  %v6141_v10 = vld [vmem:[#allocation16 + $0x1c0] ss:$8 sps:$4 sm:$0xff]   ;;  %v6146_v11 = vld [vmem:[#allocation16 + $0xb4] ss:$8 sps:$4 sm:$0xff]  }
 0x5ef   :  { %v6149_v29 = vld [vmem:[#allocation16 + $0x1b4] ss:$8 sps:$4 sm:$0xff]  }
 0x5f0   :  { %v2793_v15 = vpack.c.bf16 %v2791_v12, %v2791_v12  ;;  %v6144_v12 = vld [vmem:[#allocation16 + $0xb0] ss:$8 sps:$4 sm:$0xff]  }
 0x5f2   :  { %3680 = vmatprep.mubr.bf16.mxu1 %v2793_v15  ;;  %3721 = vmatprep.mubr.bf16.mxu0 %v2793_v15  ;;  %v6155_v15 = vld [vmem:[#allocation16 + $0x1a4] ss:$8 sps:$4 sm:$0xff]  }
 0x5f3   :  { %3681 = vmatmul.mubr.bf16.vlgmr.msra.gmra.mxu1 %v2792_v21  ;;  %3722 = vmatmul.mubr.bf16.vlgmr.msra.gmra.mxu0 %v2792_v21  ;;  %v6158_v21 = vld [vmem:[#allocation16 + $0x94] ss:$8 sps:$4 sm:$0xff]  }
 0x5f4   :  { %4221 = vmatpush1.bf16.msra.mxu1 %v6072_v18  ;;  %4262 = vmatpush1.bf16.msra.mxu0 %v6075_v20  ;;  %v6150_v18 = vld [vmem:[#allocation16 + $0xa0] ss:$8 sps:$4 sm:$0xff]  }
 0x5f5   :  { %4252 = vmatprep.mubr.bf16.mxu1 %v3833_v43  ;;  %4293 = vmatprep.mubr.bf16.mxu0 %v3835_v23  ;;  %v6153_v20 = vld [vmem:[#allocation16 + $0x1a0] ss:$8 sps:$4 sm:$0xff]   ;;  %v6156_v43 = vld [vmem:[#allocation16 + $0x90] ss:$8 sps:$4 sm:$0xff]  }
 0x5f6   :  { %4222 = vmatprep.subr.bf16.mxu1 %v6080_v42  ;;  %4263 = vmatprep.subr.bf16.mxu0 %v6083_v22  ;;  %v6161_v42 = vld [vmem:[#allocation16 + $0x194] ss:$8 sps:$4 sm:$0xff]   ;;  %v6159_v23 = vld [vmem:[#allocation16 + $0x190] ss:$8 sps:$4 sm:$0xff]  }
 0x5f8   :  { %4223 = vmatpush1.bf16.msra.mxu1 %v6078_v24  ;;  %4264 = vmatpush1.bf16.msra.mxu0 %v6081_v25  ;;  %v6164_v25 = vld [vmem:[#allocation16 + $0x84] ss:$8 sps:$4 sm:$0xff]  }
 0x5f9   :  { %4224 = vmatprep.subr.bf16.mxu1 %v6086_v38  ;;  %4265 = vmatprep.subr.bf16.mxu0 %v6089_v1  ;;  %v6167_v38 = vld [vmem:[#allocation16 + $0x184] ss:$8 sps:$4 sm:$0xff]  }
 0x5fc   :  { %4225 = vmatpush1.bf16.msra.mxu1 %v6084_v28  ;;  %4266 = vmatpush1.bf16.msra.mxu0 %v6087_v9  ;;  %v6162_v28 = vld [vmem:[#allocation16 + $0x80] ss:$8 sps:$4 sm:$0xff]  }
 0x5fd   :  { %4226 = vmatprep.subr.bf16.mxu1 %v6092_v17  ;;  %4267 = vmatprep.subr.bf16.mxu0 %v6095_v45  ;;  %v6165_v9 = vld [vmem:[#allocation16 + $0x180] ss:$8 sps:$4 sm:$0xff]   ;;  %v3828_v45 = vmax.f32 %v6714_v34, 0.0 }
 0x5fe   :  { %v6177_v34 = vld [vmem:[#allocation14 + $0x160] ss:$8 sps:$4 sm:$0xff]  }
 0x600   :  { %4227 = vmatpush1.bf16.msra.mxu1 %v6090_v16  ;;  %4268 = vmatpush1.bf16.msra.mxu0 %v6093_v30  ;;  %v3830_v16 = vmax.f32 %v6730_v60, 0.0  ;;  %v6170_v30 = vld [vmem:[#allocation14 + $0x74] ss:$8 sps:$4 sm:$0xff]  }
 0x601   :  { %4228 = vmatprep.subr.bf16.mxu1 %v6098_v31  ;;  %4269 = vmatprep.subr.bf16.mxu0 %v6101_v32  ;;  %v6173_v31 = vld [vmem:[#allocation14 + $0x174] ss:$8 sps:$4 sm:$0xff]   ;;  %v6168_v32 = vld [vmem:[#allocation14 + $0x70] ss:$8 sps:$4 sm:$0xff]  }
 0x602   :  { %v6182_v60 = vld [vmem:[#allocation14 + $0x54] ss:$8 sps:$4 sm:$0xff]  }
 0x604   :  { %4229 = vmatpush1.bf16.msra.mxu1 %v6096_v52  ;;  %4270 = vmatpush1.bf16.msra.mxu0 %v6099_v33  ;;  %v6171_v52 = vld [vmem:[#allocation14 + $0x170] ss:$8 sps:$4 sm:$0xff]   ;;  %v3832_v33 = vpack.c.bf16 %v3828_v45, %v3828_v45 }
 0x605   :  { %4230 = vmatprep.subr.bf16.mxu1 %v6104_v35  ;;  %4271 = vmatprep.subr.bf16.mxu0 %v6107_v36  ;;  %v3834_v35 = vpack.c.bf16 %v3830_v16, %v3830_v16  ;;  %v6176_v36 = vld [vmem:[#allocation14 + $0x64] ss:$8 sps:$4 sm:$0xff]   ;;  %v6243_v45 = vld [vmem:[#allocation14 + $0x1b0] ss:$8 sps:$4 sm:$0xff]  }
 0x606   :  { %v6248_v16 = vld [vmem:[#allocation14 + $0xa4] ss:$8 sps:$4 sm:$0xff]  }
 0x608   :  { %4231 = vmatpush1.bf16.msra.mxu1 %v6102_v37  ;;  %4272 = vmatpush1.bf16.msra.mxu0 %v6105_v39  ;;  %v6179_v37 = vld [vmem:[#allocation14 + $0x164] ss:$8 sps:$4 sm:$0xff]   ;;  %v6174_v39 = vld [vmem:[#allocation14 + $0x60] ss:$8 sps:$4 sm:$0xff]  }
 0x609   :  { %4232 = vmatprep.subr.bf16.mxu1 %v6110_v41  ;;  %4273 = vmatprep.subr.bf16.mxu0 %v6113_v19  ;;  %v6185_v41 = vld [vmem:[#allocation14 + $0x154] ss:$8 sps:$4 sm:$0xff]   ;;  %v6180_v19 = vld [vmem:[#allocation14 + $0x50] ss:$8 sps:$4 sm:$0xff]  }
 0x60c   :  { %4233 = vmatpush1.bf16.msra.mxu1 %v6108_v44  ;;  %4274 = vmatpush1.bf16.msra.mxu0 %v6111_v46  ;;  %v6183_v44 = vld [vmem:[#allocation14 + $0x150] ss:$8 sps:$4 sm:$0xff]   ;;  %v6188_v46 = vld [vmem:[#allocation14 + $0x44] ss:$8 sps:$4 sm:$0xff]  }
 0x60d   :  { %4234 = vmatprep.subr.bf16.mxu1 %v6116_v47  ;;  %4275 = vmatprep.subr.bf16.mxu0 %v6119_v50  ;;  %v6191_v47 = vld [vmem:[#allocation14 + $0x144] ss:$8 sps:$4 sm:$0xff]   ;;  %v6186_v50 = vld [vmem:[#allocation14 + $0x40] ss:$8 sps:$4 sm:$0xff]  }
 0x610   :  { %4235 = vmatpush1.bf16.msra.mxu1 %v6114_v51  ;;  %4276 = vmatpush1.bf16.msra.mxu0 %v6117_v55  ;;  %v6189_v51 = vld [vmem:[#allocation14 + $0x140] ss:$8 sps:$4 sm:$0xff]   ;;  %v6194_v55 = vld [vmem:[#allocation14 + $0x34] ss:$8 sps:$4 sm:$0xff]  }
 0x611   :  { %4236 = vmatprep.subr.bf16.mxu1 %v6122_v40  ;;  %4277 = vmatprep.subr.bf16.mxu0 %v6125_v56  ;;  %v6197_v40 = vld [vmem:[#allocation14 + $0x134] ss:$8 sps:$4 sm:$0xff]   ;;  %v6192_v56 = vld [vmem:[#allocation14 + $0x30] ss:$8 sps:$4 sm:$0xff]  }
 0x614   :  { %4237 = vmatpush2.bf16.msra.mxu1 %v6120_v57  ;;  %4278 = vmatpush2.bf16.msra.mxu0 %v6123_v58  ;;  %v6195_v57 = vld [vmem:[#allocation14 + $0x130] ss:$8 sps:$4 sm:$0xff]   ;;  %v6200_v58 = vld [vmem:[#allocation14 + $0x24] ss:$8 sps:$4 sm:$0xff]  }
 0x615   :  { %4238 = vmatprep.subr.bf16.mxu1 %v6128_v59  ;;  %4279 = vmatprep.subr.bf16.mxu0 %v6131_v61  ;;  %v6203_v59 = vld [vmem:[#allocation14 + $0x124] ss:$8 sps:$4 sm:$0xff]   ;;  %v6198_v61 = vld [vmem:[#allocation14 + $0x20] ss:$8 sps:$4 sm:$0xff]  }
 0x618   :  { %4239 = vmatpush2.bf16.msra.mxu1 %v6126_v62  ;;  %4280 = vmatpush2.bf16.msra.mxu0 %v6129_v63  ;;  %v6201_v62 = vld [vmem:[#allocation14 + $0x120] ss:$8 sps:$4 sm:$0xff]   ;;  %v6206_v63 = vld [vmem:[#allocation14 + $0x14] ss:$8 sps:$4 sm:$0xff]  }
 0x619   :  { %4240 = vmatprep.subr.bf16.mxu1 %v6134_v0  ;;  %4281 = vmatprep.subr.bf16.mxu0 %v6137_v2  ;;  %v6209_v0 = vld [vmem:[#allocation14 + $0x114] ss:$8 sps:$4 sm:$0xff]   ;;  %v6204_v2 = vld [vmem:[#allocation14 + $0x10] ss:$8 sps:$4 sm:$0xff]  }
 0x61c   :  { %4241 = vmatpush2.bf16.msra.mxu1 %v6132_v3  ;;  %4282 = vmatpush2.bf16.msra.mxu0 %v6135_v4  ;;  %v6207_v3 = vld [vmem:[#allocation14 + $0x110] ss:$8 sps:$4 sm:$0xff]   ;;  %v6212_v4 = vld [vmem:[#allocation14 + $0x4] ss:$8 sps:$4 sm:$0xff]  }
 0x61d   :  { %4242 = vmatprep.subr.bf16.mxu1 %v6140_v5  ;;  %4283 = vmatprep.subr.bf16.mxu0 %v6143_v6  ;;  %v6215_v5 = vld [vmem:[#allocation14 + $0x104] ss:$8 sps:$4 sm:$0xff]   ;;  %v6210_v6 = vld [vmem:[#allocation14] ss:$8 sps:$4 sm:$0xff]  }
 0x620   :  { %4243 = vmatpush2.bf16.msra.mxu1 %v6138_v7  ;;  %4284 = vmatpush2.bf16.msra.mxu0 %v6141_v10  ;;  %v6213_v7 = vld [vmem:[#allocation14 + $0x100] ss:$8 sps:$4 sm:$0xff]   ;;  %v6218_v10 = vld [vmem:[#allocation14 + $0xf4] ss:$8 sps:$4 sm:$0xff]  }
 0x621   :  { %4244 = vmatprep.subr.bf16.mxu1 %v6146_v11  ;;  %4285 = vmatprep.subr.bf16.mxu0 %v6149_v29  ;;  %v6221_v11 = vld [vmem:[#allocation14 + $0x1f4] ss:$8 sps:$4 sm:$0xff]   ;;  %v6216_v29 = vld [vmem:[#allocation14 + $0xf0] ss:$8 sps:$4 sm:$0xff]  }
 0x624   :  { %4245 = vmatpush2.bf16.msra.mxu1 %v6144_v12  ;;  %4286 = vmatpush2.bf16.msra.mxu0 %v6147_v13  ;;  %v6219_v12 = vld [vmem:[#allocation14 + $0x1f0] ss:$8 sps:$4 sm:$0xff]   ;;  %v6224_v13 = vld [vmem:[#allocation14 + $0xe4] ss:$8 sps:$4 sm:$0xff]  }
 0x625   :  { %4246 = vmatprep.subr.bf16.mxu1 %v6152_v14  ;;  %4287 = vmatprep.subr.bf16.mxu0 %v6155_v15  ;;  %v6227_v14 = vld [vmem:[#allocation14 + $0x1e4] ss:$8 sps:$4 sm:$0xff]   ;;  %v6222_v15 = vld [vmem:[#allocation14 + $0xe0] ss:$8 sps:$4 sm:$0xff]  }
 0x627   :  { %v6843_v22 = vpop.f32.mrf.mxu0 }
 0x628   :  { %4247 = vmatpush2.bf16.msra.mxu1 %v6150_v18  ;;  %4288 = vmatpush2.bf16.msra.mxu0 %v6153_v20  ;;  %v6225_v18 = vld [vmem:[#allocation14 + $0x1e0] ss:$8 sps:$4 sm:$0xff]   ;;  %v6230_v20 = vld [vmem:[#allocation14 + $0xd4] ss:$8 sps:$4 sm:$0xff]  }
 0x629   :  { %v6845_v24 = vpop.f32.mrf.mxu0  ;;  %4248 = vmatprep.subr.bf16.mxu1 %v6158_v21  ;;  %4289 = vmatprep.subr.bf16.mxu0 %v6161_v42  ;;  %v6233_v21 = vld [vmem:[#allocation14 + $0x1d4] ss:$8 sps:$4 sm:$0xff]   ;;  %v6228_v42 = vld [vmem:[#allocation14 + $0xd0] ss:$8 sps:$4 sm:$0xff]  }
 0x62b   :  { %v3325_v1 = vpop.f32.mrf.mxu0 }
 0x62c   :  { %4249 = vmatpush2.bf16.msra.mxu1 %v6156_v43  ;;  %4290 = vmatpush2.bf16.msra.mxu0 %v6159_v23  ;;  %v6231_v43 = vld [vmem:[#allocation14 + $0x1d0] ss:$8 sps:$4 sm:$0xff]   ;;  %v6236_v23 = vld [vmem:[#allocation14 + $0xc4] ss:$8 sps:$4 sm:$0xff]   ;;  %v6237_v1 = vld [vmem:[#allocation14 + $0x1c0] ss:$8 sps:$4 sm:$0xff]  }
 0x62d   :  { %v3326_v17 = vpop.f32.mrf.mxu0  ;;  %4250 = vmatprep.subr.bf16.mxu1 %v6164_v25  ;;  %4291 = vmatprep.subr.bf16.mxu0 %v6167_v38  ;;  %v6239_v25 = vld [vmem:[#allocation14 + $0x1c4] ss:$8 sps:$4 sm:$0xff]   ;;  %v6234_v38 = vld [vmem:[#allocation14 + $0xc0] ss:$8 sps:$4 sm:$0xff]  }
 0x62e   :  { %v6240_v17 = vld [vmem:[#allocation14 + $0xb0] ss:$8 sps:$4 sm:$0xff]  }
 0x630   :  { %4251 = vmatpush2.bf16.msra.mxu1 %v6162_v28  ;;  %4292 = vmatpush2.bf16.msra.mxu0 %v6165_v9  ;;  %v6242_v28 = vld [vmem:[#allocation14 + $0xb4] ss:$8 sps:$4 sm:$0xff]  }
 0x631   :  { %4622 = vmatprep.subr.bf16.mxu1 %v6170_v30  ;;  %4663 = vmatprep.subr.bf16.mxu0 %v6173_v31  ;;  %v6245_v9 = vld [vmem:[#allocation14 + $0x1b4] ss:$8 sps:$4 sm:$0xff]   ;;  %v6251_v30 = vld [vmem:[#allocation14 + $0x1a4] ss:$8 sps:$4 sm:$0xff]   ;;  %v6246_v31 = vld [vmem:[#allocation14 + $0xa0] ss:$8 sps:$4 sm:$0xff]  }
 0x633   :  { %4253 = vmatmul.mubr.bf16.vlgmr.msra.gmra.mxu1 %v3832_v33  ;;  %4294 = vmatmul.mubr.bf16.vlgmr.msra.gmra.mxu0 %v3834_v35  ;;  %v6257_v33 = vld [vmem:[#allocation14 + $0x194] ss:$8 sps:$4 sm:$0xff]   ;;  %v6252_v35 = vld [vmem:[#allocation14 + $0x90] ss:$8 sps:$4 sm:$0xff]  }
 0x634   :  { %4623 = vmatpush1.bf16.msra.mxu1 %v6168_v32  ;;  %4664 = vmatpush1.bf16.msra.mxu0 %v6171_v52  ;;  %v6249_v32 = vld [vmem:[#allocation14 + $0x1a0] ss:$8 sps:$4 sm:$0xff]   ;;  %v6254_v52 = vld [vmem:[#allocation14 + $0x94] ss:$8 sps:$4 sm:$0xff]  }
 0x635   :  { %4624 = vmatprep.subr.bf16.mxu1 %v6176_v36  ;;  %4665 = vmatprep.subr.bf16.mxu0 %v6179_v37  ;;  %v6255_v36 = vld [vmem:[#allocation14 + $0x190] ss:$8 sps:$4 sm:$0xff]   ;;  %v6260_v37 = vld [vmem:[#allocation14 + $0x84] ss:$8 sps:$4 sm:$0xff]  }
 0x638   :  { %4625 = vmatpush1.bf16.msra.mxu1 %v6174_v39  ;;  %4666 = vmatpush1.bf16.msra.mxu0 %v6177_v34  ;;  %v6263_v39 = vld [vmem:[#allocation14 + $0x184] ss:$8 sps:$4 sm:$0xff]   ;;  %v6258_v34 = vld [vmem:[#allocation14 + $0x80] ss:$8 sps:$4 sm:$0xff]  }
 0x639   :  { %4626 = vmatprep.subr.bf16.mxu1 %v6182_v60  ;;  %4667 = vmatprep.subr.bf16.mxu0 %v6185_v41  ;;  %v6261_v60 = vld [vmem:[#allocation14 + $0x180] ss:$8 sps:$4 sm:$0xff]  }
 0x63a   :  { %v3730_v41 = vld [vmem:[%s6886_s16] sm:$0xf] }
 0x63c   :  { %4627 = vmatpush1.bf16.msra.mxu1 %v6180_v19  ;;  %4668 = vmatpush1.bf16.msra.mxu0 %v6183_v44  ;;  %v3735_v19 = vrot.slane %v3730_v41, %v6704_v27  ;;  %v3743_v44 = vrot.slane %v3730_v41, %v405_v48 }
 0x63d   :  { %4628 = vmatprep.subr.bf16.mxu1 %v6188_v46  ;;  %4669 = vmatprep.subr.bf16.mxu0 %v6191_v47 }
 0x640   :  { %4629 = vmatpush1.bf16.msra.mxu1 %v6186_v50  ;;  %4670 = vmatpush1.bf16.msra.mxu0 %v6189_v51 }
 0x641   :  { %4630 = vmatprep.subr.bf16.mxu1 %v6194_v55  ;;  %4671 = vmatprep.subr.bf16.mxu0 %v6197_v40  ;;  %v3739_v55 = vrot.slane %v3730_v41, %v6710_v8  ;;  %v3747_v40 = vrot.slane %v3730_v41, %v409_v49 }
 0x644   :  { %4631 = vmatpush1.bf16.msra.mxu1 %v6192_v56  ;;  %4672 = vmatpush1.bf16.msra.mxu0 %v6195_v57 }
 0x645   :  { %4632 = vmatprep.subr.bf16.mxu1 %v6200_v58  ;;  %4673 = vmatprep.subr.bf16.mxu0 %v6203_v59 }
 0x648   :  { %4633 = vmatpush1.bf16.msra.mxu1 %v6198_v61  ;;  %4674 = vmatpush1.bf16.msra.mxu0 %v6201_v62 }
 0x649   :  { %4634 = vmatprep.subr.bf16.mxu1 %v6206_v63  ;;  %4675 = vmatprep.subr.bf16.mxu0 %v6209_v0 }
 0x64c   :  { %4635 = vmatpush1.bf16.msra.mxu1 %v6204_v2  ;;  %4676 = vmatpush1.bf16.msra.mxu0 %v6207_v3 }
 0x64d   :  { %4636 = vmatprep.subr.bf16.mxu1 %v6212_v4  ;;  %4677 = vmatprep.subr.bf16.mxu0 %v6215_v5 }
 0x650   :  { %4637 = vmatpush1.bf16.msra.mxu1 %v6210_v6  ;;  %4678 = vmatpush1.bf16.msra.mxu0 %v6213_v7 }
 0x651   :  { %4638 = vmatprep.subr.bf16.mxu1 %v6218_v10  ;;  %4679 = vmatprep.subr.bf16.mxu0 %v6221_v11 }
 0x654   :  { %4639 = vmatpush2.bf16.msra.mxu1 %v6216_v29  ;;  %4680 = vmatpush2.bf16.msra.mxu0 %v6219_v12 }
 0x655   :  { %4640 = vmatprep.subr.bf16.mxu1 %v6224_v13  ;;  %4681 = vmatprep.subr.bf16.mxu0 %v6227_v14 }
 0x658   :  { %4641 = vmatpush2.bf16.msra.mxu1 %v6222_v15  ;;  %4682 = vmatpush2.bf16.msra.mxu0 %v6225_v18 }
 0x659   :  { %4642 = vmatprep.subr.bf16.mxu1 %v6230_v20  ;;  %4683 = vmatprep.subr.bf16.mxu0 %v6233_v21  ;;  %v4704_v21 = vld [vmem:[%s6889_s19] sm:$0x3]  ;;  %s6502_s19 = smov [#allocation17]  }
 0x65a   :  { %s4742_s25 = sshll.u32 %s6502_s19, 4  ;;  %s4743_s25 = int_to_ptr.vmem [resolvable:$true] %s4742_s25 }
 0x65b   :  { %s6452_s3 = scalar_lea.vmem %s4743_s25, 256  ;;  %p6457_p4 = scmp.lt.s32.totalorder %s4743_s25, %s4743_s25 }
 0x65c   :  { %4643 = vmatpush2.bf16.msra.mxu1 %v6228_v42  ;;  %4684 = vmatpush2.bf16.msra.mxu0 %v6231_v43  ;;  %p6453_p3 = scmp.ne.s32.totalorder %s4743_s25, %s6452_s3  ;;  %p6458_p5 = scmp.lt.s32.totalorder %s6452_s3, %s6452_s3 }
 0x65d   :  { %4644 = vmatprep.subr.bf16.mxu1 %v6236_v23  ;;  %4685 = vmatprep.subr.bf16.mxu0 %v6239_v25  ;;  %v4709_v25 = vrot.slane %v4704_v21, %v6704_v27 }
 0x65e   :  { %p6459_p6 = por %p6458_p5, %p6457_p4 }
 0x660   :  { %4645 = vmatpush2.bf16.msra.mxu1 %v6234_v38  ;;  %4686 = vmatpush2.bf16.msra.mxu0 %v6237_v1  ;;  %p6460_p7 = pnand %p6459_p6, %p6453_p3 }
 0x661   :  { %4646 = vmatprep.subr.bf16.mxu1 %v6242_v28  ;;  %4687 = vmatprep.subr.bf16.mxu0 %v6245_v9 }
 0x664   :  { %4647 = vmatpush2.bf16.msra.mxu1 %v6240_v17  ;;  %4688 = vmatpush2.bf16.msra.mxu0 %v6243_v45  ;;  %v4713_v17 = vrot.slane %v4704_v21, %v6710_v8 }
 0x665   :  { %4648 = vmatprep.subr.bf16.mxu1 %v6248_v16  ;;  %4689 = vmatprep.subr.bf16.mxu0 %v6251_v30 }
 0x668   :  { %4649 = vmatpush2.bf16.msra.mxu1 %v6246_v31  ;;  %4690 = vmatpush2.bf16.msra.mxu0 %v6249_v32 }
 0x669   :  { %4650 = vmatprep.subr.bf16.mxu1 %v6254_v52  ;;  %4691 = vmatprep.subr.bf16.mxu0 %v6257_v33 }
 0x66c   :  { %4651 = vmatpush2.bf16.msra.mxu1 %v6252_v35  ;;  %4692 = vmatpush2.bf16.msra.mxu0 %v6255_v36 }
 0x66d   :  { %4652 = vmatprep.subr.bf16.mxu1 %v6260_v37  ;;  %4693 = vmatprep.subr.bf16.mxu0 %v6263_v39 }
 0x670   :  { %4653 = vmatpush2.bf16.msra.mxu1 %v6258_v34  ;;  %4694 = vmatpush2.bf16.msra.mxu0 %v6261_v60 }
 0x6b3   :  { %v3682_v46 = vpop.f32.mrf.mxu1  ;;  %v3723_v47 = vpop.f32.mrf.mxu0 }
 0x6b4   :  { %v3683_v50 = vadd.f32 %v3682_v46, %v6825_v53  ;;  %v3724_v51 = vadd.f32 %v3723_v47, %v6843_v22 }
 0x6b5   :  { %v3684_v56 = vpop.f32.mrf.mxu1  ;;  %v3725_v57 = vpop.f32.mrf.mxu0 }
 0x6b6   :  { %v3752_v58 = vadd.f32 %v3735_v19, %v3683_v50  ;;  %v3754_v59 = vadd.f32 %v3743_v44, %v3724_v51  ;;  %v3685_v61 = vadd.f32 %v3684_v56, %v6827_v54  ;;  %v3726_v62 = vadd.f32 %v3725_v57, %v6845_v24 }
 0x6b7   :  { %v3686_v48 = vpop.f32.mrf.mxu1  ;;  %v3727_v63 = vpop.f32.mrf.mxu0 }
 0x6b8   :  { %v3753_v0 = vadd.f32 %v3739_v55, %v3685_v61  ;;  %v3755_v2 = vadd.f32 %v3747_v40, %v3726_v62  ;;  %v3756_v53 = vmax.f32 %v3752_v58, 0.0  ;;  %v3758_v3 = vmax.f32 %v3754_v59, 0.0 }
 0x6b9   :  { %v3687_v22 = vpop.f32.mrf.mxu1  ;;  %v3728_v4 = vpop.f32.mrf.mxu0 }
 0x6ba   :  { %v3757_v5 = vmax.f32 %v3753_v0, 0.0  ;;  %v3759_v6 = vmax.f32 %v3755_v2, 0.0  ;;  %v3760_v7 = vpack.c.bf16 %v3756_v53, %v3756_v53  ;;  %v3762_v10 = vpack.c.bf16 %v3758_v3, %v3758_v3 }
 0x6bc   :  { %v3761_v26 = vpack.c.bf16 %v3757_v5, %v3757_v5  ;;  %v3763_v49 = vpack.c.bf16 %v3759_v6, %v3759_v6 }
 0x6be   :  { %4654 = vmatprep.mubr.bf16.mxu1 %v3761_v26  ;;  %4695 = vmatprep.mubr.bf16.mxu0 %v3763_v49 }
 0x6bf   :  { %4655 = vmatmul.mubr.bf16.vlgmr.msra.gmra.mxu1 %v3760_v7  ;;  %4696 = vmatmul.mubr.bf16.vlgmr.msra.gmra.mxu0 %v3762_v10 }
 0x6f3   :  { %v4254_v54 = vpop.f32.mrf.mxu1  ;;  %v4295_v24 = vpop.f32.mrf.mxu0 }
 0x6f4   :  { %v4296_v11 = vadd.f32 %v4295_v24, %v4254_v54 }
 0x6f5   :  { %v4256_v29 = vpop.f32.mrf.mxu1  ;;  %v4297_v12 = vpop.f32.mrf.mxu0 }
 0x6f6   :  { %v4298_v13 = vadd.f32 %v4297_v12, %v4256_v29 }
 0x6f7   :  { %v4258_v14 = vpop.f32.mrf.mxu1  ;;  %v4299_v15 = vpop.f32.mrf.mxu0 }
 0x6f9   :  { %v4259_v18 = vpop.f32.mrf.mxu1  ;;  %v4300_v20 = vpop.f32.mrf.mxu0 }
 0x77f   :  { %v4656_v42 = vpop.f32.mrf.mxu1  ;;  %v4697_v43 = vpop.f32.mrf.mxu0 }
 0x780   :  { %v4657_v23 = vadd.f32 %v4656_v42, %v4296_v11 }
 0x781   :  { %v4658_v38 = vpop.f32.mrf.mxu1  ;;  %v4699_v1 = vpop.f32.mrf.mxu0 }
 0x782   :  { %v4698_v28 = vadd.f32 %v4697_v43, %v4657_v23  ;;  %v4659_v9 = vadd.f32 %v4658_v38, %v4298_v13 }
 0x783   :  { %v4660_v45 = vpop.f32.mrf.mxu1  ;;  %v4701_v16 = vpop.f32.mrf.mxu0 }
 0x784   :  { %v4716_v30 = vadd.f32 %v4709_v25, %v4698_v28  ;;  %v4700_v31 = vadd.f32 %v4699_v1, %v4659_v9 }
 0x785   :  { %v4661_v32 = vpop.f32.mrf.mxu1  ;;  %v4702_v52 = vpop.f32.mrf.mxu0 }
 0x786   :  { %v5331_v33 = vmul.f32 -1.442695, %v4716_v30  ;;  %v4717_v35 = vadd.f32 %v4713_v17, %v4700_v31 }
 0x788   :  { %6264 = vpow2.f32 %v5331_v33  ;;  %v5332_v36 = vmul.f32 -1.442695, %v4717_v35 }
 0x78a   :  { %6266 = vpow2.f32 %v5332_v36 }
 0x795   :  { %v6265_v37 = vpop.eup %6264 }
 0x796   :  { %v4724_v39 = vadd.f32 1.0, %v6265_v37 }
 0x797   :  { %v6267_v27 = vpop.eup %6266 }
 0x798   :  { %6268 = vrcp.f32 %v4724_v39  ;;  %v4725_v34 = vadd.f32 1.0, %v6267_v27 }
 0x79a   :  { %6270 = vrcp.f32 %v4725_v34 }
 0x7a5   :  { %v6269_v60 = vpop.eup %6268 }
 0x7a6   :  { %v4730_v41 = vmul.f32 99.0, %v6269_v60 }
 0x7a7   :  { %v6271_v8 = vpop.eup %6270 }
 0x7a8   :  { %v4731_v19 = vmul.f32 99.0, %v6271_v8  ;;  %v4732_v44 = vadd.f32 1.0, %v4730_v41 }
 0x7aa   :  { %v4733_v46 = vadd.f32 1.0, %v4731_v19  ;;  %4734 = vst [vmem:[#allocation17] sm:$0xff] %v4732_v44 }
 0x7ac   :  { %4735 = vst [vmem:[#allocation17 + $0x8] sm:$0xff] %v4733_v46 }
 0x7ad   :  { %6463 = shalt.err (!%p6460_p7)
}
 0x7ae   :  { %4745 = dma.vmem_to_hbm [thread:$0]  %s4743_s25, 256, %s6890_s20, [#allocation4]  }
 0x7af   :  { %6482 = dma.done.wait [#allocation4], 256  }
 0x7b0   :  { %6483 = vsyncadd [#allocation4], 4294967040 }
 0x7b1   :  { %4749 = vsyncpa [#allocation3], 1 }
 0x7b2   :  { %4750 = vsyncpa [#allocation6], 1 }
 0x7b3   :  { %4751 = vsyncpa [#allocation9], 1 }
 0x7b4   :  { %4752 = vsyncpa [#allocation12], 1 }
 0x7b5   :  { %4753 = vsyncpa [#allocation15], 1 }
 0x7b6   :  { %4754 = vsyncpa [#allocation4], 1 }

</bundles_post_ra>
